<compile_context>
chip_gen: v7x
topology: tpu7x:2x2x1
jax: 0.10.0
libtpu: 0.0.40
codegen_flags: <defaults>
</compile_context>

<pallas_src>
import functools

import jax
import jax.numpy as jnp
import numpy as np
from jax.experimental import pallas as pl
from jax.experimental.pallas import tpu as pltpu


# ----------------------------- Pallas kernel --------------------------------
def _dtm_kernel(kw_ref, rd_ref, tri_ref, o_ref, *, r):
    """One grid step handles TB images, laid out as columns of a (K, N) slab.

    kw_ref : (K, N)  bound-normalized knn weights, N = TB*HW, column = t*HW + p
    rd_ref : (K, N)  r-powered knn distances (tiled over the TB images)
    tri_ref: (K, K)  lower-triangular ones, tri[a, b] = (b <= a)
    o_ref  : (1, 1, N) DTM values (lane-dense store)
    """
    kw = kw_ref[...]
    rd = rd_ref[...]
    tri = tri_ref[...]
    K = kw.shape[0]

    # cumulative sums along the neighbour axis as MXU matmuls
    cum_w = jnp.dot(tri, kw, preferred_element_type=jnp.float32)        # (K, N)
    cum_d = jnp.dot(tri, rd * kw, preferred_element_type=jnp.float32)   # (K, N)

    # torch.searchsorted(cum_w, bound, side='left') == #entries strictly < bound
    # (weights are normalized by bound, so the threshold is 1.0)
    k_cnt = jnp.sum((cum_w < 1.0).astype(jnp.float32), axis=0, keepdims=True)  # (1, N)
    k_idx = jnp.minimum(k_cnt.astype(jnp.int32), K - 1)                        # clamp (== k[k==HW]-=1)

    # gather-at-k via a one-hot select along sublanes + reduction
    row = jax.lax.broadcasted_iota(jnp.int32, cum_w.shape, 0)                  # (K, N)
    sel = (row == k_idx).astype(jnp.float32)
    val = jnp.sum(sel * (cum_d + rd * (1.0 - cum_w)), axis=0, keepdims=True)   # (1, N)

    if r == 2:
        dtm = jnp.sqrt(val)
    elif r == 1:
        dtm = val
    else:
        dtm = jnp.power(val, 1.0 / r)

    o_ref[...] = dtm.reshape(1, 1, -1)


# ------------------------------ JAX glue -------------------------------------
def make_grid(lims, size):
    """Matches the torch make_grid: H descending, W ascending, columns swapped to (x, y)."""
    hs = jnp.linspace(float(lims[0][1]), float(lims[0][0]), size[0], dtype=jnp.float32)
    ws = jnp.linspace(float(lims[1][0]), float(lims[1][1]), size[1], dtype=jnp.float32)
    hh, ww = jnp.meshgrid(hs, ws, indexing="ij")
    return jnp.stack([ww.ravel(), hh.ravel()], axis=-1)   # [(H*W), 2]


def cal_dist(grid, r=2):
    diff = grid[:, None, :] - grid[None, :, :]
    if r == 2:
        return jnp.sqrt(jnp.sum(diff ** 2, -1))
    elif r == 1:
        return jnp.sum(jnp.abs(diff), -1)
    return jnp.power(jnp.sum(diff ** r, -1), 1.0 / r)


def _choose_tb(BC, HW, K, budget_bytes=512 * 1024):
    """Images per grid step: largest legal divisor of BC whose streaming block fits
    the VMEM budget while keeping >= 2 grid steps (v7x has 2 TensorCores)."""
    per_image = HW * K * 4
    legal = [tb for tb in range(1, BC + 1)
             if BC % tb == 0 and (tb == BC or (tb * HW) % 128 == 0)]
    best = legal[0]
    for tb in legal:
        if tb * per_image > budget_bytes:
            continue
        if BC >= 2 and BC // tb < 2:
            continue
        best = max(best, tb)
    return best


@functools.partial(jax.jit, static_argnames=("m0", "r", "tb"))
def _dtm_forward(x, knn_index, rd_tiled_t, tri_low, *, m0, r, tb):
    B, C, H, W = x.shape
    HW, K = knn_index.shape
    BC = B * C
    nb = BC // tb
    N = tb * HW

    weight = x.reshape(BC, HW).astype(jnp.float32)
    bound = m0 * jnp.sum(weight, axis=-1, keepdims=True)          # [BC, 1]
    wn = weight / bound                                           # bound-normalized measure

    # TODO(synk): the knn weight gather stays in XLA glue; fusing it in-kernel
    # (one-hot MXU gather / scalar-prefetch index walk) only pays off when K << HW.
    kwn = wn[:, knn_index]                                        # [BC, HW, K]
    kwn_t = jnp.transpose(kwn, (2, 0, 1)).reshape(K, BC * HW)     # [K, BC*HW], col = bc*HW + p

    kernel = functools.partial(_dtm_kernel, r=r)
    out = pl.pallas_call(
        kernel,
        out_shape=jax.ShapeDtypeStruct((nb, 1, N), jnp.float32),
        grid_spec=pltpu.PrefetchScalarGridSpec(
            num_scalar_prefetch=0,
            grid=(nb,),
            in_specs=[
                pl.BlockSpec((K, N), lambda b: (0, b)),   # streaming normalized knn weights
                pl.BlockSpec((K, N), lambda b: (0, 0)),   # resident r-powered knn distances
                pl.BlockSpec((K, K), lambda b: (0, 0)),   # resident lower-triangular ones
            ],
            out_specs=pl.BlockSpec((1, 1, N), lambda b: (b, 0, 0)),
        ),
        compiler_params=pltpu.CompilerParams(
            dimension_semantics=("parallel",)),
    )(kwn_t, rd_tiled_t, tri_low)

    return out.reshape(B, C, H, W)


class DTMLayerPallas:
    """Pallas-TPU implementation of DTMLayer.forward."""

    def __init__(self, m0=0.05, lims=((1, 28), (1, 28)), size=(28, 28), r=2, max_k=None):
        self.m0 = float(m0)
        self.r = r
        self.size = (int(size[0]), int(size[1]))
        HW = self.size[0] * self.size[1]

        grid = make_grid(lims, self.size)
        dist = cal_dist(grid, r=2)          # reference builds dist with default r=2

        # Static K: default K == HW is provably equivalent to the reference's
        # data-dependent max_k (for nonnegative inputs) while keeping a single
        # compiled kernel and no host sync.  A user-supplied max_k must upper
        # bound the data-dependent k, otherwise results diverge.
        K = HW if max_k is None else min(int(max_k), HW)
        self.K = K

        order = jnp.argsort(dist, axis=-1)[:, :K]                    # [HW, K]
        knn_dist = jnp.take_along_axis(dist, order, axis=-1)         # [HW, K]
        if r == 2:
            rd = knn_dist * knn_dist
        elif r == 1:
            rd = knn_dist
        else:
            rd = jnp.power(knn_dist, float(r))

        self.knn_index = order.astype(jnp.int32)                     # [HW, K]
        self.rd_T = jnp.asarray(rd.T, dtype=jnp.float32)             # [K, HW]
        self.tri_low = (jnp.arange(K)[None, :] <= jnp.arange(K)[:, None]).astype(jnp.float32)
        self._rd_tiled_cache = {}

    def __call__(self, x):
        B, C, H, W = x.shape
        assert (H, W) == self.size, (x.shape, self.size)
        HW = H * W
        BC = B * C

        tb = _choose_tb(BC, HW, self.K)
        rd_tiled = self._rd_tiled_cache.get(tb)
        if rd_tiled is None:
            rd_tiled = jnp.tile(self.rd_T, (1, tb))                  # [K, tb*HW]
            self._rd_tiled_cache[tb] = rd_tiled

        return _dtm_forward(x, self.knn_index, rd_tiled, self.tri_low,
                            m0=self.m0, r=self.r, tb=tb)


# --------------------------- pure-JAX reference -------------------------------
def _reference_dtm(x, dist, m0, r):
    """Direct transcription of the torch module (including the dynamic max_k)."""
    B, C, H, W = x.shape
    HW = H * W
    weight = x.reshape(B, C, HW).astype(jnp.float32)
    bound = m0 * jnp.sum(weight, -1, keepdims=True)                  # [B,C,1]
    sorted_w = jnp.sort(weight, -1)
    csum = jnp.cumsum(sorted_w, -1)
    max_k = int(jnp.max(jnp.sum(csum < bound, -1))) + 1
    max_k = min(max_k, HW)

    knn_index = jnp.argsort(dist, -1)[:, :max_k]                     # [HW, K]
    knn_dist = jnp.sort(dist, -1)[:, :max_k]                         # [HW, K]
    knn_w = weight[:, :, knn_index]                                  # [B,C,HW,K]
    cum_w = jnp.cumsum(knn_w, -1)
    b4 = bound[..., None]                                            # [B,C,1,1]
    k = jnp.sum((cum_w < b4).astype(jnp.int32), -1, keepdims=True)   # searchsorted left
    k = jnp.minimum(k, max_k - 1)
    if r == 2:
        rd = knn_dist ** 2
    elif r == 1:
        rd = knn_dist
    else:
        rd = knn_dist ** r
    rd = rd[None, None]
    cum_d = jnp.cumsum(rd * knn_w, -1)
    val = jnp.take_along_axis(cum_d + rd * (b4 - cum_w), k, -1)[..., 0]
    ratio = val / bound
    if r == 2:
        dtm = jnp.sqrt(ratio)
    elif r == 1:
        dtm = ratio
    else:
        dtm = ratio ** (1.0 / r)
    return dtm.reshape(B, C, H, W)


# --------------------------------- demo --------------------------------------
if __name__ == "__main__":
    key = jax.random.PRNGKey(0)
    B, C, H, W = 2, 4, 16, 16
    # DTM treats the input as a (nonnegative) measure per pixel.
    x = jax.random.uniform(key, (B, C, H, W), dtype=jnp.float32)

    layer = DTMLayerPallas(m0=0.05, lims=((1, H), (1, W)), size=(H, W), r=2)
    y = layer(x)
    jax.block_until_ready(y)

    assert y.shape == (B, C, H, W), y.shape
    assert bool(jnp.all(jnp.isfinite(y)))

    # check against a pure-JAX transcription of the torch module
    y_ref = _reference_dtm(x, cal_dist(make_grid(((1, H), (1, W)), (H, W)), r=2),
                           m0=0.05, r=2)
    np.testing.assert_allclose(np.asarray(y), np.asarray(y_ref), rtol=1e-3, atol=1e-3)

    print("KERNEL_OK")
</pallas_src>

<mosaic_0001>
module attributes {stable_mosaic.version = 11 : i64} {
  func.func @_dtm_kernel(%arg0: i32, %arg1: memref<256x512xf32, #tpu.memory_space<vmem>>, %arg2: memref<256x512xf32, #tpu.memory_space<vmem>>, %arg3: memref<256x256xf32, #tpu.memory_space<vmem>>, %arg4: memref<1x1x512xf32, #tpu.memory_space<vmem>>) attributes {dimension_semantics = [#tpu.dimension_semantics<parallel>], iteration_bounds = array<i64: 4>, scalar_prefetch = 0 : i64, scratch_operands = 0 : i64, tpu.core_type = #tpu.core_type<tc>, window_params = [{transform_indices = @transform_0, window_bounds = array<i64: 256, 512>}, {pipeline_mode = #tpu.pipeline_mode<synchronous>, transform_indices = @transform_1, window_bounds = array<i64: 256, 512>}, {pipeline_mode = #tpu.pipeline_mode<synchronous>, transform_indices = @transform_2, window_bounds = array<i64: 256, 256>}, {transform_indices = @transform_3, window_bounds = array<i64: 1, 1, 512>}]} {
    %c0 = arith.constant 0 : index
    %c0_0 = arith.constant 0 : index
    %0 = vector.load %arg1[%c0, %c0_0] : memref<256x512xf32, #tpu.memory_space<vmem>>, vector<256x512xf32>
    %c0_1 = arith.constant 0 : index
    %c0_2 = arith.constant 0 : index
    %1 = vector.load %arg2[%c0_1, %c0_2] : memref<256x512xf32, #tpu.memory_space<vmem>>, vector<256x512xf32>
    %c0_3 = arith.constant 0 : index
    %c0_4 = arith.constant 0 : index
    %2 = vector.load %arg3[%c0_3, %c0_4] : memref<256x256xf32, #tpu.memory_space<vmem>>, vector<256x256xf32>
    %cst = arith.constant dense<0.000000e+00> : vector<256x512xf32>
    %3 = tpu.matmul %2, %0, %cst {dimension_numbers = #tpu.dot_dimension_numbers<[1], [0], [0], [1], [0, 0, 1, 1], [], []>} : vector<256x256xf32>, vector<256x512xf32>, vector<256x512xf32> -> vector<256x512xf32>
    %4 = arith.mulf %1, %0 : vector<256x512xf32>
    %cst_5 = arith.constant dense<0.000000e+00> : vector<256x512xf32>
    %5 = tpu.matmul %2, %4, %cst_5 {dimension_numbers = #tpu.dot_dimension_numbers<[1], [0], [0], [1], [0, 0, 1, 1], [], []>} : vector<256x256xf32>, vector<256x512xf32>, vector<256x512xf32> -> vector<256x512xf32>
    %cst_6 = arith.constant 1.000000e+00 : f32
    %6 = vector.broadcast %cst_6 : f32 to vector<256x512xf32>
    %7 = arith.cmpf olt, %3, %6 : vector<256x512xf32>
    %8 = arith.extui %7 : vector<256x512xi1> to vector<256x512xi32>
    %9 = arith.sitofp %8 : vector<256x512xi32> to vector<256x512xf32>
    %cst_7 = arith.constant dense<0.000000e+00> : vector<512xf32>
    %10 = vector.multi_reduction <add>, %9, %cst_7 [0] : vector<256x512xf32> to vector<512xf32>
    %11 = vector.shape_cast %10 : vector<512xf32> to vector<1x512xf32>
    %12 = arith.fptosi %11 : vector<1x512xf32> to vector<1x512xi32>
    %c255_i32 = arith.constant 255 : i32
    %13 = vector.broadcast %c255_i32 : i32 to vector<1x512xi32>
    %14 = arith.minsi %12, %13 : vector<1x512xi32>
    %15 = tpu.iota {dimensions = array<i32: 0>} : vector<256x512xi32>
    %16 = vector.broadcast %14 : vector<1x512xi32> to vector<256x512xi32>
    %17 = arith.cmpi eq, %15, %16 : vector<256x512xi32>
    %18 = arith.extui %17 : vector<256x512xi1> to vector<256x512xi32>
    %19 = arith.sitofp %18 : vector<256x512xi32> to vector<256x512xf32>
    %cst_8 = arith.constant 1.000000e+00 : f32
    %20 = vector.broadcast %cst_8 : f32 to vector<256x512xf32>
    %21 = arith.subf %20, %3 : vector<256x512xf32>
    %22 = arith.mulf %1, %21 : vector<256x512xf32>
    %23 = arith.addf %5, %22 : vector<256x512xf32>
    %24 = arith.mulf %19, %23 : vector<256x512xf32>
    %cst_9 = arith.constant dense<0.000000e+00> : vector<512xf32>
    %25 = vector.multi_reduction <add>, %24, %cst_9 [0] : vector<256x512xf32> to vector<512xf32>
    %26 = vector.shape_cast %25 : vector<512xf32> to vector<1x512xf32>
    %27 = math.sqrt %26 : vector<1x512xf32>
    %28 = vector.shape_cast %27 : vector<1x512xf32> to vector<1x1x512xf32>
    %c0_10 = arith.constant 0 : index
    %c0_11 = arith.constant 0 : index
    %c0_12 = arith.constant 0 : index
    %29 = vector.load %arg4[%c0_10, %c0_11, %c0_12] : memref<1x1x512xf32, #tpu.memory_space<vmem>>, vector<1x1x512xf32>
    tpu.vector_store %arg4[%c0_10, %c0_11, %c0_12], %28 {strides = array<i32>} : memref<1x1x512xf32, #tpu.memory_space<vmem>>, vector<1x1x512xf32>,
    return
  }
  func.func @transform_0(%arg0: i32) -> (i32, i32) {
    %c0_i32 = arith.constant 0 : i32
    %c0_i32_0 = arith.constant 0 : i32
    return %c0_i32, %arg0 : i32, i32
  }
  func.func @transform_1(%arg0: i32) -> (i32, i32) {
    %c0_i32 = arith.constant 0 : i32
    %c0_i32_0 = arith.constant 0 : i32
    %c0_i32_1 = arith.constant 0 : i32
    return %c0_i32, %c0_i32_0 : i32, i32
  }
  func.func @transform_2(%arg0: i32) -> (i32, i32) {
    %c0_i32 = arith.constant 0 : i32
    %c0_i32_0 = arith.constant 0 : i32
    %c0_i32_1 = arith.constant 0 : i32
    return %c0_i32, %c0_i32_0 : i32, i32
  }
  func.func @transform_3(%arg0: i32) -> (i32, i32, i32) {
    %c0_i32 = arith.constant 0 : i32
    %c0_i32_0 = arith.constant 0 : i32
    %c0_i32_1 = arith.constant 0 : i32
    return %arg0, %c0_i32, %c0_i32_0 : i32, i32, i32
  }
}

</mosaic_0001>

<bundles_post_ra>
// kernel: _dtm_forward.1
= control target key start
LH: loop header
LB: loop body
LE: loop exit
PB: predicated region body
PF: predicated region fallthrough
CT: control target
= control target key end

     0   :  { %s4280_s12 = smov 0   ;;  %s4282_s13 = smov 0   ;;  %s8312_s0 = inlined_call_operand.vmem [shape: f32[256,2048], index: 0, kind: input, shape index: {}]   ;;  %s8313_s1 = inlined_call_operand.vmem [shape: f32[256,512], index: 1, kind: input, shape index: {}]   ;;  %s8314_s2 = inlined_call_operand.vmem [shape: f32[256,256], index: 2, kind: input, shape index: {}]   ;;  %s8315_s3 = inlined_call_operand.vmem [shape: f32[4,1,512], index: 3, kind: output, shape index: {}]  }
   0x1   :  { %s4284_s14 = smov 0  }
   0x2 LB: > { %s3534_s15 = sadd.s32 4294967295, %s4256_s14   ;;  %s4297_s16 = sadd.s32 1, %s4256_s14   ;;  %s4256_s14 = sphi %s4284_s14, %s9001_s14   ;;  %s4252_s13 = sphi %s4282_s13, %s9000_s13   ;;  %s4248_s12 = sphi %s4280_s12, %s8999_s12  }
   0x3   : > { %s17_s17 = ssub.s32 %s4256_s14, %s4297_s16  ;;  %s20_s18 = sadd.s32 1, %s4252_s13 }
   0x4   : > { %p18_p0 = scmp.eq.s32.totalorder %s17_s17, 0  ;;  %p27_p1 = scmp.ne.s32.totalorder %s4252_s13, %s4248_s12 }
   0x5   : > { %p28_p2 = scmp.eq.s32.totalorder %s4256_s14, 0  ;;  %p3537_p4 = scmp.ge.s32.totalorder %s4256_s14, 4 }
   0x6   : > { %s4306_s19 = scalar_select %p18_p0, %s4252_s13, %s20_s18  }
   0x7   : > { %p29_p3 = por %p28_p2, %p27_p1  ;;  %127 = sbr.rel (%p3537_p4) target bundleno = 82 (0x52), region = 24 }
   0xe   : > { %130 = sbr.rel (!%p29_p3) target bundleno = 82 (0x52), region = 28  ;;  %s132_s20 = sand.u32 (%p29_p3), 1, %s4252_s13  }
   0xf   : > { %s3802_s21 = sshll.u32 (%p29_p3), %s4256_s14, 5  ;;  %s3538_s22 = sshll.u32 (%p29_p3), %s132_s20, 10 }
  0x10   : > { %s4314_s25 = scalar_lea.vmem (%p29_p3), %s8312_s0, %s3802_s21  ;;  %s4319_s26 = scalar_lea.vmem (%p29_p3), [#allocation2], %s3538_s22 }
  0x11   : > { %v150_v0 = vld [vmem:[%s4314_s25] sm:$0xff] (%p29_p3)  ;;  %v152_v1 = vld [vmem:[%s4314_s25 + $0x8] sm:$0xff] (%p29_p3)  ;;  %v154_v2 = vld [vmem:[%s4314_s25 + $0x10] sm:$0xff] (%p29_p3) }
  0x12   : > { %151 = vst [vmem:[%s4319_s26] sm:$0xff] (%p29_p3), %v150_v0  ;;  %153 = vst [vmem:[%s4319_s26 + $0x8] sm:$0xff] (%p29_p3), %v152_v1  ;;  %v156_v3 = vld [vmem:[%s4314_s25 + $0x18] sm:$0xff] (%p29_p3)  ;;  %v158_v4 = vld [vmem:[%s4314_s25 + $0x80] sm:$0xff] (%p29_p3) }
  0x13   : > { %155 = vst [vmem:[%s4319_s26 + $0x10] sm:$0xff] (%p29_p3), %v154_v2  ;;  %v160_v5 = vld [vmem:[%s4314_s25 + $0x88] sm:$0xff] (%p29_p3)  ;;  %157 = vst [vmem:[%s4319_s26 + $0x18] sm:$0xff] (%p29_p3), %v156_v3  ;;  %v162_v6 = vld [vmem:[%s4314_s25 + $0x90] sm:$0xff] (%p29_p3) }
  0x14   : > { %159 = vst [vmem:[%s4319_s26 + $0x20] sm:$0xff] (%p29_p3), %v158_v4  ;;  %161 = vst [vmem:[%s4319_s26 + $0x28] sm:$0xff] (%p29_p3), %v160_v5  ;;  %v164_v7 = vld [vmem:[%s4314_s25 + $0x98] sm:$0xff] (%p29_p3)  ;;  %v166_v8 = vld [vmem:[%s4314_s25 + $0x100] sm:$0xff] (%p29_p3) }
  0x15   : > { %163 = vst [vmem:[%s4319_s26 + $0x30] sm:$0xff] %v162_v6  ;;  %165 = vst [vmem:[%s4319_s26 + $0x38] sm:$0xff] %v164_v7  ;;  %v168_v9 = vld [vmem:[%s4314_s25 + $0x108] sm:$0xff]  ;;  %v170_v10 = vld [vmem:[%s4314_s25 + $0x110] sm:$0xff] }
  0x16   : > { %167 = vst [vmem:[%s4319_s26 + $0x40] sm:$0xff] %v166_v8  ;;  %v172_v11 = vld [vmem:[%s4314_s25 + $0x118] sm:$0xff]  ;;  %169 = vst [vmem:[%s4319_s26 + $0x48] sm:$0xff] %v168_v9  ;;  %v174_v12 = vld [vmem:[%s4314_s25 + $0x180] sm:$0xff] }
  0x17   : > { %171 = vst [vmem:[%s4319_s26 + $0x50] sm:$0xff] %v170_v10  ;;  %173 = vst [vmem:[%s4319_s26 + $0x58] sm:$0xff] %v172_v11  ;;  %v176_v13 = vld [vmem:[%s4314_s25 + $0x188] sm:$0xff]  ;;  %v178_v14 = vld [vmem:[%s4314_s25 + $0x190] sm:$0xff] }
  0x18   : > { %175 = vst [vmem:[%s4319_s26 + $0x60] sm:$0xff] %v174_v12  ;;  %177 = vst [vmem:[%s4319_s26 + $0x68] sm:$0xff] %v176_v13  ;;  %v180_v15 = vld [vmem:[%s4314_s25 + $0x198] sm:$0xff]  ;;  %v182_v16 = vld [vmem:[%s4314_s25 + $0x200] sm:$0xff] }
  0x19   : > { %179 = vst [vmem:[%s4319_s26 + $0x70] sm:$0xff] %v178_v14  ;;  %v184_v17 = vld [vmem:[%s4314_s25 + $0x208] sm:$0xff]  ;;  %181 = vst [vmem:[%s4319_s26 + $0x78] sm:$0xff] %v180_v15  ;;  %v186_v18 = vld [vmem:[%s4314_s25 + $0x210] sm:$0xff] }
  0x1a   : > { %183 = vst [vmem:[%s4319_s26 + $0x80] sm:$0xff] %v182_v16  ;;  %185 = vst [vmem:[%s4319_s26 + $0x88] sm:$0xff] %v184_v17  ;;  %v188_v19 = vld [vmem:[%s4314_s25 + $0x218] sm:$0xff]  ;;  %v190_v20 = vld [vmem:[%s4314_s25 + $0x280] sm:$0xff] }
  0x1b   : > { %187 = vst [vmem:[%s4319_s26 + $0x90] sm:$0xff] %v186_v18  ;;  %189 = vst [vmem:[%s4319_s26 + $0x98] sm:$0xff] %v188_v19  ;;  %v192_v21 = vld [vmem:[%s4314_s25 + $0x288] sm:$0xff]  ;;  %v194_v22 = vld [vmem:[%s4314_s25 + $0x290] sm:$0xff] }
  0x1c   : > { %191 = vst [vmem:[%s4319_s26 + $0xa0] sm:$0xff] %v190_v20  ;;  %v196_v23 = vld [vmem:[%s4314_s25 + $0x298] sm:$0xff]  ;;  %193 = vst [vmem:[%s4319_s26 + $0xa8] sm:$0xff] %v192_v21  ;;  %v198_v24 = vld [vmem:[%s4314_s25 + $0x300] sm:$0xff] }
  0x1d   : > { %195 = vst [vmem:[%s4319_s26 + $0xb0] sm:$0xff] %v194_v22  ;;  %197 = vst [vmem:[%s4319_s26 + $0xb8] sm:$0xff] %v196_v23  ;;  %v200_v25 = vld [vmem:[%s4314_s25 + $0x308] sm:$0xff]  ;;  %v202_v26 = vld [vmem:[%s4314_s25 + $0x310] sm:$0xff] }
  0x1e   : > { %199 = vst [vmem:[%s4319_s26 + $0xc0] sm:$0xff] %v198_v24  ;;  %201 = vst [vmem:[%s4319_s26 + $0xc8] sm:$0xff] %v200_v25  ;;  %v204_v27 = vld [vmem:[%s4314_s25 + $0x318] sm:$0xff]  ;;  %v206_v28 = vld [vmem:[%s4314_s25 + $0x380] sm:$0xff] }
  0x1f   : > { %203 = vst [vmem:[%s4319_s26 + $0xd0] sm:$0xff] %v202_v26  ;;  %v208_v29 = vld [vmem:[%s4314_s25 + $0x388] sm:$0xff]  ;;  %205 = vst [vmem:[%s4319_s26 + $0xd8] sm:$0xff] %v204_v27  ;;  %v210_v30 = vld [vmem:[%s4314_s25 + $0x390] sm:$0xff] }
  0x20   : > { %207 = vst [vmem:[%s4319_s26 + $0xe0] sm:$0xff] %v206_v28  ;;  %209 = vst [vmem:[%s4319_s26 + $0xe8] sm:$0xff] %v208_v29  ;;  %v212_v31 = vld [vmem:[%s4314_s25 + $0x398] sm:$0xff]  ;;  %v214_v32 = vld [vmem:[%s4314_s25 + $0x400] sm:$0xff] }
  0x21   : > { %211 = vst [vmem:[%s4319_s26 + $0xf0] sm:$0xff] %v210_v30  ;;  %213 = vst [vmem:[%s4319_s26 + $0xf8] sm:$0xff] %v212_v31  ;;  %v216_v33 = vld [vmem:[%s4314_s25 + $0x408] sm:$0xff]  ;;  %v218_v34 = vld [vmem:[%s4314_s25 + $0x410] sm:$0xff] }
  0x22   : > { %215 = vst [vmem:[%s4319_s26 + $0x100] sm:$0xff] %v214_v32  ;;  %v220_v35 = vld [vmem:[%s4314_s25 + $0x418] sm:$0xff]  ;;  %217 = vst [vmem:[%s4319_s26 + $0x108] sm:$0xff] %v216_v33  ;;  %v222_v36 = vld [vmem:[%s4314_s25 + $0x480] sm:$0xff] }
  0x23   : > { %219 = vst [vmem:[%s4319_s26 + $0x110] sm:$0xff] %v218_v34  ;;  %221 = vst [vmem:[%s4319_s26 + $0x118] sm:$0xff] %v220_v35  ;;  %v224_v37 = vld [vmem:[%s4314_s25 + $0x488] sm:$0xff]  ;;  %v226_v38 = vld [vmem:[%s4314_s25 + $0x490] sm:$0xff] }
  0x24   : > { %223 = vst [vmem:[%s4319_s26 + $0x120] sm:$0xff] %v222_v36  ;;  %225 = vst [vmem:[%s4319_s26 + $0x128] sm:$0xff] %v224_v37  ;;  %v228_v39 = vld [vmem:[%s4314_s25 + $0x498] sm:$0xff]  ;;  %v230_v40 = vld [vmem:[%s4314_s25 + $0x500] sm:$0xff] }
  0x25   : > { %227 = vst [vmem:[%s4319_s26 + $0x130] sm:$0xff] %v226_v38  ;;  %v232_v41 = vld [vmem:[%s4314_s25 + $0x508] sm:$0xff]  ;;  %229 = vst [vmem:[%s4319_s26 + $0x138] sm:$0xff] %v228_v39  ;;  %v234_v42 = vld [vmem:[%s4314_s25 + $0x510] sm:$0xff] }
  0x26   : > { %231 = vst [vmem:[%s4319_s26 + $0x140] sm:$0xff] %v230_v40  ;;  %233 = vst [vmem:[%s4319_s26 + $0x148] sm:$0xff] %v232_v41  ;;  %v236_v43 = vld [vmem:[%s4314_s25 + $0x518] sm:$0xff]  ;;  %v238_v44 = vld [vmem:[%s4314_s25 + $0x580] sm:$0xff] }
  0x27   : > { %235 = vst [vmem:[%s4319_s26 + $0x150] sm:$0xff] %v234_v42  ;;  %237 = vst [vmem:[%s4319_s26 + $0x158] sm:$0xff] %v236_v43  ;;  %v240_v45 = vld [vmem:[%s4314_s25 + $0x588] sm:$0xff]  ;;  %v242_v46 = vld [vmem:[%s4314_s25 + $0x590] sm:$0xff] }
  0x28   : > { %239 = vst [vmem:[%s4319_s26 + $0x160] sm:$0xff] %v238_v44  ;;  %v244_v47 = vld [vmem:[%s4314_s25 + $0x598] sm:$0xff]  ;;  %241 = vst [vmem:[%s4319_s26 + $0x168] sm:$0xff] %v240_v45  ;;  %v246_v48 = vld [vmem:[%s4314_s25 + $0x600] sm:$0xff] }
  0x29   : > { %243 = vst [vmem:[%s4319_s26 + $0x170] sm:$0xff] %v242_v46  ;;  %245 = vst [vmem:[%s4319_s26 + $0x178] sm:$0xff] %v244_v47  ;;  %v248_v49 = vld [vmem:[%s4314_s25 + $0x608] sm:$0xff]  ;;  %v250_v50 = vld [vmem:[%s4314_s25 + $0x610] sm:$0xff] }
  0x2a   : > { %247 = vst [vmem:[%s4319_s26 + $0x180] sm:$0xff] %v246_v48  ;;  %249 = vst [vmem:[%s4319_s26 + $0x188] sm:$0xff] %v248_v49  ;;  %v252_v51 = vld [vmem:[%s4314_s25 + $0x618] sm:$0xff]  ;;  %v254_v52 = vld [vmem:[%s4314_s25 + $0x680] sm:$0xff] }
  0x2b   : > { %251 = vst [vmem:[%s4319_s26 + $0x190] sm:$0xff] %v250_v50  ;;  %v256_v53 = vld [vmem:[%s4314_s25 + $0x688] sm:$0xff]  ;;  %253 = vst [vmem:[%s4319_s26 + $0x198] sm:$0xff] %v252_v51  ;;  %v258_v54 = vld [vmem:[%s4314_s25 + $0x690] sm:$0xff] }
  0x2c   : > { %255 = vst [vmem:[%s4319_s26 + $0x1a0] sm:$0xff] %v254_v52  ;;  %257 = vst [vmem:[%s4319_s26 + $0x1a8] sm:$0xff] %v256_v53  ;;  %v260_v55 = vld [vmem:[%s4314_s25 + $0x698] sm:$0xff]  ;;  %v262_v56 = vld [vmem:[%s4314_s25 + $0x700] sm:$0xff] }
  0x2d   : > { %259 = vst [vmem:[%s4319_s26 + $0x1b0] sm:$0xff] %v258_v54  ;;  %261 = vst [vmem:[%s4319_s26 + $0x1b8] sm:$0xff] %v260_v55  ;;  %v264_v57 = vld [vmem:[%s4314_s25 + $0x708] sm:$0xff]  ;;  %v266_v58 = vld [vmem:[%s4314_s25 + $0x710] sm:$0xff] }
  0x2e   : > { %263 = vst [vmem:[%s4319_s26 + $0x1c0] sm:$0xff] %v262_v56  ;;  %v268_v59 = vld [vmem:[%s4314_s25 + $0x718] sm:$0xff]  ;;  %265 = vst [vmem:[%s4319_s26 + $0x1c8] sm:$0xff] %v264_v57  ;;  %v270_v60 = vld [vmem:[%s4314_s25 + $0x780] sm:$0xff] }
  0x2f   : > { %267 = vst [vmem:[%s4319_s26 + $0x1d0] sm:$0xff] %v266_v58  ;;  %269 = vst [vmem:[%s4319_s26 + $0x1d8] sm:$0xff] %v268_v59  ;;  %v272_v61 = vld [vmem:[%s4314_s25 + $0x788] sm:$0xff]  ;;  %v274_v62 = vld [vmem:[%s4314_s25 + $0x790] sm:$0xff] }
  0x30   : > { %271 = vst [vmem:[%s4319_s26 + $0x1e0] sm:$0xff] %v270_v60  ;;  %273 = vst [vmem:[%s4319_s26 + $0x1e8] sm:$0xff] %v272_v61  ;;  %v276_v63 = vld [vmem:[%s4314_s25 + $0x798] sm:$0xff]  ;;  %v278_v0 = vld [vmem:[%s4314_s25 + $0x800] sm:$0xff] }
  0x31   : > { %275 = vst [vmem:[%s4319_s26 + $0x1f0] sm:$0xff] %v274_v62  ;;  %v280_v1 = vld [vmem:[%s4314_s25 + $0x808] sm:$0xff]  ;;  %277 = vst [vmem:[%s4319_s26 + $0x1f8] sm:$0xff] %v276_v63  ;;  %v282_v2 = vld [vmem:[%s4314_s25 + $0x810] sm:$0xff] }
  0x32   : > { %279 = vst [vmem:[%s4319_s26 + $0x200] sm:$0xff] %v278_v0  ;;  %281 = vst [vmem:[%s4319_s26 + $0x208] sm:$0xff] %v280_v1  ;;  %v284_v3 = vld [vmem:[%s4314_s25 + $0x818] sm:$0xff]  ;;  %v286_v4 = vld [vmem:[%s4314_s25 + $0x880] sm:$0xff] }
  0x33   : > { %283 = vst [vmem:[%s4319_s26 + $0x210] sm:$0xff] %v282_v2  ;;  %285 = vst [vmem:[%s4319_s26 + $0x218] sm:$0xff] %v284_v3  ;;  %v288_v5 = vld [vmem:[%s4314_s25 + $0x888] sm:$0xff]  ;;  %v290_v6 = vld [vmem:[%s4314_s25 + $0x890] sm:$0xff] }
  0x34   : > { %287 = vst [vmem:[%s4319_s26 + $0x220] sm:$0xff] %v286_v4  ;;  %v292_v7 = vld [vmem:[%s4314_s25 + $0x898] sm:$0xff]  ;;  %289 = vst [vmem:[%s4319_s26 + $0x228] sm:$0xff] %v288_v5  ;;  %v294_v8 = vld [vmem:[%s4314_s25 + $0x900] sm:$0xff] }
  0x35   : > { %291 = vst [vmem:[%s4319_s26 + $0x230] sm:$0xff] %v290_v6  ;;  %293 = vst [vmem:[%s4319_s26 + $0x238] sm:$0xff] %v292_v7  ;;  %v296_v9 = vld [vmem:[%s4314_s25 + $0x908] sm:$0xff]  ;;  %v298_v10 = vld [vmem:[%s4314_s25 + $0x910] sm:$0xff] }
  0x36   : > { %295 = vst [vmem:[%s4319_s26 + $0x240] sm:$0xff] %v294_v8  ;;  %297 = vst [vmem:[%s4319_s26 + $0x248] sm:$0xff] %v296_v9  ;;  %v300_v11 = vld [vmem:[%s4314_s25 + $0x918] sm:$0xff]  ;;  %v302_v12 = vld [vmem:[%s4314_s25 + $0x980] sm:$0xff] }
  0x37   : > { %299 = vst [vmem:[%s4319_s26 + $0x250] sm:$0xff] %v298_v10  ;;  %v304_v13 = vld [vmem:[%s4314_s25 + $0x988] sm:$0xff]  ;;  %301 = vst [vmem:[%s4319_s26 + $0x258] sm:$0xff] %v300_v11  ;;  %v306_v14 = vld [vmem:[%s4314_s25 + $0x990] sm:$0xff] }
  0x38   : > { %303 = vst [vmem:[%s4319_s26 + $0x260] sm:$0xff] %v302_v12  ;;  %305 = vst [vmem:[%s4319_s26 + $0x268] sm:$0xff] %v304_v13  ;;  %v308_v15 = vld [vmem:[%s4314_s25 + $0x998] sm:$0xff]  ;;  %v310_v16 = vld [vmem:[%s4314_s25 + $0xa00] sm:$0xff] }
  0x39   : > { %307 = vst [vmem:[%s4319_s26 + $0x270] sm:$0xff] %v306_v14  ;;  %309 = vst [vmem:[%s4319_s26 + $0x278] sm:$0xff] %v308_v15  ;;  %v312_v17 = vld [vmem:[%s4314_s25 + $0xa08] sm:$0xff]  ;;  %v314_v18 = vld [vmem:[%s4314_s25 + $0xa10] sm:$0xff] }
  0x3a   : > { %311 = vst [vmem:[%s4319_s26 + $0x280] sm:$0xff] %v310_v16  ;;  %v316_v19 = vld [vmem:[%s4314_s25 + $0xa18] sm:$0xff]  ;;  %313 = vst [vmem:[%s4319_s26 + $0x288] sm:$0xff] %v312_v17  ;;  %v318_v20 = vld [vmem:[%s4314_s25 + $0xa80] sm:$0xff] }
  0x3b   : > { %315 = vst [vmem:[%s4319_s26 + $0x290] sm:$0xff] %v314_v18  ;;  %317 = vst [vmem:[%s4319_s26 + $0x298] sm:$0xff] %v316_v19  ;;  %v320_v21 = vld [vmem:[%s4314_s25 + $0xa88] sm:$0xff]  ;;  %v322_v22 = vld [vmem:[%s4314_s25 + $0xa90] sm:$0xff] }
  0x3c   : > { %319 = vst [vmem:[%s4319_s26 + $0x2a0] sm:$0xff] %v318_v20  ;;  %321 = vst [vmem:[%s4319_s26 + $0x2a8] sm:$0xff] %v320_v21  ;;  %v324_v23 = vld [vmem:[%s4314_s25 + $0xa98] sm:$0xff]  ;;  %v326_v24 = vld [vmem:[%s4314_s25 + $0xb00] sm:$0xff] }
  0x3d   : > { %323 = vst [vmem:[%s4319_s26 + $0x2b0] sm:$0xff] %v322_v22  ;;  %v328_v25 = vld [vmem:[%s4314_s25 + $0xb08] sm:$0xff]  ;;  %325 = vst [vmem:[%s4319_s26 + $0x2b8] sm:$0xff] %v324_v23  ;;  %v330_v26 = vld [vmem:[%s4314_s25 + $0xb10] sm:$0xff] }
  0x3e   : > { %327 = vst [vmem:[%s4319_s26 + $0x2c0] sm:$0xff] %v326_v24  ;;  %329 = vst [vmem:[%s4319_s26 + $0x2c8] sm:$0xff] %v328_v25  ;;  %v332_v27 = vld [vmem:[%s4314_s25 + $0xb18] sm:$0xff]  ;;  %v334_v28 = vld [vmem:[%s4314_s25 + $0xb80] sm:$0xff] }
  0x3f   : > { %331 = vst [vmem:[%s4319_s26 + $0x2d0] sm:$0xff] %v330_v26  ;;  %333 = vst [vmem:[%s4319_s26 + $0x2d8] sm:$0xff] %v332_v27  ;;  %v336_v29 = vld [vmem:[%s4314_s25 + $0xb88] sm:$0xff]  ;;  %v338_v30 = vld [vmem:[%s4314_s25 + $0xb90] sm:$0xff] }
  0x40   : > { %335 = vst [vmem:[%s4319_s26 + $0x2e0] sm:$0xff] %v334_v28  ;;  %v340_v31 = vld [vmem:[%s4314_s25 + $0xb98] sm:$0xff]  ;;  %337 = vst [vmem:[%s4319_s26 + $0x2e8] sm:$0xff] %v336_v29  ;;  %v342_v32 = vld [vmem:[%s4314_s25 + $0xc00] sm:$0xff] }
  0x41   : > { %339 = vst [vmem:[%s4319_s26 + $0x2f0] sm:$0xff] %v338_v30  ;;  %341 = vst [vmem:[%s4319_s26 + $0x2f8] sm:$0xff] %v340_v31  ;;  %v344_v33 = vld [vmem:[%s4314_s25 + $0xc08] sm:$0xff]  ;;  %v346_v34 = vld [vmem:[%s4314_s25 + $0xc10] sm:$0xff] }
  0x42   : > { %343 = vst [vmem:[%s4319_s26 + $0x300] sm:$0xff] %v342_v32  ;;  %345 = vst [vmem:[%s4319_s26 + $0x308] sm:$0xff] %v344_v33  ;;  %v348_v35 = vld [vmem:[%s4314_s25 + $0xc18] sm:$0xff]  ;;  %v350_v36 = vld [vmem:[%s4314_s25 + $0xc80] sm:$0xff] }
  0x43   : > { %347 = vst [vmem:[%s4319_s26 + $0x310] sm:$0xff] %v346_v34  ;;  %v352_v37 = vld [vmem:[%s4314_s25 + $0xc88] sm:$0xff]  ;;  %349 = vst [vmem:[%s4319_s26 + $0x318] sm:$0xff] %v348_v35  ;;  %v354_v38 = vld [vmem:[%s4314_s25 + $0xc90] sm:$0xff] }
  0x44   : > { %351 = vst [vmem:[%s4319_s26 + $0x320] sm:$0xff] %v350_v36  ;;  %353 = vst [vmem:[%s4319_s26 + $0x328] sm:$0xff] %v352_v37  ;;  %v356_v39 = vld [vmem:[%s4314_s25 + $0xc98] sm:$0xff]  ;;  %v358_v40 = vld [vmem:[%s4314_s25 + $0xd00] sm:$0xff] }
  0x45   : > { %355 = vst [vmem:[%s4319_s26 + $0x330] sm:$0xff] %v354_v38  ;;  %357 = vst [vmem:[%s4319_s26 + $0x338] sm:$0xff] %v356_v39  ;;  %v360_v41 = vld [vmem:[%s4314_s25 + $0xd08] sm:$0xff]  ;;  %v362_v42 = vld [vmem:[%s4314_s25 + $0xd10] sm:$0xff] }
  0x46   : > { %359 = vst [vmem:[%s4319_s26 + $0x340] sm:$0xff] %v358_v40  ;;  %v364_v43 = vld [vmem:[%s4314_s25 + $0xd18] sm:$0xff]  ;;  %361 = vst [vmem:[%s4319_s26 + $0x348] sm:$0xff] %v360_v41  ;;  %v366_v44 = vld [vmem:[%s4314_s25 + $0xd80] sm:$0xff] }
  0x47   : > { %363 = vst [vmem:[%s4319_s26 + $0x350] sm:$0xff] %v362_v42  ;;  %365 = vst [vmem:[%s4319_s26 + $0x358] sm:$0xff] %v364_v43  ;;  %v368_v45 = vld [vmem:[%s4314_s25 + $0xd88] sm:$0xff]  ;;  %v370_v46 = vld [vmem:[%s4314_s25 + $0xd90] sm:$0xff] }
  0x48   : > { %367 = vst [vmem:[%s4319_s26 + $0x360] sm:$0xff] %v366_v44  ;;  %369 = vst [vmem:[%s4319_s26 + $0x368] sm:$0xff] %v368_v45  ;;  %v372_v47 = vld [vmem:[%s4314_s25 + $0xd98] sm:$0xff]  ;;  %v374_v48 = vld [vmem:[%s4314_s25 + $0xe00] sm:$0xff] }
  0x49   : > { %371 = vst [vmem:[%s4319_s26 + $0x370] sm:$0xff] %v370_v46  ;;  %v376_v49 = vld [vmem:[%s4314_s25 + $0xe08] sm:$0xff]  ;;  %373 = vst [vmem:[%s4319_s26 + $0x378] sm:$0xff] %v372_v47  ;;  %v378_v50 = vld [vmem:[%s4314_s25 + $0xe10] sm:$0xff] }
  0x4a   : > { %375 = vst [vmem:[%s4319_s26 + $0x380] sm:$0xff] %v374_v48  ;;  %377 = vst [vmem:[%s4319_s26 + $0x388] sm:$0xff] %v376_v49  ;;  %v380_v51 = vld [vmem:[%s4314_s25 + $0xe18] sm:$0xff]  ;;  %v382_v52 = vld [vmem:[%s4314_s25 + $0xe80] sm:$0xff] }
  0x4b   : > { %379 = vst [vmem:[%s4319_s26 + $0x390] sm:$0xff] %v378_v50  ;;  %381 = vst [vmem:[%s4319_s26 + $0x398] sm:$0xff] %v380_v51  ;;  %v384_v53 = vld [vmem:[%s4314_s25 + $0xe88] sm:$0xff]  ;;  %v386_v54 = vld [vmem:[%s4314_s25 + $0xe90] sm:$0xff] }
  0x4c   : > { %383 = vst [vmem:[%s4319_s26 + $0x3a0] sm:$0xff] %v382_v52  ;;  %v388_v55 = vld [vmem:[%s4314_s25 + $0xe98] sm:$0xff]  ;;  %385 = vst [vmem:[%s4319_s26 + $0x3a8] sm:$0xff] %v384_v53  ;;  %v390_v56 = vld [vmem:[%s4314_s25 + $0xf00] sm:$0xff] }
  0x4d   : > { %387 = vst [vmem:[%s4319_s26 + $0x3b0] sm:$0xff] %v386_v54  ;;  %389 = vst [vmem:[%s4319_s26 + $0x3b8] sm:$0xff] %v388_v55  ;;  %v392_v57 = vld [vmem:[%s4314_s25 + $0xf08] sm:$0xff]  ;;  %v394_v58 = vld [vmem:[%s4314_s25 + $0xf10] sm:$0xff] }
  0x4e   : > { %391 = vst [vmem:[%s4319_s26 + $0x3c0] sm:$0xff] %v390_v56  ;;  %393 = vst [vmem:[%s4319_s26 + $0x3c8] sm:$0xff] %v392_v57  ;;  %v396_v59 = vld [vmem:[%s4314_s25 + $0xf18] sm:$0xff]  ;;  %v398_v60 = vld [vmem:[%s4314_s25 + $0xf80] sm:$0xff] }
  0x4f   : > { %395 = vst [vmem:[%s4319_s26 + $0x3d0] sm:$0xff] %v394_v58  ;;  %v400_v61 = vld [vmem:[%s4314_s25 + $0xf88] sm:$0xff]  ;;  %397 = vst [vmem:[%s4319_s26 + $0x3d8] sm:$0xff] %v396_v59  ;;  %v402_v62 = vld [vmem:[%s4314_s25 + $0xf90] sm:$0xff] }
  0x50   : > { %399 = vst [vmem:[%s4319_s26 + $0x3e0] sm:$0xff] %v398_v60  ;;  %401 = vst [vmem:[%s4319_s26 + $0x3e8] sm:$0xff] %v400_v61  ;;  %v404_v63 = vld [vmem:[%s4314_s25 + $0xf98] sm:$0xff] }
  0x51   : > { %403 = vst [vmem:[%s4319_s26 + $0x3f0] sm:$0xff] %v402_v62  ;;  %405 = vst [vmem:[%s4319_s26 + $0x3f8] sm:$0xff] %v404_v63 }
  0x52 PF: > { %p3541_p5 = scmp.ge.s32.totalorder %s4256_s14, 1  ;;  %p410_p6 = scmp.lt.s32.totalorder %s4256_s14, 5 }
  0x54   : > { %p411_p7 = pnand %p3541_p5, %p410_p6 }
  0x56   : > { %414 = sbr.rel (%p411_p7) target bundleno = 800 (0x320), region = 51 }
  0x5d   : > { %s417_s27 = sand.u32 1, %s4248_s12   ;;  %p440_p8 = scmp.lt.s32.totalorder %s3534_s15, 3 }
  0x5e   : > { %s3542_s28 = sshll.u32 %s417_s27, 10 }
  0x5f   : > { %s4577_s29 = scalar_lea.vmem [#allocation2], %s3542_s28  ;;  %s9003_s15 = smov (!%p440_p8, %s3534_s15), 3 }
  0x60   : > { %v4580_v0 = vld [vmem:[%s4577_s29 + $0x8] sm:$0xff]  ;;  %v4586_v2 = vld [vmem:[%s4577_s29 + $0x18] sm:$0xff]  ;;  %v4594_v5 = vld [vmem:[%s4577_s29] sm:$0xff]  ;;  %s3543_s20 = sshll.u32 %s9003_s15, 2 }
  0x61   : > { %v4583_v1 = vld [vmem:[%s4577_s29 + $0x28] sm:$0xff]  ;;  %v4591_v4 = vld [vmem:[%s4577_s29 + $0x38] sm:$0xff]  ;;  %v4597_v6 = vld [vmem:[%s4577_s29 + $0x20] sm:$0xff]  ;;  %s443_s23 = scalar_lea.vmem %s8315_s3, %s3543_s20 }
  0x62   : > { %v3803_v3 = vpack.c.bf16 %v4583_v1, %v4580_v0  ;;  %v3867_v7 = vpack.c.bf16 %v4591_v4, %v4586_v2  ;;  %v3805_v8 = vpack.c.bf16 %v4597_v6, %v4594_v5  ;;  %v4604_v9 = vld [vmem:[%s4577_s29 + $0x10] sm:$0xff]  ;;  %v4610_v11 = vld [vmem:[%s4577_s29 + $0x48] sm:$0xff]  ;;  %v4618_v14 = vld [vmem:[%s4577_s29 + $0x58] sm:$0xff] }
  0x63   : > { %v4607_v10 = vld [vmem:[%s4577_s29 + $0x30] sm:$0xff]  ;;  %v4615_v13 = vld [vmem:[%s4577_s29 + $0x68] sm:$0xff]  ;;  %v4621_v15 = vld [vmem:[%s4577_s29 + $0x78] sm:$0xff] }
  0x64   : > { %3804 = vmatprep.subr.bf16.mxu0 %v3803_v3  ;;  %v3869_v12 = vpack.c.bf16 %v4607_v10, %v4604_v9  ;;  %3868 = vmatprep.subr.bf16.mxu1 %v3867_v7  ;;  %v3807_v16 = vpack.c.bf16 %v4615_v13, %v4610_v11  ;;  %v3871_v17 = vpack.c.bf16 %v4621_v15, %v4618_v14  ;;  %v4628_v18 = vld [vmem:[%s4577_s29 + $0x40] sm:$0xff]  ;;  %v4636_v21 = vld [vmem:[%s4577_s29 + $0x50] sm:$0xff]  ;;  %v4644_v24 = vld [vmem:[%s4577_s29 + $0x88] sm:$0xff] }
  0x65   : > { %3806 = vmatpush1.bf16.msra.mxu0 %v3805_v8  ;;  %v4631_v19 = vld [vmem:[%s4577_s29 + $0x60] sm:$0xff]  ;;  %v4639_v22 = vld [vmem:[%s4577_s29 + $0x70] sm:$0xff]  ;;  %v4647_v25 = vld [vmem:[%s4577_s29 + $0xa8] sm:$0xff] }
  0x66   : > { %3870 = vmatpush1.bf16.msra.mxu1 %v3869_v12  ;;  %v3809_v20 = vpack.c.bf16 %v4631_v19, %v4628_v18  ;;  %3808 = vmatprep.subr.bf16.mxu0 %v3807_v16  ;;  %v3873_v23 = vpack.c.bf16 %v4639_v22, %v4636_v21  ;;  %v3811_v26 = vpack.c.bf16 %v4647_v25, %v4644_v24  ;;  %v4652_v27 = vld [vmem:[%s4577_s29 + $0x98] sm:$0xff]  ;;  %v4658_v29 = vld [vmem:[%s4577_s29 + $0x80] sm:$0xff]  ;;  %v4668_v33 = vld [vmem:[%s4577_s29 + $0x90] sm:$0xff] }
  0x67   : > { %3872 = vmatprep.subr.bf16.mxu1 %v3871_v17  ;;  %v4655_v28 = vld [vmem:[%s4577_s29 + $0xb8] sm:$0xff]  ;;  %v4663_v31 = vld [vmem:[%s4577_s29 + $0xa0] sm:$0xff]  ;;  %v4671_v34 = vld [vmem:[%s4577_s29 + $0xb0] sm:$0xff] }
  0x68   : > { %v3875_v30 = vpack.c.bf16 %v4655_v28, %v4652_v27  ;;  %v3813_v32 = vpack.c.bf16 %v4663_v31, %v4658_v29  ;;  %v3877_v35 = vpack.c.bf16 %v4671_v34, %v4668_v33  ;;  %v4676_v36 = vld [vmem:[%s4577_s29 + $0xc8] sm:$0xff]  ;;  %v4684_v39 = vld [vmem:[%s4577_s29 + $0xd8] sm:$0xff]  ;;  %v4690_v41 = vld [vmem:[%s4577_s29 + $0xc0] sm:$0xff] }
  0x69   : > { %3810 = vmatpush1.bf16.msra.mxu0 %v3809_v20  ;;  %v4679_v37 = vld [vmem:[%s4577_s29 + $0xe8] sm:$0xff]  ;;  %v4687_v40 = vld [vmem:[%s4577_s29 + $0xf8] sm:$0xff]  ;;  %v4695_v43 = vld [vmem:[%s4577_s29 + $0xe0] sm:$0xff] }
  0x6a   : > { %3874 = vmatpush1.bf16.msra.mxu1 %v3873_v23  ;;  %3812 = vmatprep.subr.bf16.mxu0 %v3811_v26  ;;  %v3815_v38 = vpack.c.bf16 %v4679_v37, %v4676_v36  ;;  %v3879_v42 = vpack.c.bf16 %v4687_v40, %v4684_v39  ;;  %v3817_v44 = vpack.c.bf16 %v4695_v43, %v4690_v41  ;;  %v4700_v45 = vld [vmem:[%s4577_s29 + $0xd0] sm:$0xff]  ;;  %v4708_v48 = vld [vmem:[%s4577_s29 + $0x108] sm:$0xff]  ;;  %v4716_v51 = vld [vmem:[%s4577_s29 + $0x118] sm:$0xff] }
  0x6b   : > { %3876 = vmatprep.subr.bf16.mxu1 %v3875_v30  ;;  %v4703_v46 = vld [vmem:[%s4577_s29 + $0xf0] sm:$0xff]  ;;  %v4711_v49 = vld [vmem:[%s4577_s29 + $0x128] sm:$0xff]  ;;  %v4719_v52 = vld [vmem:[%s4577_s29 + $0x138] sm:$0xff] }
  0x6c   : > { %v3881_v47 = vpack.c.bf16 %v4703_v46, %v4700_v45  ;;  %v3819_v50 = vpack.c.bf16 %v4711_v49, %v4708_v48  ;;  %v4722_v53 = vld [vmem:[%s4577_s29 + $0x100] sm:$0xff]  ;;  %v3883_v54 = vpack.c.bf16 %v4719_v52, %v4716_v51  ;;  %v4732_v57 = vld [vmem:[%s4577_s29 + $0x110] sm:$0xff]  ;;  %v4740_v60 = vld [vmem:[%s4577_s29 + $0x148] sm:$0xff] }
  0x6d   : > { %3814 = vmatpush1.bf16.msra.mxu0 %v3813_v32  ;;  %v4727_v55 = vld [vmem:[%s4577_s29 + $0x120] sm:$0xff]  ;;  %v4735_v58 = vld [vmem:[%s4577_s29 + $0x130] sm:$0xff]  ;;  %v4743_v61 = vld [vmem:[%s4577_s29 + $0x168] sm:$0xff] }
  0x6e   : > { %3878 = vmatpush1.bf16.msra.mxu1 %v3877_v35  ;;  %3816 = vmatprep.subr.bf16.mxu0 %v3815_v38  ;;  %v3821_v56 = vpack.c.bf16 %v4727_v55, %v4722_v53  ;;  %v3885_v59 = vpack.c.bf16 %v4735_v58, %v4732_v57  ;;  %v3823_v62 = vpack.c.bf16 %v4743_v61, %v4740_v60  ;;  %v4748_v63 = vld [vmem:[%s4577_s29 + $0x158] sm:$0xff]  ;;  %v4754_v7 = vld [vmem:[%s4577_s29 + $0x140] sm:$0xff]  ;;  %v4764_v17 = vld [vmem:[%s4577_s29 + $0x150] sm:$0xff] }
  0x6f   : > { %3880 = vmatprep.subr.bf16.mxu1 %v3879_v42  ;;  %v4751_v3 = vld [vmem:[%s4577_s29 + $0x178] sm:$0xff]  ;;  %v4759_v12 = vld [vmem:[%s4577_s29 + $0x160] sm:$0xff]  ;;  %8492 = vst [vmem:[#allocation4_spill] sm:$0xff] %v4764_v17  ;;  %v4767_v20 = vld [vmem:[%s4577_s29 + $0x170] sm:$0xff] }
  0x70   : > { %v3887_v8 = vpack.c.bf16 %v4751_v3, %v4748_v63  ;;  %8491 = vst [vmem:[#allocation3_spill] sm:$0xff] %v4759_v12  ;;  %v3825_v16 = vpack.c.bf16 %v4759_v12, %v4754_v7  ;;  %8493 = vst [vmem:[#allocation5_spill] sm:$0xff] %v4767_v20  ;;  %v3889_v23 = vpack.c.bf16 %v4767_v20, %v4764_v17  ;;  %v4772_v26 = vld [vmem:[%s4577_s29 + $0x188] sm:$0xff]  ;;  %v4780_v35 = vld [vmem:[%s4577_s29 + $0x198] sm:$0xff] }
  0x71   : > { %3818 = vmatpush1.bf16.msra.mxu0 %v3817_v44  ;;  %8494 = vst [vmem:[#allocation6_spill] sm:$0xff] %v4772_v26  ;;  %v4775_v30 = vld [vmem:[%s4577_s29 + $0x1a8] sm:$0xff]  ;;  %8496 = vst [vmem:[#allocation8_spill] sm:$0xff] %v4780_v35  ;;  %v4783_v38 = vld [vmem:[%s4577_s29 + $0x1b8] sm:$0xff] }
  0x72   : > { %3882 = vmatpush1.bf16.msra.mxu1 %v3881_v47  ;;  %3820 = vmatprep.subr.bf16.mxu0 %v3819_v50  ;;  %8495 = vst [vmem:[#allocation7_spill] sm:$0xff] %v4775_v30  ;;  %v3827_v32 = vpack.c.bf16 %v4775_v30, %v4772_v26  ;;  %8497 = vst [vmem:[#allocation9_spill] sm:$0xff] %v4783_v38  ;;  %v4786_v42 = vld [vmem:[%s4577_s29 + $0x180] sm:$0xff]  ;;  %v3891_v44 = vpack.c.bf16 %v4783_v38, %v4780_v35  ;;  %v5029_v38 = vld [vmem:[%s4577_s29 + $0x350] sm:$0xff] }
  0x73   : > { %3884 = vmatprep.subr.bf16.mxu1 %v3883_v54  ;;  %8498 = vst [vmem:[#allocation10_spill] sm:$0xff] %v4786_v42  ;;  %v4791_v47 = vld [vmem:[%s4577_s29 + $0x1a0] sm:$0xff]  ;;  %v4796_v54 = vld [vmem:[%s4577_s29 + $0x190] sm:$0xff]  ;;  %8556 = vst [vmem:[#allocation68_spill] sm:$0xff] %v5029_v38 }
  0x74   : > { %8499 = vst [vmem:[#allocation11_spill] sm:$0xff] %v4791_v47  ;;  %v3829_v50 = vpack.c.bf16 %v4791_v47, %v4786_v42  ;;  %8500 = vst [vmem:[#allocation12_spill] sm:$0xff] %v4796_v54  ;;  %v4818_v47 = vld [vmem:[%s4577_s29 + $0x1c0] sm:$0xff]  ;;  %v4836_v42 = vld [vmem:[%s4577_s29 + $0x208] sm:$0xff] }
  0x75   : > { %3822 = vmatpush1.bf16.msra.mxu0 %v3821_v56  ;;  %v4799_v56 = vld [vmem:[%s4577_s29 + $0x1b0] sm:$0xff]  ;;  %8506 = vst [vmem:[#allocation18_spill] sm:$0xff] %v4818_v47  ;;  %8510 = vst [vmem:[#allocation22_spill] sm:$0xff] %v4836_v42  ;;  %v5040_v35 = vld [vmem:[%s4577_s29 + $0x388] sm:$0xff] }
  0x76   : > { %3886 = vmatpush1.bf16.msra.mxu1 %v3885_v59  ;;  %3824 = vmatprep.subr.bf16.mxu0 %v3823_v62  ;;  %8501 = vst [vmem:[#allocation13_spill] sm:$0xff] %v4799_v56  ;;  %v3893_v59 = vpack.c.bf16 %v4799_v56, %v4796_v54  ;;  %v4804_v62 = vld [vmem:[%s4577_s29 + $0x1c8] sm:$0xff]  ;;  %v4823_v56 = vld [vmem:[%s4577_s29 + $0x1e0] sm:$0xff]  ;;  %v4831_v54 = vld [vmem:[%s4577_s29 + $0x1f0] sm:$0xff] }
  0x77   : > { %3888 = vmatprep.subr.bf16.mxu1 %v3887_v8  ;;  %8502 = vst [vmem:[#allocation14_spill] sm:$0xff] %v4804_v62  ;;  %v4807_v8 = vld [vmem:[%s4577_s29 + $0x1e8] sm:$0xff]  ;;  %8507 = vst [vmem:[#allocation19_spill] sm:$0xff] %v4823_v56  ;;  %v574_v30 = vld [vmem:[%s8313_s1 + $0x10] sm:$0xff] }
  0x78   : > { %8503 = vst [vmem:[#allocation15_spill] sm:$0xff] %v4807_v8  ;;  %8509 = vst [vmem:[#allocation21_spill] sm:$0xff] %v4831_v54  ;;  %v578_v26 = vld [vmem:[%s8313_s1 + $0x30] sm:$0xff]  ;;  %v580_v12 = vld [vmem:[%s8313_s1 + $0x40] sm:$0xff] }
  0x79   : > { %3826 = vmatpush1.bf16.msra.mxu0 %v3825_v16  ;;  %v3831_v16 = vpack.c.bf16 %v4807_v8, %v4804_v62  ;;  %v3833_v8 = vpack.c.bf16 %v4823_v56, %v4818_v47  ;;  %v4828_v62 = vld [vmem:[%s4577_s29 + $0x1d0] sm:$0xff]  ;;  %v4847_v56 = vld [vmem:[%s4577_s29 + $0x238] sm:$0xff]  ;;  %v4850_v47 = vld [vmem:[%s4577_s29 + $0x200] sm:$0xff]  ;;  %8558 = vst [vmem:[#allocation70_spill] sm:$0xff] %v5040_v35 }
  0x7a   : > { %3890 = vmatpush1.bf16.msra.mxu1 %v3889_v23  ;;  %3828 = vmatprep.subr.bf16.mxu0 %v3827_v32  ;;  %v4812_v23 = vld [vmem:[%s4577_s29 + $0x1d8] sm:$0xff]  ;;  %8508 = vst [vmem:[#allocation20_spill] sm:$0xff] %v4828_v62  ;;  %8513 = vst [vmem:[#allocation25_spill] sm:$0xff] %v4847_v56 }
  0x7b   : > { %3892 = vmatprep.subr.bf16.mxu1 %v3891_v44  ;;  %8504 = vst [vmem:[#allocation16_spill] sm:$0xff] %v4812_v23  ;;  %v4815_v32 = vld [vmem:[%s4577_s29 + $0x1f8] sm:$0xff]  ;;  %8514 = vst [vmem:[#allocation26_spill] sm:$0xff] %v4850_v47 }
  0x7c   : > { %8505 = vst [vmem:[#allocation17_spill] sm:$0xff] %v4815_v32  ;;  %v3895_v44 = vpack.c.bf16 %v4815_v32, %v4812_v23  ;;  %v4839_v32 = vld [vmem:[%s4577_s29 + $0x228] sm:$0xff] }
  0x7d   : > { %3830 = vmatpush1.bf16.msra.mxu0 %v3829_v50  ;;  %v3897_v50 = vpack.c.bf16 %v4831_v54, %v4828_v62  ;;  %8511 = vst [vmem:[#allocation23_spill] sm:$0xff] %v4839_v32  ;;  %v4855_v54 = vld [vmem:[%s4577_s29 + $0x220] sm:$0xff]  ;;  %v4863_v62 = vld [vmem:[%s4577_s29 + $0x230] sm:$0xff]  ;;  %v4868_v23 = vld [vmem:[%s4577_s29 + $0x248] sm:$0xff] }
  0x7e   : > { %3894 = vmatpush1.bf16.msra.mxu1 %v3893_v59  ;;  %3832 = vmatprep.subr.bf16.mxu0 %v3831_v16  ;;  %v3835_v59 = vpack.c.bf16 %v4839_v32, %v4836_v42  ;;  %v4844_v16 = vld [vmem:[%s4577_s29 + $0x218] sm:$0xff]  ;;  %8515 = vst [vmem:[#allocation27_spill] sm:$0xff] %v4855_v54  ;;  %v3837_v32 = vpack.c.bf16 %v4855_v54, %v4850_v47  ;;  %v4860_v42 = vld [vmem:[%s4577_s29 + $0x210] sm:$0xff]  ;;  %8517 = vst [vmem:[#allocation29_spill] sm:$0xff] %v4863_v62 }
  0x7f   : > { %3896 = vmatprep.subr.bf16.mxu1 %v3895_v44  ;;  %8512 = vst [vmem:[#allocation24_spill] sm:$0xff] %v4844_v16  ;;  %v3899_v44 = vpack.c.bf16 %v4847_v56, %v4844_v16  ;;  %8516 = vst [vmem:[#allocation28_spill] sm:$0xff] %v4860_v42  ;;  %v4871_v56 = vld [vmem:[%s4577_s29 + $0x268] sm:$0xff]  ;;  %v4879_v54 = vld [vmem:[%s4577_s29 + $0x278] sm:$0xff] }
  0x80   : > { %8518 = vst [vmem:[#allocation30_spill] sm:$0xff] %v4868_v23  ;;  %8519 = vst [vmem:[#allocation31_spill] sm:$0xff] %v4871_v56  ;;  %v4882_v47 = vld [vmem:[%s4577_s29 + $0x240] sm:$0xff]  ;;  %v4900_v16 = vld [vmem:[%s4577_s29 + $0x288] sm:$0xff] }
  0x81   : > { %3834 = vmatpush1.bf16.msra.mxu0 %v3833_v8  ;;  %v3901_v8 = vpack.c.bf16 %v4863_v62, %v4860_v42  ;;  %8521 = vst [vmem:[#allocation33_spill] sm:$0xff] %v4879_v54  ;;  %8522 = vst [vmem:[#allocation34_spill] sm:$0xff] %v4882_v47  ;;  %v4887_v62 = vld [vmem:[%s4577_s29 + $0x260] sm:$0xff]  ;;  %v4895_v42 = vld [vmem:[%s4577_s29 + $0x270] sm:$0xff] }
  0x82   : > { %3898 = vmatpush1.bf16.msra.mxu1 %v3897_v50  ;;  %3836 = vmatprep.subr.bf16.mxu0 %v3835_v59  ;;  %v3839_v50 = vpack.c.bf16 %v4871_v56, %v4868_v23  ;;  %v4876_v59 = vld [vmem:[%s4577_s29 + $0x258] sm:$0xff]  ;;  %8523 = vst [vmem:[#allocation35_spill] sm:$0xff] %v4887_v62  ;;  %v3841_v56 = vpack.c.bf16 %v4887_v62, %v4882_v47  ;;  %v4892_v23 = vld [vmem:[%s4577_s29 + $0x250] sm:$0xff]  ;;  %8525 = vst [vmem:[#allocation37_spill] sm:$0xff] %v4895_v42 }
  0x83   : > { %3900 = vmatprep.subr.bf16.mxu1 %v3899_v44  ;;  %8520 = vst [vmem:[#allocation32_spill] sm:$0xff] %v4876_v59  ;;  %v3903_v44 = vpack.c.bf16 %v4879_v54, %v4876_v59  ;;  %8524 = vst [vmem:[#allocation36_spill] sm:$0xff] %v4892_v23  ;;  %v4903_v54 = vld [vmem:[%s4577_s29 + $0x2a8] sm:$0xff]  ;;  %v4911_v62 = vld [vmem:[%s4577_s29 + $0x2b8] sm:$0xff] }
  0x84   : > { %8526 = vst [vmem:[#allocation38_spill] sm:$0xff] %v4900_v16  ;;  %8527 = vst [vmem:[#allocation39_spill] sm:$0xff] %v4903_v54  ;;  %v4914_v47 = vld [vmem:[%s4577_s29 + $0x280] sm:$0xff]  ;;  %v4932_v59 = vld [vmem:[%s4577_s29 + $0x2c8] sm:$0xff] }
  0x85   : > { %3838 = vmatpush1.bf16.msra.mxu0 %v3837_v32  ;;  %v3905_v32 = vpack.c.bf16 %v4895_v42, %v4892_v23  ;;  %8529 = vst [vmem:[#allocation41_spill] sm:$0xff] %v4911_v62  ;;  %8530 = vst [vmem:[#allocation42_spill] sm:$0xff] %v4914_v47  ;;  %v4919_v42 = vld [vmem:[%s4577_s29 + $0x2a0] sm:$0xff]  ;;  %v4927_v23 = vld [vmem:[%s4577_s29 + $0x2b0] sm:$0xff] }
  0x86   : > { %3902 = vmatpush1.bf16.msra.mxu1 %v3901_v8  ;;  %3840 = vmatprep.subr.bf16.mxu0 %v3839_v50  ;;  %v3843_v8 = vpack.c.bf16 %v4903_v54, %v4900_v16  ;;  %v4908_v50 = vld [vmem:[%s4577_s29 + $0x298] sm:$0xff]  ;;  %8531 = vst [vmem:[#allocation43_spill] sm:$0xff] %v4919_v42  ;;  %v3845_v54 = vpack.c.bf16 %v4919_v42, %v4914_v47  ;;  %v4924_v16 = vld [vmem:[%s4577_s29 + $0x290] sm:$0xff]  ;;  %8533 = vst [vmem:[#allocation45_spill] sm:$0xff] %v4927_v23 }
  0x87   : > { %3904 = vmatprep.subr.bf16.mxu1 %v3903_v44  ;;  %8528 = vst [vmem:[#allocation40_spill] sm:$0xff] %v4908_v50  ;;  %v3907_v44 = vpack.c.bf16 %v4911_v62, %v4908_v50  ;;  %8532 = vst [vmem:[#allocation44_spill] sm:$0xff] %v4924_v16  ;;  %v4935_v62 = vld [vmem:[%s4577_s29 + $0x2e8] sm:$0xff]  ;;  %v4943_v42 = vld [vmem:[%s4577_s29 + $0x2f8] sm:$0xff] }
  0x88   : > { %8534 = vst [vmem:[#allocation46_spill] sm:$0xff] %v4932_v59  ;;  %8535 = vst [vmem:[#allocation47_spill] sm:$0xff] %v4935_v62  ;;  %v4946_v47 = vld [vmem:[%s4577_s29 + $0x2c0] sm:$0xff]  ;;  %v4964_v50 = vld [vmem:[%s4577_s29 + $0x308] sm:$0xff] }
  0x89   : > { %3842 = vmatpush1.bf16.msra.mxu0 %v3841_v56  ;;  %v3909_v56 = vpack.c.bf16 %v4927_v23, %v4924_v16  ;;  %8537 = vst [vmem:[#allocation49_spill] sm:$0xff] %v4943_v42  ;;  %8538 = vst [vmem:[#allocation50_spill] sm:$0xff] %v4946_v47  ;;  %v4951_v23 = vld [vmem:[%s4577_s29 + $0x2e0] sm:$0xff]  ;;  %v4959_v16 = vld [vmem:[%s4577_s29 + $0x2f0] sm:$0xff] }
  0x8a   : > { %3906 = vmatpush1.bf16.msra.mxu1 %v3905_v32  ;;  %3844 = vmatprep.subr.bf16.mxu0 %v3843_v8  ;;  %v3847_v32 = vpack.c.bf16 %v4935_v62, %v4932_v59  ;;  %v4940_v8 = vld [vmem:[%s4577_s29 + $0x2d8] sm:$0xff]  ;;  %8539 = vst [vmem:[#allocation51_spill] sm:$0xff] %v4951_v23  ;;  %v3849_v62 = vpack.c.bf16 %v4951_v23, %v4946_v47  ;;  %v4956_v59 = vld [vmem:[%s4577_s29 + $0x2d0] sm:$0xff]  ;;  %8541 = vst [vmem:[#allocation53_spill] sm:$0xff] %v4959_v16 }
  0x8b   : > { %3908 = vmatprep.subr.bf16.mxu1 %v3907_v44  ;;  %8536 = vst [vmem:[#allocation48_spill] sm:$0xff] %v4940_v8  ;;  %v3911_v44 = vpack.c.bf16 %v4943_v42, %v4940_v8  ;;  %8540 = vst [vmem:[#allocation52_spill] sm:$0xff] %v4956_v59  ;;  %v4967_v42 = vld [vmem:[%s4577_s29 + $0x328] sm:$0xff]  ;;  %v4975_v23 = vld [vmem:[%s4577_s29 + $0x338] sm:$0xff] }
  0x8c   : > { %8542 = vst [vmem:[#allocation54_spill] sm:$0xff] %v4964_v50  ;;  %8543 = vst [vmem:[#allocation55_spill] sm:$0xff] %v4967_v42  ;;  %v4978_v47 = vld [vmem:[%s4577_s29 + $0x300] sm:$0xff] }
  0x8d   : > { %3846 = vmatpush1.bf16.msra.mxu0 %v3845_v54  ;;  %v3913_v54 = vpack.c.bf16 %v4959_v16, %v4956_v59  ;;  %8545 = vst [vmem:[#allocation57_spill] sm:$0xff] %v4975_v23  ;;  %8546 = vst [vmem:[#allocation58_spill] sm:$0xff] %v4978_v47  ;;  %v4983_v16 = vld [vmem:[%s4577_s29 + $0x320] sm:$0xff]  ;;  %v4991_v59 = vld [vmem:[%s4577_s29 + $0x330] sm:$0xff] }
  0x8e   : > { %3910 = vmatpush1.bf16.msra.mxu1 %v3909_v56  ;;  %3848 = vmatprep.subr.bf16.mxu0 %v3847_v32  ;;  %v3851_v56 = vpack.c.bf16 %v4967_v42, %v4964_v50  ;;  %v4972_v32 = vld [vmem:[%s4577_s29 + $0x318] sm:$0xff]  ;;  %8547 = vst [vmem:[#allocation59_spill] sm:$0xff] %v4983_v16  ;;  %v3853_v42 = vpack.c.bf16 %v4983_v16, %v4978_v47  ;;  %v4988_v50 = vld [vmem:[%s4577_s29 + $0x310] sm:$0xff]  ;;  %8549 = vst [vmem:[#allocation61_spill] sm:$0xff] %v4991_v59 }
  0x8f   : > { %3912 = vmatprep.subr.bf16.mxu1 %v3911_v44  ;;  %8544 = vst [vmem:[#allocation56_spill] sm:$0xff] %v4972_v32  ;;  %v3915_v44 = vpack.c.bf16 %v4975_v23, %v4972_v32  ;;  %8548 = vst [vmem:[#allocation60_spill] sm:$0xff] %v4988_v50  ;;  %v3917_v8 = vpack.c.bf16 %v4991_v59, %v4988_v50  ;;  %v4999_v23 = vld [vmem:[%s4577_s29 + $0x368] sm:$0xff]  ;;  %v5007_v16 = vld [vmem:[%s4577_s29 + $0x378] sm:$0xff] }
  0x90   : > { %8551 = vst [vmem:[#allocation63_spill] sm:$0xff] %v4999_v23  ;;  %8553 = vst [vmem:[#allocation65_spill] sm:$0xff] %v5007_v16  ;;  %v5010_v47 = vld [vmem:[%s4577_s29 + $0x340] sm:$0xff]  ;;  %v577_v59 = vld [vmem:[%s8313_s1 + $0x28] sm:$0xff] }
  0x91   : > { %3850 = vmatpush1.bf16.msra.mxu0 %v3849_v62  ;;  %v4996_v62 = vld [vmem:[%s4577_s29 + $0x348] sm:$0xff]  ;;  %8554 = vst [vmem:[#allocation66_spill] sm:$0xff] %v5010_v47  ;;  %v575_v50 = vld [vmem:[%s8313_s1 + $0x18] sm:$0xff]  ;;  %v1283_v17 = vmul.f32 %v577_v59, %v4583_v1  ;;  %v584_v1 = vld [vmem:[%s8313_s1 + $0x60] sm:$0xff] }
  0x92   : > { %3914 = vmatpush1.bf16.msra.mxu1 %v3913_v54  ;;  %3852 = vmatprep.subr.bf16.mxu0 %v3851_v56  ;;  %8550 = vst [vmem:[#allocation62_spill] sm:$0xff] %v4996_v62  ;;  %v3855_v54 = vpack.c.bf16 %v4999_v23, %v4996_v62  ;;  %v5004_v56 = vld [vmem:[%s4577_s29 + $0x358] sm:$0xff]  ;;  %v5021_v62 = vld [vmem:[%s4577_s29 + $0x360] sm:$0xff]  ;;  %v5094_v59 = vld [vmem:[%s4577_s29 + $0x3c8] sm:$0xff] }
  0x93   : > { %3916 = vmatprep.subr.bf16.mxu1 %v3915_v44  ;;  %8552 = vst [vmem:[#allocation64_spill] sm:$0xff] %v5004_v56  ;;  %v573_v44 = vld [vmem:[%s8313_s1 + $0x8] sm:$0xff]  ;;  %v3919_v23 = vpack.c.bf16 %v5007_v16, %v5004_v56  ;;  %8555 = vst [vmem:[#allocation67_spill] sm:$0xff] %v5021_v62  ;;  %v3857_v32 = vpack.c.bf16 %v5021_v62, %v5010_v47  ;;  %v579_v16 = vld [vmem:[%s8313_s1 + $0x38] sm:$0xff] }
  0x94   : > { %v576_v62 = vld [vmem:[%s8313_s1 + $0x20] sm:$0xff]  ;;  %v1279_v20 = vmul.f32 %v573_v44, %v4580_v0  ;;  %v1281_v0 = vmul.f32 %v575_v50, %v4586_v2  ;;  %v1285_v44 = vmul.f32 %v579_v16, %v4591_v4  ;;  %8566 = vst [vmem:[#allocation78_spill] sm:$0xff] %v5094_v59  ;;  %v5102_v2 = vld [vmem:[%s4577_s29 + $0x3d8] sm:$0xff] }
  0x95   : > { %3854 = vmatpush1.bf16.msra.mxu0 %v3853_v42  ;;  %v5032_v42 = vld [vmem:[%s4577_s29 + $0x370] sm:$0xff]  ;;  %v5105_v4 = vld [vmem:[%s4577_s29 + $0x3f8] sm:$0xff]  ;;  %v5108_v16 = vld [vmem:[%s4577_s29 + $0x3c0] sm:$0xff] }
  0x96   : > { %3918 = vmatpush1.bf16.msra.mxu1 %v3917_v8  ;;  %3856 = vmatprep.subr.bf16.mxu0 %v3855_v54  ;;  %8557 = vst [vmem:[#allocation69_spill] sm:$0xff] %v5032_v42  ;;  %v3921_v56 = vpack.c.bf16 %v5032_v42, %v5029_v38  ;;  %v5043_v8 = vld [vmem:[%s4577_s29 + $0x3a8] sm:$0xff]  ;;  %v572_v54 = vld [vmem:[%s8313_s1] sm:$0xff]  ;;  %v5057_v42 = vld [vmem:[%s4577_s29 + $0x3b8] sm:$0xff] }
  0x97   : > { %3920 = vmatprep.subr.bf16.mxu1 %v3919_v23  ;;  %8559 = vst [vmem:[#allocation71_spill] sm:$0xff] %v5043_v8  ;;  %v3859_v47 = vpack.c.bf16 %v5043_v8, %v5040_v35  ;;  %v5054_v23 = vld [vmem:[%s4577_s29 + $0x398] sm:$0xff]  ;;  %8561 = vst [vmem:[#allocation73_spill] sm:$0xff] %v5057_v42  ;;  %v5060_v38 = vld [vmem:[%s4577_s29 + $0x380] sm:$0xff]  ;;  %v1278_v50 = vmul.f32 %v572_v54, %v4594_v5  ;;  %v1284_v5 = vmul.f32 %v578_v26, %v4607_v10 }
  0x98   : > { %8560 = vst [vmem:[#allocation72_spill] sm:$0xff] %v5054_v23  ;;  %8562 = vst [vmem:[#allocation74_spill] sm:$0xff] %v5060_v38  ;;  %v3923_v8 = vpack.c.bf16 %v5057_v42, %v5054_v23  ;;  %v5071_v35 = vld [vmem:[%s4577_s29 + $0x3a0] sm:$0xff]  ;;  %v5081_v42 = vld [vmem:[%s4577_s29 + $0x390] sm:$0xff]  ;;  %v5136_v54 = vmul.f32 %v580_v12, %v4628_v18  ;;  %v3995_v26 = vpack.c.bf16 %v1285_v44, %v1281_v0 }
  0x99   : > { %3858 = vmatpush1.bf16.msra.mxu0 %v3857_v32  ;;  %8563 = vst [vmem:[#allocation75_spill] sm:$0xff] %v5071_v35  ;;  %v3861_v32 = vpack.c.bf16 %v5071_v35, %v5060_v38  ;;  %8564 = vst [vmem:[#allocation76_spill] sm:$0xff] %v5081_v42  ;;  %v5084_v23 = vld [vmem:[%s4577_s29 + $0x3b0] sm:$0xff]  ;;  %v5124_v38 = vld [vmem:[%s4577_s29 + $0x3e0] sm:$0xff] }
  0x9a   : > { %3922 = vmatpush1.bf16.msra.mxu1 %v3921_v56  ;;  %3860 = vmatprep.subr.bf16.mxu0 %v3859_v47  ;;  %8565 = vst [vmem:[#allocation77_spill] sm:$0xff] %v5084_v23  ;;  %v3925_v47 = vpack.c.bf16 %v5084_v23, %v5081_v42  ;;  %v5097_v56 = vld [vmem:[%s4577_s29 + $0x3e8] sm:$0xff]  ;;  %v5113_v23 = vmul.f32 %v574_v30, %v4604_v9  ;;  %v582_v42 = vld [vmem:[%s8313_s1 + $0x50] sm:$0xff]  ;;  %v588_v18 = vld [vmem:[%s8313_s1 + $0x80] sm:$0xff] }
  0x9b   : > { %3924 = vmatprep.subr.bf16.mxu1 %v3923_v8  ;;  %8567 = vst [vmem:[#allocation79_spill] sm:$0xff] %v5097_v56  ;;  %v3863_v35 = vpack.c.bf16 %v5097_v56, %v5094_v59  ;;  %v1282_v8 = vmul.f32 %v576_v62, %v4597_v6  ;;  %v586_v56 = vld [vmem:[%s8313_s1 + $0x70] sm:$0xff]  ;;  %v3927_v59 = vpack.c.bf16 %v5105_v4, %v5102_v2  ;;  %v701_v10 = vld [vmem:[%s8314_s2 + $0x8] sm:$0xff]  ;;  %v592_v12 = vld [vmem:[%s8313_s1 + $0xa0] sm:$0xff] }
  0x9c   : > { %v3865_v6 = vpack.c.bf16 %v5124_v38, %v5108_v16  ;;  %v5130_v9 = vld [vmem:[%s4577_s29 + $0x3d0] sm:$0xff]  ;;  %v3931_v62 = vpack.c.bf16 %v1283_v17, %v1279_v20  ;;  %v5150_v17 = vmul.f32 %v586_v56, %v4639_v22  ;;  %828 = vmatprep.mubr.f32.mxu0 %v701_v10  ;;  %1085 = vmatprep.mubr.f32.mxu1 %v701_v10  ;;  %v581_v22 = vld [vmem:[%s8313_s1 + $0x48] sm:$0xff]  ;;  %v587_v56 = vld [vmem:[%s8313_s1 + $0x78] sm:$0xff] }
  0x9d   : > { %3862 = vmatpush1.bf16.msra.mxu0 %v3861_v32  ;;  %v5133_v30 = vld [vmem:[%s4577_s29 + $0x3f0] sm:$0xff]  ;;  %v3997_v0 = vpack.c.bf16 %v1284_v5, %v5113_v23  ;;  %v1287_v44 = vmul.f32 %v581_v22, %v4610_v11  ;;  %v1293_v5 = vmul.f32 %v587_v56, %v4621_v15  ;;  %v589_v15 = vld [vmem:[%s8313_s1 + $0x88] sm:$0xff]  ;;  %v591_v10 = vld [vmem:[%s8313_s1 + $0x98] sm:$0xff] }
  0x9e   : > { %3926 = vmatpush1.bf16.msra.mxu1 %v3925_v47  ;;  %3864 = vmatprep.subr.bf16.mxu0 %v3863_v35  ;;  %v3929_v32 = vpack.c.bf16 %v5133_v30, %v5130_v9  ;;  %v5144_v35 = vmul.f32 %v584_v1, %v4631_v19  ;;  %v5147_v47 = vmul.f32 %v582_v42, %v4636_v21  ;;  %v590_v20 = vld [vmem:[%s8313_s1 + $0x90] sm:$0xff]  ;;  %v700_v21 = vld [vmem:[%s8314_s2] sm:$0xff]  ;;  %v585_v42 = vld [vmem:[%s8313_s1 + $0x68] sm:$0xff] }
  0x9f   : > { %3928 = vmatprep.subr.bf16.mxu1 %v3927_v59  ;;  %v3933_v19 = vpack.c.bf16 %v1282_v8, %v1278_v50  ;;  %v1291_v1 = vmul.f32 %v585_v42, %v4615_v13  ;;  %v583_v59 = vld [vmem:[%s8313_s1 + $0x58] sm:$0xff]  ;;  %v5180_v50 = vmul.f32 %v588_v18, %v4658_v29  ;;  %v5183_v8 = vmul.f32 %v592_v12, %v4663_v31  ;;  %v594_v11 = vld [vmem:[%s8313_s1 + $0xb0] sm:$0xff]  ;;  %v596_v29 = vld [vmem:[%s8313_s1 + $0xc0] sm:$0xff] }
  0xa0   : > { %v703_v13 = vld [vmem:[%s8314_s2 + $0x18] sm:$0xff]  ;;  %v1289_v23 = vmul.f32 %v583_v59, %v4618_v14  ;;  %v600_v31 = vld [vmem:[%s8313_s1 + $0xe0] sm:$0xff]  ;;  %v4001_v14 = vpack.c.bf16 %v5150_v17, %v5147_v47  ;;  %v1295_v47 = vmul.f32 %v589_v15, %v4644_v24  ;;  %v5227_v12 = vmul.f32 %v594_v11, %v4671_v34  ;;  %v601_v42 = vld [vmem:[%s8313_s1 + $0xe8] sm:$0xff] }
  0xa1   : > { %3866 = vmatpush1.bf16.msra.mxu0 %v3865_v6  ;;  %v5194_v6 = vmul.f32 %v590_v20, %v4668_v33  ;;  %v593_v33 = vld [vmem:[%s8313_s1 + $0xa8] sm:$0xff]  ;;  %v595_v18 = vld [vmem:[%s8313_s1 + $0xb8] sm:$0xff]  ;;  %v602_v20 = vld [vmem:[%s8313_s1 + $0xf0] sm:$0xff]  ;;  %v1297_v24 = vmul.f32 %v591_v10, %v4652_v27  ;;  %v3941_v22 = vpack.c.bf16 %v5183_v8, %v5180_v50  ;;  %v5261_v50 = vmul.f32 %v596_v29, %v4690_v41 }
  0xa2   : > { %3930 = vmatpush1.bf16.msra.mxu1 %v3929_v32  ;;  %3932 = vmatprep.subr.bf16.mxu0 %v3931_v62  ;;  %v3935_v62 = vpack.c.bf16 %v1291_v1, %v1287_v44  ;;  %v3937_v32 = vpack.c.bf16 %v5144_v35, %v5136_v54  ;;  %v702_v54 = vld [vmem:[%s8314_s2 + $0x10] sm:$0xff]  ;;  %v3999_v35 = vpack.c.bf16 %v1293_v5, %v1289_v23  ;;  %v599_v27 = vld [vmem:[%s8313_s1 + $0xd8] sm:$0xff]  ;;  %v604_v44 = vld [vmem:[%s8313_s1 + $0x100] sm:$0xff] }
  0xa3   : > { %3996 = vmatprep.subr.bf16.mxu1 %v3995_v26  ;;  %v598_v26 = vld [vmem:[%s8313_s1 + $0xd0] sm:$0xff]  ;;  %v1299_v17 = vmul.f32 %v593_v33, %v4647_v25  ;;  %v1301_v25 = vmul.f32 %v595_v18, %v4655_v28  ;;  %v603_v28 = vld [vmem:[%s8313_s1 + $0xf8] sm:$0xff]  ;;  %v608_v1 = vld [vmem:[%s8313_s1 + $0x120] sm:$0xff]  ;;  %v1305_v56 = vmul.f32 %v599_v27, %v4684_v39  ;;  %v5264_v8 = vmul.f32 %v600_v31, %v4695_v43 }
  0xa4   : > { %829 = vmatmul.mubr.f32.vlgmr.msra.gmra.mrb[0].mxu0 %v700_v21  ;;  %v5269_v11 = vld [vmem:[%s8314_s2 + $0x20] sm:$0xff]  ;;  %v609_v39 = vld [vmem:[%s8313_s1 + $0x128] sm:$0xff]  ;;  %v5279_v41 = vmul.f32 %v598_v26, %v4700_v45  ;;  %v5282_v43 = vmul.f32 %v602_v20, %v4703_v46  ;;  %v4005_v23 = vpack.c.bf16 %v5227_v12, %v5194_v6  ;;  %v607_v5 = vld [vmem:[%s8313_s1 + $0x118] sm:$0xff] }
  0xa5   : > { %1086 = vmatmul.mubr.f32.vlgmr.msra.gmra.mrb[0].mxu1 %v700_v21  ;;  %3934 = vmatpush1.bf16.msra.mxu0 %v3933_v19  ;;  %v705_v19 = vld [vmem:[%s8314_s2 + $0x28] sm:$0xff]  ;;  %v3939_v34 = vpack.c.bf16 %v1299_v17, %v1295_v47  ;;  %v4003_v59 = vpack.c.bf16 %v1301_v25, %v1297_v24  ;;  %v611_v45 = vld [vmem:[%s8313_s1 + $0x138] sm:$0xff]  ;;  %v606_v46 = vld [vmem:[%s8313_s1 + $0x110] sm:$0xff]  ;;  %v1313_v15 = vmul.f32 %v607_v5, %v4716_v51 }
  0xa6   : > { %3998 = vmatpush1.bf16.msra.mxu1 %v3997_v0  ;;  %834 = vmatprep.mubr.f32.mxu0 %v703_v13  ;;  %v597_v21 = vld [vmem:[%s8313_s1 + $0xc8] sm:$0xff]  ;;  %v610_v29 = vld [vmem:[%s8313_s1 + $0x130] sm:$0xff]  ;;  %v1317_v33 = vmul.f32 %v611_v45, %v4719_v52  ;;  %v3945_v52 = vpack.c.bf16 %v5264_v8, %v5261_v50  ;;  %v5336_v26 = vmul.f32 %v606_v46, %v4732_v57  ;;  %v616_v47 = vld [vmem:[%s8313_s1 + $0x160] sm:$0xff] }
  0xa7   : > { %1091 = vmatprep.mubr.f32.mxu1 %v703_v13  ;;  %3936 = vmatprep.subr.bf16.mxu0 %v3935_v62  ;;  %v1303_v0 = vmul.f32 %v597_v21, %v4676_v36  ;;  %v1307_v36 = vmul.f32 %v601_v42, %v4679_v37  ;;  %v1309_v13 = vmul.f32 %v603_v28, %v4687_v40  ;;  %v605_v37 = vld [vmem:[%s8313_s1 + $0x108] sm:$0xff]  ;;  %v5287_v40 = vld [vmem:[%s8314_s2 + $0x38] sm:$0xff]  ;;  %v5325_v51 = vld [vmem:[%s8314_s2 + $0x30] sm:$0xff] }
  0xa8   : > { %835 = vmatmul.mubr.f32.gmra.mrb[2].mxu0 %v702_v54  ;;  %4000 = vmatprep.subr.bf16.mxu1 %v3999_v35  ;;  %v1311_v6 = vmul.f32 %v605_v37, %v4708_v48  ;;  %v1315_v62 = vmul.f32 %v609_v39, %v4711_v49  ;;  %v613_v10 = vld [vmem:[%s8313_s1 + $0x148] sm:$0xff]  ;;  %v5315_v48 = vmul.f32 %v604_v44, %v4722_v53  ;;  %v615_v53 = vld [vmem:[%s8313_s1 + $0x158] sm:$0xff]  ;;  %v612_v35 = vld [vmem:[%s8313_s1 + $0x140] sm:$0xff] }
  0xa9   : > { %1092 = vmatmul.mubr.f32.gmra.mrb[2].mxu1 %v702_v54  ;;  %840 = vmatprep.mubr.f32.mxu0 %v705_v19  ;;  %v3943_v31 = vpack.c.bf16 %v1307_v36, %v1303_v0  ;;  %v5318_v49 = vmul.f32 %v608_v1, %v4727_v55  ;;  %v619_v55 = vld [vmem:[%s8313_s1 + $0x178] sm:$0xff]  ;;  %v5339_v54 = vmul.f32 %v610_v29, %v4735_v58  ;;  %v5351_v17 = vld [vmem:[%s8314_s2 + $0x48] sm:$0xff]  ;;  %v614_v58 = vld [vmem:[%s8313_s1 + $0x150] sm:$0xff] }
  0xaa   : > { %1097 = vmatprep.mubr.f32.mxu1 %v705_v19  ;;  %3938 = vmatpush1.bf16.msra.mxu0 %v3937_v32  ;;  %v4007_v32 = vpack.c.bf16 %v1309_v13, %v1305_v56  ;;  %v4009_v57 = vpack.c.bf16 %v5282_v43, %v5279_v41  ;;  %v618_v18 = vld [vmem:[%s8313_s1 + $0x170] sm:$0xff]  ;;  %v3947_v12 = vpack.c.bf16 %v1315_v62, %v1311_v6  ;;  %v627_v0 = vld [vmem:[%s8313_s1 + $0x1b8] sm:$0xff]  ;;  %v8569_v27 = vld [vmem:[#allocation4_spill] sm:$0xff] }
  0xab   : > { %4002 = vmatpush1.bf16.msra.mxu1 %v4001_v14  ;;  %3940 = vmatprep.subr.bf16.mxu0 %v3939_v34  ;;  %v617_v14 = vld [vmem:[%s8313_s1 + $0x168] sm:$0xff]  ;;  %v1319_v20 = vmul.f32 %v613_v10, %v4740_v60  ;;  %v4011_v24 = vpack.c.bf16 %v1317_v33, %v1313_v15  ;;  %v1321_v25 = vmul.f32 %v615_v53, %v4748_v63  ;;  %v5383_v63 = vld [vmem:[%s8314_s2 + $0x40] sm:$0xff]  ;;  %v8570_v44 = vld [vmem:[#allocation5_spill] sm:$0xff] }
  0xac   : > { %841 = vmatmul.mubr.f32.gmra.mrb[4].mxu0 %v5269_v11  ;;  %4004 = vmatprep.subr.bf16.mxu1 %v4003_v59  ;;  %v1323_v19 = vmul.f32 %v617_v14, %v4743_v61  ;;  %v1325_v21 = vmul.f32 %v619_v55, %v4751_v3  ;;  %v621_v34 = vld [vmem:[%s8313_s1 + $0x188] sm:$0xff]  ;;  %v5373_v60 = vmul.f32 %v612_v35, %v4754_v7  ;;  %v8568_v61 = vld [vmem:[#allocation3_spill] sm:$0xff]  ;;  %v623_v7 = vld [vmem:[%s8313_s1 + $0x198] sm:$0xff] }
  0xad   : > { %1098 = vmatmul.mubr.f32.gmra.mrb[4].mxu1 %v5269_v11  ;;  %846 = vmatprep.mubr.f32.mxu0 %v5287_v40  ;;  %v5376_v42 = vmul.f32 %v616_v47, %v8568_v61  ;;  %v3949_v3 = vpack.c.bf16 %v5318_v49, %v5315_v48  ;;  %v5394_v28 = vmul.f32 %v614_v58, %v8569_v27  ;;  %v620_v59 = vld [vmem:[%s8313_s1 + $0x180] sm:$0xff]  ;;  %v5409_v56 = vld [vmem:[%s8314_s2 + $0x58] sm:$0xff]  ;;  %v622_v8 = vld [vmem:[%s8313_s1 + $0x190] sm:$0xff] }
  0xae   : > { %1103 = vmatprep.mubr.f32.mxu1 %v5287_v40  ;;  %3942 = vmatpush1.bf16.msra.mxu0 %v3941_v22  ;;  %v625_v22 = vld [vmem:[%s8313_s1 + $0x1a8] sm:$0xff]  ;;  %v5397_v1 = vmul.f32 %v618_v18, %v8570_v44  ;;  %v624_v36 = vld [vmem:[%s8313_s1 + $0x1a0] sm:$0xff]  ;;  %v4013_v50 = vpack.c.bf16 %v5339_v54, %v5336_v26  ;;  %v626_v13 = vld [vmem:[%s8313_s1 + $0x1b0] sm:$0xff]  ;;  %v3951_v37 = vpack.c.bf16 %v1323_v19, %v1319_v20 }
  0xaf   : > { %4006 = vmatpush1.bf16.msra.mxu1 %v4005_v23  ;;  %3944 = vmatprep.subr.bf16.mxu0 %v3943_v31  ;;  %v8571_v39 = vld [vmem:[#allocation6_spill] sm:$0xff]  ;;  %v8572_v43 = vld [vmem:[#allocation7_spill] sm:$0xff]  ;;  %v4015_v5 = vpack.c.bf16 %v1325_v21, %v1321_v25  ;;  %v8573_v45 = vld [vmem:[#allocation8_spill] sm:$0xff]  ;;  %v3953_v48 = vpack.c.bf16 %v5376_v42, %v5373_v60 }
  0xb0   : > { %847 = vmatmul.mubr.f32.gmra.mrb[6].mxu0 %v5325_v51  ;;  %4008 = vmatprep.subr.bf16.mxu1 %v4007_v32  ;;  %v1327_v41 = vmul.f32 %v621_v34, %v8571_v39  ;;  %v1331_v23 = vmul.f32 %v625_v22, %v8572_v43  ;;  %v1329_v46 = vmul.f32 %v623_v7, %v8573_v45  ;;  %v8574_v29 = vld [vmem:[#allocation9_spill] sm:$0xff]  ;;  %v629_v6 = vld [vmem:[%s8313_s1 + $0x1c8] sm:$0xff]  ;;  %v8575_v32 = vld [vmem:[#allocation10_spill] sm:$0xff] }
  0xb1   : > { %1104 = vmatmul.mubr.f32.gmra.mrb[6].mxu1 %v5325_v51  ;;  %852 = vmatprep.mubr.f32.mxu0 %v5351_v17  ;;  %v1333_v31 = vmul.f32 %v627_v0, %v8574_v29  ;;  %v633_v62 = vld [vmem:[%s8313_s1 + $0x1e8] sm:$0xff]  ;;  %v5431_v15 = vmul.f32 %v620_v59, %v8575_v32  ;;  %v8576_v33 = vld [vmem:[#allocation11_spill] sm:$0xff]  ;;  %v5441_v14 = vld [vmem:[%s8314_s2 + $0x50] sm:$0xff]  ;;  %v4017_v58 = vpack.c.bf16 %v5397_v1, %v5394_v28 }
  0xb2   : > { %1109 = vmatprep.mubr.f32.mxu1 %v5351_v17  ;;  %3946 = vmatpush1.bf16.msra.mxu0 %v3945_v52  ;;  %v5434_v10 = vmul.f32 %v624_v36, %v8576_v33  ;;  %v631_v49 = vld [vmem:[%s8313_s1 + $0x1d8] sm:$0xff]  ;;  %v8577_v53 = vld [vmem:[#allocation12_spill] sm:$0xff]  ;;  %v8578_v26 = vld [vmem:[#allocation13_spill] sm:$0xff]  ;;  %v3955_v20 = vpack.c.bf16 %v1331_v23, %v1327_v41 }
  0xb3   : > { %4010 = vmatpush1.bf16.msra.mxu1 %v4009_v57  ;;  %3948 = vmatprep.subr.bf16.mxu0 %v3947_v12  ;;  %v635_v52 = vld [vmem:[%s8313_s1 + $0x1f8] sm:$0xff]  ;;  %v5452_v55 = vmul.f32 %v622_v8, %v8577_v53  ;;  %v5455_v54 = vmul.f32 %v626_v13, %v8578_v26  ;;  %v628_v35 = vld [vmem:[%s8313_s1 + $0x1c0] sm:$0xff]  ;;  %v5467_v57 = vld [vmem:[%s8314_s2 + $0x68] sm:$0xff]  ;;  %v4019_v34 = vpack.c.bf16 %v1333_v31, %v1329_v46 }
  0xb4   : > { %853 = vmatmul.mubr.f32.gmra.mrb[8].mxu0 %v5383_v63  ;;  %4012 = vmatprep.subr.bf16.mxu1 %v4011_v24  ;;  %v632_v47 = vld [vmem:[%s8313_s1 + $0x1e0] sm:$0xff]  ;;  %v630_v18 = vld [vmem:[%s8313_s1 + $0x1d0] sm:$0xff]  ;;  %v8579_v19 = vld [vmem:[#allocation14_spill] sm:$0xff]  ;;  %v3957_v59 = vpack.c.bf16 %v5434_v10, %v5431_v15 }
  0xb5   : > { %1110 = vmatmul.mubr.f32.gmra.mrb[8].mxu1 %v5383_v63  ;;  %858 = vmatprep.mubr.f32.mxu0 %v5409_v56  ;;  %v634_v12 = vld [vmem:[%s8313_s1 + $0x1f0] sm:$0xff]  ;;  %v1335_v24 = vmul.f32 %v629_v6, %v8579_v19  ;;  %v8580_v25 = vld [vmem:[#allocation15_spill] sm:$0xff]  ;;  %v8581_v22 = vld [vmem:[#allocation16_spill] sm:$0xff] }
  0xb6   : > { %1115 = vmatprep.mubr.f32.mxu1 %v5409_v56  ;;  %3950 = vmatpush1.bf16.msra.mxu0 %v3949_v3  ;;  %v1339_v21 = vmul.f32 %v633_v62, %v8580_v25  ;;  %v1337_v60 = vmul.f32 %v631_v49, %v8581_v22  ;;  %v8582_v61 = vld [vmem:[#allocation17_spill] sm:$0xff]  ;;  %v637_v3 = vld [vmem:[%s8313_s1 + $0x208] sm:$0xff]  ;;  %v8583_v0 = vld [vmem:[#allocation18_spill] sm:$0xff] }
  0xb7   : > { %4014 = vmatpush1.bf16.msra.mxu1 %v4013_v50  ;;  %3952 = vmatprep.subr.bf16.mxu0 %v3951_v37  ;;  %v1341_v42 = vmul.f32 %v635_v52, %v8582_v61  ;;  %v641_v7 = vld [vmem:[%s8313_s1 + $0x228] sm:$0xff]  ;;  %v5489_v27 = vmul.f32 %v628_v35, %v8583_v0  ;;  %v8584_v28 = vld [vmem:[#allocation19_spill] sm:$0xff]  ;;  %v639_v36 = vld [vmem:[%s8313_s1 + $0x218] sm:$0xff] }
  0xb8   : > { %859 = vmatmul.mubr.f32.gmra.mrb[10].mxu0 %v5441_v14  ;;  %4016 = vmatprep.subr.bf16.mxu1 %v4015_v5  ;;  %v5492_v44 = vmul.f32 %v632_v47, %v8584_v28  ;;  %v5499_v1 = vld [vmem:[%s8314_s2 + $0x60] sm:$0xff]  ;;  %v643_v50 = vld [vmem:[%s8313_s1 + $0x238] sm:$0xff]  ;;  %v8585_v8 = vld [vmem:[#allocation20_spill] sm:$0xff]  ;;  %v4021_v5 = vpack.c.bf16 %v5455_v54, %v5452_v55  ;;  %v3959_v29 = vpack.c.bf16 %v1339_v21, %v1335_v24 }
  0xb9   : > { %1116 = vmatmul.mubr.f32.gmra.mrb[10].mxu1 %v5441_v14  ;;  %864 = vmatprep.mubr.f32.mxu0 %v5467_v57  ;;  %v5510_v13 = vmul.f32 %v630_v18, %v8585_v8  ;;  %v8586_v37 = vld [vmem:[#allocation21_spill] sm:$0xff]  ;;  %v636_v41 = vld [vmem:[%s8313_s1 + $0x200] sm:$0xff]  ;;  %v5525_v23 = vld [vmem:[%s8314_s2 + $0x78] sm:$0xff]  ;;  %v4023_v15 = vpack.c.bf16 %v1341_v42, %v1337_v60 }
  0xba   : > { %v5513_v39 = vmul.f32 %v634_v12, %v8586_v37  ;;  %v640_v43 = vld [vmem:[%s8313_s1 + $0x220] sm:$0xff]  ;;  %1121 = vmatprep.mubr.f32.mxu1 %v5467_v57  ;;  %3954 = vmatpush1.bf16.msra.mxu0 %v3953_v48  ;;  %v638_v45 = vld [vmem:[%s8313_s1 + $0x210] sm:$0xff]  ;;  %v8587_v31 = vld [vmem:[#allocation22_spill] sm:$0xff] }
  0xbb   : > { %v642_v46 = vld [vmem:[%s8313_s1 + $0x230] sm:$0xff]  ;;  %4018 = vmatpush1.bf16.msra.mxu1 %v4017_v58  ;;  %3956 = vmatprep.subr.bf16.mxu0 %v3955_v20  ;;  %v1343_v6 = vmul.f32 %v637_v3, %v8587_v31  ;;  %v8588_v62 = vld [vmem:[#allocation23_spill] sm:$0xff]  ;;  %v8589_v33 = vld [vmem:[#allocation24_spill] sm:$0xff]  ;;  %v3961_v58 = vpack.c.bf16 %v5492_v44, %v5489_v27 }
  0xbc   : > { %v1347_v32 = vmul.f32 %v641_v7, %v8588_v62  ;;  %865 = vmatmul.mubr.f32.gmra.mrb[12].mxu0 %v5499_v1  ;;  %4020 = vmatprep.subr.bf16.mxu1 %v4019_v34  ;;  %v1345_v10 = vmul.f32 %v639_v36, %v8589_v33  ;;  %v8590_v48 = vld [vmem:[#allocation25_spill] sm:$0xff]  ;;  %v645_v52 = vld [vmem:[%s8313_s1 + $0x248] sm:$0xff]  ;;  %v8591_v55 = vld [vmem:[#allocation26_spill] sm:$0xff]  ;;  %v4025_v60 = vpack.c.bf16 %v5513_v39, %v5510_v13 }
  0xbd   : > { %v1349_v49 = vmul.f32 %v643_v50, %v8590_v48  ;;  %v649_v53 = vld [vmem:[%s8313_s1 + $0x268] sm:$0xff]  ;;  %v5547_v26 = vmul.f32 %v636_v41, %v8591_v55  ;;  %v8592_v54 = vld [vmem:[#allocation27_spill] sm:$0xff]  ;;  %1122 = vmatmul.mubr.f32.gmra.mrb[12].mxu1 %v5499_v1  ;;  %870 = vmatprep.mubr.f32.mxu0 %v5525_v23  ;;  %v5557_v47 = vld [vmem:[%s8314_s2 + $0x70] sm:$0xff] }
  0xbe   : > { %v5550_v35 = vmul.f32 %v640_v43, %v8592_v54  ;;  %v647_v18 = vld [vmem:[%s8313_s1 + $0x258] sm:$0xff]  ;;  %v8593_v20 = vld [vmem:[#allocation28_spill] sm:$0xff]  ;;  %v8594_v24 = vld [vmem:[#allocation29_spill] sm:$0xff]  ;;  %1127 = vmatprep.mubr.f32.mxu1 %v5525_v23  ;;  %3958 = vmatpush1.bf16.msra.mxu0 %v3957_v59  ;;  %v3963_v3 = vpack.c.bf16 %v1347_v32, %v1343_v6 }
  0xbf   : > { %v651_v12 = vld [vmem:[%s8313_s1 + $0x278] sm:$0xff]  ;;  %v5568_v19 = vmul.f32 %v638_v45, %v8593_v20  ;;  %v5571_v25 = vmul.f32 %v642_v46, %v8594_v24  ;;  %v644_v21 = vld [vmem:[%s8313_s1 + $0x240] sm:$0xff]  ;;  %v5583_v22 = vld [vmem:[%s8314_s2 + $0x88] sm:$0xff]  ;;  %4022 = vmatpush1.bf16.msra.mxu1 %v4021_v5  ;;  %3960 = vmatprep.subr.bf16.mxu0 %v3959_v29  ;;  %v4027_v44 = vpack.c.bf16 %v1349_v49, %v1345_v10 }
  0xc0   : > { %v648_v34 = vld [vmem:[%s8313_s1 + $0x260] sm:$0xff]  ;;  %v646_v61 = vld [vmem:[%s8313_s1 + $0x250] sm:$0xff]  ;;  %v8595_v7 = vld [vmem:[#allocation30_spill] sm:$0xff]  ;;  %871 = vmatmul.mubr.f32.gmra.mrb[14].mxu0 %v5557_v47  ;;  %4024 = vmatprep.subr.bf16.mxu1 %v4023_v15  ;;  %v3965_v46 = vpack.c.bf16 %v5550_v35, %v5547_v26 }
  0xc1   : > { %v650_v42 = vld [vmem:[%s8313_s1 + $0x270] sm:$0xff]  ;;  %v1351_v0 = vmul.f32 %v645_v52, %v8595_v7  ;;  %v8596_v27 = vld [vmem:[#allocation31_spill] sm:$0xff]  ;;  %v8597_v59 = vld [vmem:[#allocation32_spill] sm:$0xff]  ;;  %1128 = vmatmul.mubr.f32.gmra.mrb[14].mxu1 %v5557_v47  ;;  %876 = vmatprep.mubr.f32.mxu0 %v5583_v22  ;;  %v4029_v49 = vpack.c.bf16 %v5571_v25, %v5568_v19 }
  0xc2   : > { %v1355_v28 = vmul.f32 %v649_v53, %v8596_v27  ;;  %v1353_v36 = vmul.f32 %v647_v18, %v8597_v59  ;;  %v8598_v50 = vld [vmem:[#allocation33_spill] sm:$0xff]  ;;  %v653_v13 = vld [vmem:[%s8313_s1 + $0x288] sm:$0xff]  ;;  %v8599_v39 = vld [vmem:[#allocation34_spill] sm:$0xff]  ;;  %1133 = vmatprep.mubr.f32.mxu1 %v5583_v22  ;;  %3962 = vmatpush1.bf16.msra.mxu0 %v3961_v58 }
  0xc3   : > { %v1357_v8 = vmul.f32 %v651_v12, %v8598_v50  ;;  %v657_v37 = vld [vmem:[%s8313_s1 + $0x2a8] sm:$0xff]  ;;  %v5605_v41 = vmul.f32 %v644_v21, %v8599_v39  ;;  %v8600_v43 = vld [vmem:[#allocation35_spill] sm:$0xff]  ;;  %v655_v29 = vld [vmem:[%s8313_s1 + $0x298] sm:$0xff]  ;;  %4026 = vmatpush1.bf16.msra.mxu1 %v4025_v60  ;;  %3964 = vmatprep.subr.bf16.mxu0 %v3963_v3 }
  0xc4   : > { %v5608_v5 = vmul.f32 %v648_v34, %v8600_v43  ;;  %v5615_v45 = vld [vmem:[%s8314_s2 + $0x80] sm:$0xff]  ;;  %v659_v31 = vld [vmem:[%s8313_s1 + $0x2b8] sm:$0xff]  ;;  %v8601_v6 = vld [vmem:[#allocation36_spill] sm:$0xff]  ;;  %v3967_v55 = vpack.c.bf16 %v1355_v28, %v1351_v0  ;;  %4028 = vmatprep.subr.bf16.mxu1 %v4027_v44 }
  0xc5   : > { %v5626_v62 = vmul.f32 %v646_v61, %v8601_v6  ;;  %v8602_v32 = vld [vmem:[#allocation37_spill] sm:$0xff]  ;;  %v652_v33 = vld [vmem:[%s8313_s1 + $0x280] sm:$0xff]  ;;  %v5641_v48 = vld [vmem:[%s8314_s2 + $0x98] sm:$0xff]  ;;  %877 = vmatmul.mubr.f32.gmra.mrb[16].mxu0 %v5615_v45  ;;  %v4031_v58 = vpack.c.bf16 %v1357_v8, %v1353_v36  ;;  %1134 = vmatmul.mubr.f32.gmra.mrb[16].mxu1 %v5615_v45 }
  0xc6   : > { %v5629_v15 = vmul.f32 %v650_v42, %v8602_v32  ;;  %v656_v10 = vld [vmem:[%s8313_s1 + $0x2a0] sm:$0xff]  ;;  %v654_v52 = vld [vmem:[%s8313_s1 + $0x290] sm:$0xff]  ;;  %v8603_v26 = vld [vmem:[#allocation38_spill] sm:$0xff]  ;;  %882 = vmatprep.mubr.f32.mxu0 %v5641_v48  ;;  %v3969_v7 = vpack.c.bf16 %v5608_v5, %v5605_v41  ;;  %1139 = vmatprep.mubr.f32.mxu1 %v5641_v48 }
  0xc7   : > { %v658_v53 = vld [vmem:[%s8313_s1 + $0x2b0] sm:$0xff]  ;;  %v1359_v54 = vmul.f32 %v653_v13, %v8603_v26  ;;  %v8604_v35 = vld [vmem:[#allocation39_spill] sm:$0xff]  ;;  %v8605_v12 = vld [vmem:[#allocation40_spill] sm:$0xff]  ;;  %3966 = vmatpush1.bf16.msra.mxu0 %v3965_v46  ;;  %4030 = vmatpush1.bf16.msra.mxu1 %v4029_v49 }
  0xc8   : > { %v1363_v18 = vmul.f32 %v657_v37, %v8604_v35  ;;  %v1361_v20 = vmul.f32 %v655_v29, %v8605_v12  ;;  %v8606_v19 = vld [vmem:[#allocation41_spill] sm:$0xff]  ;;  %v661_v25 = vld [vmem:[%s8313_s1 + $0x2c8] sm:$0xff]  ;;  %v8607_v34 = vld [vmem:[#allocation42_spill] sm:$0xff]  ;;  %v4033_v37 = vpack.c.bf16 %v5629_v15, %v5626_v62  ;;  %3968 = vmatprep.subr.bf16.mxu0 %v3967_v55  ;;  %4032 = vmatprep.subr.bf16.mxu1 %v4031_v58 }
  0xc9   : > { %v1365_v24 = vmul.f32 %v659_v31, %v8606_v19  ;;  %v665_v21 = vld [vmem:[%s8313_s1 + $0x2e8] sm:$0xff]  ;;  %v5663_v60 = vmul.f32 %v652_v33, %v8607_v34  ;;  %v8608_v61 = vld [vmem:[#allocation43_spill] sm:$0xff]  ;;  %v5673_v3 = vld [vmem:[%s8314_s2 + $0x90] sm:$0xff] }
  0xca   : > { %v5666_v42 = vmul.f32 %v656_v10, %v8608_v61  ;;  %v663_v0 = vld [vmem:[%s8313_s1 + $0x2d8] sm:$0xff]  ;;  %v8609_v28 = vld [vmem:[#allocation44_spill] sm:$0xff]  ;;  %v8610_v59 = vld [vmem:[#allocation45_spill] sm:$0xff]  ;;  %v3971_v43 = vpack.c.bf16 %v1363_v18, %v1359_v54  ;;  %883 = vmatmul.mubr.f32.gmra.mrb[18].mxu0 %v5673_v3  ;;  %1140 = vmatmul.mubr.f32.gmra.mrb[18].mxu1 %v5673_v3 }
  0xcb   : > { %v667_v27 = vld [vmem:[%s8313_s1 + $0x2f8] sm:$0xff]  ;;  %v5684_v44 = vmul.f32 %v654_v52, %v8609_v28  ;;  %v5687_v36 = vmul.f32 %v658_v53, %v8610_v59  ;;  %v660_v50 = vld [vmem:[%s8313_s1 + $0x2c0] sm:$0xff]  ;;  %v5699_v13 = vld [vmem:[%s8314_s2 + $0xa8] sm:$0xff]  ;;  %v4035_v46 = vpack.c.bf16 %v1365_v24, %v1361_v20  ;;  %3970 = vmatpush1.bf16.msra.mxu0 %v3969_v7  ;;  %4034 = vmatpush1.bf16.msra.mxu1 %v4033_v37 }
  0xcc   : > { %v664_v8 = vld [vmem:[%s8313_s1 + $0x2e0] sm:$0xff]  ;;  %v662_v39 = vld [vmem:[%s8313_s1 + $0x2d0] sm:$0xff]  ;;  %v8611_v5 = vld [vmem:[#allocation46_spill] sm:$0xff]  ;;  %888 = vmatprep.mubr.f32.mxu0 %v5699_v13  ;;  %v3973_v35 = vpack.c.bf16 %v5666_v42, %v5663_v60  ;;  %1145 = vmatprep.mubr.f32.mxu1 %v5699_v13 }
  0xcd   : > { %v666_v41 = vld [vmem:[%s8313_s1 + $0x2f0] sm:$0xff]  ;;  %v1367_v29 = vmul.f32 %v661_v25, %v8611_v5  ;;  %v8612_v31 = vld [vmem:[#allocation47_spill] sm:$0xff]  ;;  %v8613_v62 = vld [vmem:[#allocation48_spill] sm:$0xff]  ;;  %v4037_v60 = vpack.c.bf16 %v5687_v36, %v5684_v44  ;;  %3972 = vmatprep.subr.bf16.mxu0 %v3971_v43  ;;  %4036 = vmatprep.subr.bf16.mxu1 %v4035_v46 }
  0xce   : > { %v1371_v6 = vmul.f32 %v665_v21, %v8612_v31  ;;  %v1369_v32 = vmul.f32 %v663_v0, %v8613_v62  ;;  %v8614_v15 = vld [vmem:[#allocation49_spill] sm:$0xff]  ;;  %v669_v10 = vld [vmem:[%s8313_s1 + $0x308] sm:$0xff]  ;;  %v8615_v52 = vld [vmem:[#allocation50_spill] sm:$0xff] }
  0xcf   : > { %v1373_v33 = vmul.f32 %v667_v27, %v8614_v15  ;;  %v673_v49 = vld [vmem:[%s8313_s1 + $0x328] sm:$0xff]  ;;  %v5721_v53 = vmul.f32 %v660_v50, %v8615_v52  ;;  %v8616_v55 = vld [vmem:[#allocation51_spill] sm:$0xff]  ;;  %v671_v18 = vld [vmem:[%s8313_s1 + $0x318] sm:$0xff]  ;;  %3974 = vmatpush1.bf16.msra.mxu0 %v3973_v35  ;;  %4038 = vmatpush1.bf16.msra.mxu1 %v4037_v60 }
  0xd0   : > { %v5724_v26 = vmul.f32 %v664_v8, %v8616_v55  ;;  %v5731_v54 = vld [vmem:[%s8314_s2 + $0xa0] sm:$0xff]  ;;  %v675_v58 = vld [vmem:[%s8313_s1 + $0x338] sm:$0xff]  ;;  %v8617_v12 = vld [vmem:[#allocation52_spill] sm:$0xff]  ;;  %v3975_v0 = vpack.c.bf16 %v1371_v6, %v1367_v29 }
  0xd1   : > { %v5742_v20 = vmul.f32 %v662_v39, %v8617_v12  ;;  %v8618_v19 = vld [vmem:[#allocation53_spill] sm:$0xff]  ;;  %v668_v25 = vld [vmem:[%s8313_s1 + $0x300] sm:$0xff]  ;;  %v5757_v34 = vld [vmem:[%s8314_s2 + $0xb8] sm:$0xff]  ;;  %889 = vmatmul.mubr.f32.gmra.mrb[20].mxu0 %v5731_v54  ;;  %v4039_v7 = vpack.c.bf16 %v1373_v33, %v1369_v32  ;;  %1146 = vmatmul.mubr.f32.gmra.mrb[20].mxu1 %v5731_v54 }
  0xd2   : > { %v5745_v24 = vmul.f32 %v666_v41, %v8618_v19  ;;  %v672_v21 = vld [vmem:[%s8313_s1 + $0x320] sm:$0xff]  ;;  %v670_v61 = vld [vmem:[%s8313_s1 + $0x310] sm:$0xff]  ;;  %v8619_v27 = vld [vmem:[#allocation54_spill] sm:$0xff]  ;;  %894 = vmatprep.mubr.f32.mxu0 %v5757_v34  ;;  %v3977_v46 = vpack.c.bf16 %v5724_v26, %v5721_v53  ;;  %1151 = vmatprep.mubr.f32.mxu1 %v5757_v34 }
  0xd3   : > { %v674_v42 = vld [vmem:[%s8313_s1 + $0x330] sm:$0xff]  ;;  %v1375_v28 = vmul.f32 %v669_v10, %v8619_v27  ;;  %v8620_v59 = vld [vmem:[#allocation55_spill] sm:$0xff]  ;;  %v8621_v44 = vld [vmem:[#allocation56_spill] sm:$0xff]  ;;  %3976 = vmatprep.subr.bf16.mxu0 %v3975_v0  ;;  %4040 = vmatprep.subr.bf16.mxu1 %v4039_v7 }
  0xd4   : > { %v1379_v50 = vmul.f32 %v673_v49, %v8620_v59  ;;  %v1377_v36 = vmul.f32 %v671_v18, %v8621_v44  ;;  %v8622_v8 = vld [vmem:[#allocation57_spill] sm:$0xff]  ;;  %v677_v41 = vld [vmem:[%s8313_s1 + $0x348] sm:$0xff]  ;;  %v8623_v43 = vld [vmem:[#allocation58_spill] sm:$0xff]  ;;  %v4041_v26 = vpack.c.bf16 %v5745_v24, %v5742_v20  ;;  %3978 = vmatpush1.bf16.msra.mxu0 %v3977_v46 }
  0xd5   : > { %v1381_v39 = vmul.f32 %v675_v58, %v8622_v8  ;;  %v681_v37 = vld [vmem:[%s8313_s1 + $0x368] sm:$0xff]  ;;  %v5779_v5 = vmul.f32 %v668_v25, %v8623_v43  ;;  %v8624_v29 = vld [vmem:[#allocation59_spill] sm:$0xff]  ;;  %v5789_v6 = vld [vmem:[%s8314_s2 + $0xb0] sm:$0xff] }
  0xd6   : > { %v5782_v31 = vmul.f32 %v672_v21, %v8624_v29  ;;  %v679_v62 = vld [vmem:[%s8313_s1 + $0x358] sm:$0xff]  ;;  %v8625_v15 = vld [vmem:[#allocation60_spill] sm:$0xff]  ;;  %v8626_v10 = vld [vmem:[#allocation61_spill] sm:$0xff]  ;;  %v3979_v12 = vpack.c.bf16 %v1379_v50, %v1375_v28  ;;  %895 = vmatmul.mubr.f32.gmra.mrb[22].mxu0 %v5789_v6  ;;  %1152 = vmatmul.mubr.f32.gmra.mrb[22].mxu1 %v5789_v6 }
  0xd7   : > { %v683_v32 = vld [vmem:[%s8313_s1 + $0x378] sm:$0xff]  ;;  %v5800_v33 = vmul.f32 %v670_v61, %v8625_v15  ;;  %v5803_v49 = vmul.f32 %v674_v42, %v8626_v10  ;;  %v676_v52 = vld [vmem:[%s8313_s1 + $0x340] sm:$0xff]  ;;  %v5815_v55 = vld [vmem:[%s8314_s2 + $0xc8] sm:$0xff]  ;;  %v4043_v35 = vpack.c.bf16 %v1381_v39, %v1377_v36  ;;  %4042 = vmatpush1.bf16.msra.mxu1 %v4041_v26 }
  0xd8   : > { %v680_v53 = vld [vmem:[%s8313_s1 + $0x360] sm:$0xff]  ;;  %v678_v18 = vld [vmem:[%s8313_s1 + $0x350] sm:$0xff]  ;;  %v8627_v19 = vld [vmem:[#allocation62_spill] sm:$0xff]  ;;  %900 = vmatprep.mubr.f32.mxu0 %v5815_v55  ;;  %v3981_v36 = vpack.c.bf16 %v5782_v31, %v5779_v5  ;;  %1157 = vmatprep.mubr.f32.mxu1 %v5815_v55 }
  0xd9   : > { %v682_v58 = vld [vmem:[%s8313_s1 + $0x370] sm:$0xff]  ;;  %v1383_v25 = vmul.f32 %v677_v41, %v8627_v19  ;;  %v8628_v21 = vld [vmem:[#allocation63_spill] sm:$0xff]  ;;  %v8629_v20 = vld [vmem:[#allocation64_spill] sm:$0xff]  ;;  %3980 = vmatprep.subr.bf16.mxu0 %v3979_v12  ;;  %4044 = vmatprep.subr.bf16.mxu1 %v4043_v35 }
  0xda   : > { %v1387_v61 = vmul.f32 %v681_v37, %v8628_v21  ;;  %v1385_v24 = vmul.f32 %v679_v62, %v8629_v20  ;;  %v8630_v42 = vld [vmem:[#allocation65_spill] sm:$0xff]  ;;  %v685_v59 = vld [vmem:[%s8313_s1 + $0x388] sm:$0xff]  ;;  %v8631_v0 = vld [vmem:[#allocation66_spill] sm:$0xff]  ;;  %3982 = vmatpush1.bf16.msra.mxu0 %v3981_v36 }
  0xdb   : > { %v1389_v27 = vmul.f32 %v683_v32, %v8630_v42  ;;  %v689_v60 = vld [vmem:[%s8313_s1 + $0x3a8] sm:$0xff]  ;;  %v5837_v28 = vmul.f32 %v676_v52, %v8631_v0  ;;  %v8632_v50 = vld [vmem:[#allocation67_spill] sm:$0xff]  ;;  %v687_v8 = vld [vmem:[%s8313_s1 + $0x398] sm:$0xff]  ;;  %v4045_v32 = vpack.c.bf16 %v5803_v49, %v5800_v33 }
  0xdc   : > { %v5840_v44 = vmul.f32 %v680_v53, %v8632_v50  ;;  %v5847_v7 = vld [vmem:[%s8314_s2 + $0xc0] sm:$0xff]  ;;  %v691_v39 = vld [vmem:[%s8313_s1 + $0x3b8] sm:$0xff]  ;;  %v8633_v41 = vld [vmem:[#allocation68_spill] sm:$0xff]  ;;  %v3983_v52 = vpack.c.bf16 %v1387_v61, %v1383_v25 }
  0xdd   : > { %v1384_v37 = vmul.f32 %v678_v18, %v8633_v41  ;;  %v8634_v43 = vld [vmem:[#allocation69_spill] sm:$0xff]  ;;  %v684_v62 = vld [vmem:[%s8313_s1 + $0x380] sm:$0xff]  ;;  %v5869_v31 = vld [vmem:[%s8314_s2 + $0xd8] sm:$0xff]  ;;  %901 = vmatmul.mubr.f32.gmra.mrb[24].mxu0 %v5847_v7  ;;  %v4047_v46 = vpack.c.bf16 %v1389_v27, %v1385_v24  ;;  %1158 = vmatmul.mubr.f32.gmra.mrb[24].mxu1 %v5847_v7 }
  0xde   : > { %v1388_v29 = vmul.f32 %v682_v58, %v8634_v43  ;;  %v688_v5 = vld [vmem:[%s8313_s1 + $0x3a0] sm:$0xff]  ;;  %v686_v15 = vld [vmem:[%s8313_s1 + $0x390] sm:$0xff]  ;;  %v8635_v53 = vld [vmem:[#allocation70_spill] sm:$0xff]  ;;  %906 = vmatprep.mubr.f32.mxu0 %v5869_v31  ;;  %v3985_v24 = vpack.c.bf16 %v5840_v44, %v5837_v28  ;;  %1163 = vmatprep.mubr.f32.mxu1 %v5869_v31 }
  0xdf   : > { %v690_v10 = vld [vmem:[%s8313_s1 + $0x3b0] sm:$0xff]  ;;  %v1391_v18 = vmul.f32 %v685_v59, %v8635_v53  ;;  %v8636_v58 = vld [vmem:[#allocation71_spill] sm:$0xff]  ;;  %v8637_v33 = vld [vmem:[#allocation72_spill] sm:$0xff]  ;;  %4046 = vmatpush1.bf16.msra.mxu1 %v4045_v32  ;;  %3984 = vmatprep.subr.bf16.mxu0 %v3983_v52 }
  0xe0   : > { %v1395_v19 = vmul.f32 %v689_v60, %v8636_v58  ;;  %v1393_v49 = vmul.f32 %v687_v8, %v8637_v33  ;;  %v8638_v21 = vld [vmem:[#allocation73_spill] sm:$0xff]  ;;  %v693_v42 = vld [vmem:[%s8313_s1 + $0x3c8] sm:$0xff]  ;;  %v8639_v12 = vld [vmem:[#allocation74_spill] sm:$0xff]  ;;  %v4049_v28 = vpack.c.bf16 %v1388_v29, %v1384_v37  ;;  %4048 = vmatprep.subr.bf16.mxu1 %v4047_v46  ;;  %3986 = vmatpush1.bf16.msra.mxu0 %v3985_v24 }
  0xe1   : > { %v1397_v20 = vmul.f32 %v691_v39, %v8638_v21  ;;  %v697_v26 = vld [vmem:[%s8313_s1 + $0x3e8] sm:$0xff]  ;;  %v1390_v25 = vmul.f32 %v684_v62, %v8639_v12  ;;  %v8640_v61 = vld [vmem:[#allocation75_spill] sm:$0xff]  ;;  %v5897_v35 = vld [vmem:[%s8314_s2 + $0xd0] sm:$0xff] }
  0xe2   : > { %v1394_v59 = vmul.f32 %v688_v5, %v8640_v61  ;;  %v695_v27 = vld [vmem:[%s8313_s1 + $0x3d8] sm:$0xff]  ;;  %v8641_v0 = vld [vmem:[#allocation76_spill] sm:$0xff]  ;;  %v8642_v8 = vld [vmem:[#allocation77_spill] sm:$0xff]  ;;  %v3987_v5 = vpack.c.bf16 %v1395_v19, %v1391_v18  ;;  %907 = vmatmul.mubr.f32.gmra.mrb[26].mxu0 %v5897_v35  ;;  %1164 = vmatmul.mubr.f32.gmra.mrb[26].mxu1 %v5897_v35 }
  0xe3   : > { %v699_v60 = vld [vmem:[%s8313_s1 + $0x3f8] sm:$0xff]  ;;  %v1392_v50 = vmul.f32 %v686_v15, %v8641_v0  ;;  %v1396_v39 = vmul.f32 %v690_v10, %v8642_v8  ;;  %v5913_v41 = vld [vmem:[%s8314_s2 + $0xe8] sm:$0xff]  ;;  %v692_v44 = vld [vmem:[%s8313_s1 + $0x3c0] sm:$0xff]  ;;  %v4051_v29 = vpack.c.bf16 %v1397_v20, %v1393_v49  ;;  %v1401_v58 = vmul.f32 %v695_v27, %v5102_v2  ;;  %4050 = vmatpush1.bf16.msra.mxu1 %v4049_v28 }
  0xe4   : > { %v696_v43 = vld [vmem:[%s8313_s1 + $0x3e0] sm:$0xff]  ;;  %v694_v62 = vld [vmem:[%s8313_s1 + $0x3d0] sm:$0xff]  ;;  %v8643_v15 = vld [vmem:[#allocation78_spill] sm:$0xff]  ;;  %v1405_v33 = vmul.f32 %v699_v60, %v5105_v4  ;;  %912 = vmatprep.mubr.f32.mxu0 %v5913_v41  ;;  %v3989_v52 = vpack.c.bf16 %v1394_v59, %v1390_v25  ;;  %v1398_v18 = vmul.f32 %v692_v44, %v5108_v16  ;;  %1169 = vmatprep.mubr.f32.mxu1 %v5913_v41 }
  0xe5   : > { %v1399_v10 = vmul.f32 %v693_v42, %v8643_v15  ;;  %v8644_v53 = vld [vmem:[#allocation79_spill] sm:$0xff]  ;;  %v698_v37 = vld [vmem:[%s8313_s1 + $0x3f0] sm:$0xff]  ;;  %v1402_v19 = vmul.f32 %v696_v43, %v5124_v38  ;;  %v1400_v46 = vmul.f32 %v694_v62, %v5130_v9  ;;  %v5946_v2 = vld [vmem:[%s8314_s2 + $0xf8] sm:$0xff]  ;;  %3988 = vmatprep.subr.bf16.mxu0 %v3987_v5  ;;  %v4053_v49 = vpack.c.bf16 %v1396_v39, %v1392_v50 }
  0xe6   : > { %v1403_v36 = vmul.f32 %v697_v26, %v8644_v53  ;;  %v5937_v32 = vld [vmem:[%s8314_s2 + $0xe0] sm:$0xff]  ;;  %v1404_v4 = vmul.f32 %v698_v37, %v5133_v30  ;;  %4052 = vmatprep.subr.bf16.mxu1 %v4051_v29  ;;  %v4055_v38 = vpack.c.bf16 %v1405_v33, %v1401_v58  ;;  %v5955_v16 = vld [vmem:[%s8314_s2 + $0xf0] sm:$0xff]  ;;  %v5961_v9 = vld [vmem:[%s8314_s2 + $0x108] sm:$0xff]  ;;  %3990 = vmatpush1.bf16.msra.mxu0 %v3989_v52 }
  0xe7   : > { %913 = vmatmul.mubr.f32.gmra.mrb[28].mxu0 %v5937_v32  ;;  %1170 = vmatmul.mubr.f32.gmra.mrb[28].mxu1 %v5937_v32  ;;  %v3993_v30 = vpack.c.bf16 %v1402_v19, %v1398_v18  ;;  %v5969_v42 = vld [vmem:[%s8314_s2 + $0x100] sm:$0xff]  ;;  %v5975_v26 = vld [vmem:[%s8314_s2 + $0x118] sm:$0xff]  ;;  %v5983_v12 = vld [vmem:[%s8314_s2 + $0x110] sm:$0xff] }
  0xe8   : > { %v3991_v21 = vpack.c.bf16 %v1403_v36, %v1399_v10  ;;  %918 = vmatprep.mubr.f32.mxu0 %v5946_v2  ;;  %1175 = vmatprep.mubr.f32.mxu1 %v5946_v2  ;;  %v4057_v20 = vpack.c.bf16 %v1404_v4, %v1400_v46  ;;  %v5989_v25 = vld [vmem:[%s8314_s2 + $0x128] sm:$0xff]  ;;  %v5997_v61 = vld [vmem:[%s8314_s2 + $0x120] sm:$0xff]  ;;  %v6003_v59 = vld [vmem:[%s8314_s2 + $0x138] sm:$0xff] }
  0xe9   : > { %4054 = vmatpush1.bf16.msra.mxu1 %v4053_v49  ;;  %v6011_v24 = vld [vmem:[%s8314_s2 + $0x130] sm:$0xff]  ;;  %v6017_v27 = vld [vmem:[%s8314_s2 + $0x148] sm:$0xff]  ;;  %v6025_v60 = vld [vmem:[%s8314_s2 + $0x140] sm:$0xff] }
  0xea   : > { %3992 = vmatprep.subr.bf16.mxu0 %v3991_v21  ;;  %4056 = vmatprep.subr.bf16.mxu1 %v4055_v38  ;;  %v6031_v0 = vld [vmem:[%s8314_s2 + $0x158] sm:$0xff]  ;;  %v6039_v50 = vld [vmem:[%s8314_s2 + $0x150] sm:$0xff]  ;;  %v6045_v8 = vld [vmem:[%s8314_s2 + $0x168] sm:$0xff] }
  0xeb   : > { %919 = vmatmul.mubr.f32.gmra.mrb[30].mxu0 %v5955_v16  ;;  %1176 = vmatmul.mubr.f32.gmra.mrb[30].mxu1 %v5955_v16  ;;  %v6053_v39 = vld [vmem:[%s8314_s2 + $0x160] sm:$0xff]  ;;  %v6059_v28 = vld [vmem:[%s8314_s2 + $0x178] sm:$0xff]  ;;  %v6067_v44 = vld [vmem:[%s8314_s2 + $0x170] sm:$0xff] }
  0xec   : > { %924 = vmatprep.mubr.f32.mxu0 %v5961_v9  ;;  %1181 = vmatprep.mubr.f32.mxu1 %v5961_v9  ;;  %v6073_v43 = vld [vmem:[%s8314_s2 + $0x188] sm:$0xff]  ;;  %v6081_v62 = vld [vmem:[%s8314_s2 + $0x180] sm:$0xff]  ;;  %v6087_v5 = vld [vmem:[%s8314_s2 + $0x198] sm:$0xff] }
  0xed   : > { %3994 = vmatpush1.bf16.msra.mxu0 %v3993_v30  ;;  %4058 = vmatpush1.bf16.msra.mxu1 %v4057_v20  ;;  %v6095_v15 = vld [vmem:[%s8314_s2 + $0x190] sm:$0xff]  ;;  %v6101_v10 = vld [vmem:[%s8314_s2 + $0x1a8] sm:$0xff]  ;;  %v6109_v53 = vld [vmem:[%s8314_s2 + $0x1a0] sm:$0xff] }
  0xee   : > { %v6115_v36 = vld [vmem:[%s8314_s2 + $0x1b8] sm:$0xff]  ;;  %v6123_v37 = vld [vmem:[%s8314_s2 + $0x1b0] sm:$0xff]  ;;  %v6129_v29 = vld [vmem:[%s8314_s2 + $0x1c8] sm:$0xff] }
  0xef   : > { %925 = vmatmul.mubr.f32.gmra.mrb[32].mxu0 %v5969_v42  ;;  %1182 = vmatmul.mubr.f32.gmra.mrb[32].mxu1 %v5969_v42  ;;  %v6137_v58 = vld [vmem:[%s8314_s2 + $0x1c0] sm:$0xff]  ;;  %v6143_v33 = vld [vmem:[%s8314_s2 + $0x1d8] sm:$0xff]  ;;  %v6151_v52 = vld [vmem:[%s8314_s2 + $0x1d0] sm:$0xff] }
  0xf0   : > { %930 = vmatprep.mubr.f32.mxu0 %v5975_v26  ;;  %1187 = vmatprep.mubr.f32.mxu1 %v5975_v26  ;;  %v6157_v18 = vld [vmem:[%s8314_s2 + $0x1e8] sm:$0xff]  ;;  %v6165_v19 = vld [vmem:[%s8314_s2 + $0x1e0] sm:$0xff]  ;;  %v6171_v46 = vld [vmem:[%s8314_s2 + $0x1f8] sm:$0xff] }
  0xf1   : > { %v6179_v4 = vld [vmem:[%s8314_s2 + $0x1f0] sm:$0xff]  ;;  %v4101_v49 = vld [vmem:[%s8314_s2 + $0x8] sm:$0xff]  ;;  %v4102_v21 = vld [vmem:[%s8314_s2] sm:$0xff] }
  0xf2   : > { %v4103_v38 = vld [vmem:[%s8314_s2 + $0x18] sm:$0xff]  ;;  %v4104_v30 = vld [vmem:[%s8314_s2 + $0x10] sm:$0xff]  ;;  %v4105_v20 = vld [vmem:[%s8314_s2 + $0x28] sm:$0xff] }
  0xf3   : > { %931 = vmatmul.mubr.f32.gmra.mrb[34].mxu0 %v5983_v12  ;;  %1188 = vmatmul.mubr.f32.gmra.mrb[34].mxu1 %v5983_v12 }
  0xf4   : > { %936 = vmatprep.mubr.f32.mxu0 %v5989_v25  ;;  %1193 = vmatprep.mubr.f32.mxu1 %v5989_v25 }
  0xf7   : > { %937 = vmatmul.mubr.f32.gmra.mrb[36].mxu0 %v5997_v61  ;;  %1194 = vmatmul.mubr.f32.gmra.mrb[36].mxu1 %v5997_v61 }
  0xf8   : > { %942 = vmatprep.mubr.f32.mxu0 %v6003_v59  ;;  %1199 = vmatprep.mubr.f32.mxu1 %v6003_v59 }
  0xfb   : > { %943 = vmatmul.mubr.f32.gmra.mrb[38].mxu0 %v6011_v24  ;;  %1200 = vmatmul.mubr.f32.gmra.mrb[38].mxu1 %v6011_v24 }
  0xfc   : > { %948 = vmatprep.mubr.f32.mxu0 %v6017_v27  ;;  %1205 = vmatprep.mubr.f32.mxu1 %v6017_v27 }
  0xff   : > { %949 = vmatmul.mubr.f32.gmra.mrb[40].mxu0 %v6025_v60  ;;  %1206 = vmatmul.mubr.f32.gmra.mrb[40].mxu1 %v6025_v60 }
 0x100   : > { %954 = vmatprep.mubr.f32.mxu0 %v6031_v0  ;;  %1211 = vmatprep.mubr.f32.mxu1 %v6031_v0 }
 0x103   : > { %955 = vmatmul.mubr.f32.gmra.mrb[42].mxu0 %v6039_v50  ;;  %1212 = vmatmul.mubr.f32.gmra.mrb[42].mxu1 %v6039_v50 }
 0x104   : > { %960 = vmatprep.mubr.f32.mxu0 %v6045_v8  ;;  %1217 = vmatprep.mubr.f32.mxu1 %v6045_v8 }
 0x107   : > { %961 = vmatmul.mubr.f32.gmra.mrb[44].mxu0 %v6053_v39  ;;  %1218 = vmatmul.mubr.f32.gmra.mrb[44].mxu1 %v6053_v39 }
 0x108   : > { %966 = vmatprep.mubr.f32.mxu0 %v6059_v28  ;;  %1223 = vmatprep.mubr.f32.mxu1 %v6059_v28 }
 0x10b   : > { %967 = vmatmul.mubr.f32.gmra.mrb[46].mxu0 %v6067_v44  ;;  %1224 = vmatmul.mubr.f32.gmra.mrb[46].mxu1 %v6067_v44 }
 0x10c   : > { %972 = vmatprep.mubr.f32.mxu0 %v6073_v43  ;;  %1229 = vmatprep.mubr.f32.mxu1 %v6073_v43 }
 0x10f   : > { %973 = vmatmul.mubr.f32.gmra.mrb[48].mxu0 %v6081_v62  ;;  %1230 = vmatmul.mubr.f32.gmra.mrb[48].mxu1 %v6081_v62 }
 0x110   : > { %978 = vmatprep.mubr.f32.mxu0 %v6087_v5  ;;  %1235 = vmatprep.mubr.f32.mxu1 %v6087_v5 }
 0x113   : > { %979 = vmatmul.mubr.f32.gmra.mrb[50].mxu0 %v6095_v15  ;;  %1236 = vmatmul.mubr.f32.gmra.mrb[50].mxu1 %v6095_v15 }
 0x114   : > { %984 = vmatprep.mubr.f32.mxu0 %v6101_v10  ;;  %1241 = vmatprep.mubr.f32.mxu1 %v6101_v10 }
 0x117   : > { %985 = vmatmul.mubr.f32.gmra.mrb[52].mxu0 %v6109_v53  ;;  %1242 = vmatmul.mubr.f32.gmra.mrb[52].mxu1 %v6109_v53 }
 0x118   : > { %990 = vmatprep.mubr.f32.mxu0 %v6115_v36  ;;  %1247 = vmatprep.mubr.f32.mxu1 %v6115_v36 }
 0x11b   : > { %991 = vmatmul.mubr.f32.gmra.mrb[54].mxu0 %v6123_v37  ;;  %1248 = vmatmul.mubr.f32.gmra.mrb[54].mxu1 %v6123_v37 }
 0x11c   : > { %996 = vmatprep.mubr.f32.mxu0 %v6129_v29  ;;  %1253 = vmatprep.mubr.f32.mxu1 %v6129_v29 }
 0x11f   : > { %997 = vmatmul.mubr.f32.gmra.mrb[56].mxu0 %v6137_v58  ;;  %1254 = vmatmul.mubr.f32.gmra.mrb[56].mxu1 %v6137_v58 }
 0x120   : > { %1002 = vmatprep.mubr.f32.mxu0 %v6143_v33  ;;  %1259 = vmatprep.mubr.f32.mxu1 %v6143_v33 }
 0x123   : > { %1003 = vmatmul.mubr.f32.gmra.mrb[58].mxu0 %v6151_v52  ;;  %1260 = vmatmul.mubr.f32.gmra.mrb[58].mxu1 %v6151_v52 }
 0x124   : > { %1008 = vmatprep.mubr.f32.mxu0 %v6157_v18  ;;  %1265 = vmatprep.mubr.f32.mxu1 %v6157_v18 }
 0x127   : > { %1009 = vmatmul.mubr.f32.gmra.mrb[60].mxu0 %v6165_v19  ;;  %1266 = vmatmul.mubr.f32.gmra.mrb[60].mxu1 %v6165_v19 }
 0x128   : > { %1014 = vmatprep.mubr.f32.mxu0 %v6171_v46  ;;  %1271 = vmatprep.mubr.f32.mxu1 %v6171_v46 }
 0x12b   : > { %1015 = vmatmul.mubr.f32.gmra.mrb[62].mxu0 %v6179_v4  ;;  %1272 = vmatmul.mubr.f32.gmra.mrb[62].mxu1 %v6179_v4 }
 0x12c   : > { %2687 = vmatprep.mubr.f32.mxu0 %v4101_v49  ;;  %2944 = vmatprep.mubr.f32.mxu1 %v4101_v49 }
 0x12f   : > { %2688 = vmatmul.mubr.f32.vlgmr.msra.gmra.mrb[64].mxu0 %v4102_v21  ;;  %2945 = vmatmul.mubr.f32.vlgmr.msra.gmra.mrb[64].mxu1 %v4102_v21  ;;  %v4109_v21 = vld [vmem:[%s8313_s1 + $0x18] sm:$0xff] }
 0x130   : > { %2693 = vmatprep.mubr.f32.mxu0 %v4103_v38  ;;  %2950 = vmatprep.mubr.f32.mxu1 %v4103_v38 }
 0x133   : > { %2694 = vmatmul.mubr.f32.gmra.mrb[66].mxu0 %v4104_v30  ;;  %2951 = vmatmul.mubr.f32.gmra.mrb[66].mxu1 %v4104_v30 }
 0x134   : > { %2699 = vmatprep.mubr.f32.mxu0 %v4105_v20  ;;  %2956 = vmatprep.mubr.f32.mxu1 %v4105_v20 }
 0x137   : > { %2700 = vmatmul.mubr.f32.gmra.mrb[68].mxu0 %v5269_v11  ;;  %2957 = vmatmul.mubr.f32.gmra.mrb[68].mxu1 %v5269_v11 }
 0x138   : > { %2705 = vmatprep.mubr.f32.mxu0 %v5287_v40  ;;  %2962 = vmatprep.mubr.f32.mxu1 %v5287_v40 }
 0x13b   : > { %2706 = vmatmul.mubr.f32.gmra.mrb[70].mxu0 %v5325_v51  ;;  %2963 = vmatmul.mubr.f32.gmra.mrb[70].mxu1 %v5325_v51 }
 0x13c   : > { %2711 = vmatprep.mubr.f32.mxu0 %v5351_v17  ;;  %2968 = vmatprep.mubr.f32.mxu1 %v5351_v17 }
 0x13f   : > { %2712 = vmatmul.mubr.f32.gmra.mrb[72].mxu0 %v5383_v63  ;;  %2969 = vmatmul.mubr.f32.gmra.mrb[72].mxu1 %v5383_v63 }
 0x140   : > { %2717 = vmatprep.mubr.f32.mxu0 %v5409_v56  ;;  %2974 = vmatprep.mubr.f32.mxu1 %v5409_v56 }
 0x143   : > { %2718 = vmatmul.mubr.f32.gmra.mrb[74].mxu0 %v5441_v14  ;;  %2975 = vmatmul.mubr.f32.gmra.mrb[74].mxu1 %v5441_v14 }
 0x144   : > { %2723 = vmatprep.mubr.f32.mxu0 %v5467_v57  ;;  %2980 = vmatprep.mubr.f32.mxu1 %v5467_v57  ;;  %v8478_v57 = vmov 0.0  }
 0x147   : > { %2724 = vmatmul.mubr.f32.gmra.mrb[76].mxu0 %v5499_v1  ;;  %2981 = vmatmul.mubr.f32.gmra.mrb[76].mxu1 %v5499_v1 }
 0x148   : > { %2729 = vmatprep.mubr.f32.mxu0 %v5525_v23  ;;  %2986 = vmatprep.mubr.f32.mxu1 %v5525_v23 }
 0x14b   : > { %2730 = vmatmul.mubr.f32.gmra.mrb[78].mxu0 %v5557_v47  ;;  %2987 = vmatmul.mubr.f32.gmra.mrb[78].mxu1 %v5557_v47 }
 0x14c   : > { %2735 = vmatprep.mubr.f32.mxu0 %v5583_v22  ;;  %2992 = vmatprep.mubr.f32.mxu1 %v5583_v22 }
 0x14f   : > { %2736 = vmatmul.mubr.f32.gmra.mrb[80].mxu0 %v5615_v45  ;;  %2993 = vmatmul.mubr.f32.gmra.mrb[80].mxu1 %v5615_v45 }
 0x150   : > { %2741 = vmatprep.mubr.f32.mxu0 %v5641_v48  ;;  %2998 = vmatprep.mubr.f32.mxu1 %v5641_v48 }
 0x153   : > { %2742 = vmatmul.mubr.f32.gmra.mrb[82].mxu0 %v5673_v3  ;;  %2999 = vmatmul.mubr.f32.gmra.mrb[82].mxu1 %v5673_v3 }
 0x154   : > { %2747 = vmatprep.mubr.f32.mxu0 %v5699_v13  ;;  %3004 = vmatprep.mubr.f32.mxu1 %v5699_v13 }
 0x157   : > { %2748 = vmatmul.mubr.f32.gmra.mrb[84].mxu0 %v5731_v54  ;;  %3005 = vmatmul.mubr.f32.gmra.mrb[84].mxu1 %v5731_v54  ;;  %v4106_v54 = vld [vmem:[%s8313_s1] sm:$0xff] }
 0x158   : > { %2753 = vmatprep.mubr.f32.mxu0 %v5757_v34  ;;  %3010 = vmatprep.mubr.f32.mxu1 %v5757_v34 }
 0x15b   : > { %2754 = vmatmul.mubr.f32.gmra.mrb[86].mxu0 %v5789_v6  ;;  %3011 = vmatmul.mubr.f32.gmra.mrb[86].mxu1 %v5789_v6  ;;  %v4107_v6 = vld [vmem:[%s8313_s1 + $0x10] sm:$0xff] }
 0x15c   : > { %2759 = vmatprep.mubr.f32.mxu0 %v5815_v55  ;;  %3016 = vmatprep.mubr.f32.mxu1 %v5815_v55 }
 0x15f   : > { %2760 = vmatmul.mubr.f32.gmra.mrb[88].mxu0 %v5847_v7  ;;  %3017 = vmatmul.mubr.f32.gmra.mrb[88].mxu1 %v5847_v7 }
 0x160   : > { %2765 = vmatprep.mubr.f32.mxu0 %v5869_v31  ;;  %3022 = vmatprep.mubr.f32.mxu1 %v5869_v31 }
 0x163   : > { %2766 = vmatmul.mubr.f32.gmra.mrb[90].mxu0 %v5897_v35  ;;  %3023 = vmatmul.mubr.f32.gmra.mrb[90].mxu1 %v5897_v35 }
 0x164   : > { %2771 = vmatprep.mubr.f32.mxu0 %v5913_v41  ;;  %3028 = vmatprep.mubr.f32.mxu1 %v5913_v41 }
 0x167   : > { %2772 = vmatmul.mubr.f32.gmra.mrb[92].mxu0 %v5937_v32  ;;  %3029 = vmatmul.mubr.f32.gmra.mrb[92].mxu1 %v5937_v32 }
 0x168   : > { %2777 = vmatprep.mubr.f32.mxu0 %v5946_v2  ;;  %3034 = vmatprep.mubr.f32.mxu1 %v5946_v2 }
 0x16b   : > { %2778 = vmatmul.mubr.f32.gmra.mrb[94].mxu0 %v5955_v16  ;;  %3035 = vmatmul.mubr.f32.gmra.mrb[94].mxu1 %v5955_v16  ;;  %v4108_v16 = vld [vmem:[%s8313_s1 + $0x8] sm:$0xff] }
 0x16c   : > { %2783 = vmatprep.mubr.f32.mxu0 %v5961_v9  ;;  %3040 = vmatprep.mubr.f32.mxu1 %v5961_v9 }
 0x16f   : > { %2784 = vmatmul.mubr.f32.gmra.mrb[96].mxu0 %v5969_v42  ;;  %3041 = vmatmul.mubr.f32.gmra.mrb[96].mxu1 %v5969_v42 }
 0x170   : > { %2789 = vmatprep.mubr.f32.mxu0 %v5975_v26  ;;  %3046 = vmatprep.mubr.f32.mxu1 %v5975_v26 }
 0x173   : > { %2790 = vmatmul.mubr.f32.gmra.mrb[98].mxu0 %v5983_v12  ;;  %3047 = vmatmul.mubr.f32.gmra.mrb[98].mxu1 %v5983_v12 }
 0x174   : > { %2795 = vmatprep.mubr.f32.mxu0 %v5989_v25  ;;  %3052 = vmatprep.mubr.f32.mxu1 %v5989_v25 }
 0x177   : > { %2796 = vmatmul.mubr.f32.gmra.mrb[100].mxu0 %v5997_v61  ;;  %3053 = vmatmul.mubr.f32.gmra.mrb[100].mxu1 %v5997_v61  ;;  %v830_v11 = vpop.f32.mrb[0].mxu0 }
 0x178   : > { %2801 = vmatprep.mubr.f32.mxu0 %v6003_v59  ;;  %3058 = vmatprep.mubr.f32.mxu1 %v6003_v59  ;;  %vm1406_vm0 = vcmp.lt.f32.partialorder %v830_v11, 1.0  ;;  %v2367_v40 = vsub.f32 1.0, %v830_v11  ;;  %v1087_v51 = vpop.f32.mrb[0].mxu1  ;;  %v832_v17 = vpop.f32.mrb[1].mxu0 }
 0x179   : > { %vm1408_vm1 = vcmp.lt.f32.partialorder %v1087_v51, 1.0  ;;  %v2369_v63 = vsub.f32 1.0, %v1087_v51  ;;  %vm1407_vm2 = vcmp.lt.f32.partialorder %v832_v17, 1.0  ;;  %v1089_v56 = vpop.f32.mrb[1].mxu1  ;;  %v2368_v14 = vsub.f32 1.0, %v832_v17 }
 0x17a   : > { %vm1409_vm3 = vcmp.lt.f32.partialorder %v1089_v56, 1.0  ;;  %v3544_v1 = vsel %vm1406_vm0, 1.0, %v8478_v57  ;;  %v3546_v23 = vsel %vm1408_vm1, 1.0, %v8478_v57  ;;  %v3545_v47 = vsel %vm1407_vm2, 1.0, %v8478_v57 }
 0x17b   : > { %2802 = vmatmul.mubr.f32.gmra.mrb[102].mxu0 %v6011_v24  ;;  %3059 = vmatmul.mubr.f32.gmra.mrb[102].mxu1 %v6011_v24  ;;  %v3547_v22 = vsel %vm1409_vm3, 1.0, %v8478_v57  ;;  %v6283_v45 = vpop.f32.mrb[2].mxu0  ;;  %v2370_v48 = vsub.f32 1.0, %v1089_v56  ;;  %v6294_v34 = vmul.f32 %v4106_v54, %v2367_v40  ;;  %v6299_v55 = vmul.f32 %v4107_v6, %v2369_v63 }
 0x17c   : > { %2807 = vmatprep.mubr.f32.mxu0 %v6017_v27  ;;  %3064 = vmatprep.mubr.f32.mxu1 %v6017_v27  ;;  %vm1410_vm4 = vcmp.lt.f32.partialorder %v6283_v45, 1.0  ;;  %v6286_v3 = vpop.f32.mrb[2].mxu1  ;;  %v6288_v13 = vpop.f32.mrb[3].mxu0  ;;  %v6315_v9 = vmul.f32 %v4108_v16, %v2368_v14 }
 0x17d   : > { %v3548_v7 = vsel %vm1410_vm4, 1.0, %v8478_v57  ;;  %vm1412_vm5 = vcmp.lt.f32.partialorder %v6286_v3, 1.0  ;;  %vm1411_vm6 = vcmp.lt.f32.partialorder %v6288_v13, 1.0  ;;  %v6305_v35 = vpop.f32.mrb[3].mxu1  ;;  %v6343_v38 = vmul.f32 %v4109_v21, %v2370_v48 }
 0x17e   : > { %v1790_v41 = vadd.f32 %v3548_v7, %v3544_v1  ;;  %v3550_v32 = vsel %vm1412_vm5, 1.0, %v8478_v57  ;;  %v3549_v2 = vsel %vm1411_vm6, 1.0, %v8478_v57  ;;  %vm1413_vm7 = vcmp.lt.f32.partialorder %v6305_v35, 1.0 }
 0x17f   : > { %2808 = vmatmul.mubr.f32.gmra.mrb[104].mxu0 %v6025_v60  ;;  %3065 = vmatmul.mubr.f32.gmra.mrb[104].mxu1 %v6025_v60  ;;  %v1864_v42 = vadd.f32 %v3550_v32, %v3546_v23  ;;  %v1827_v12 = vadd.f32 %v3549_v2, %v3545_v47  ;;  %v6319_v25 = vpop.f32.mrb[4].mxu0  ;;  %v3551_v59 = vsel %vm1413_vm7, 1.0, %v8478_v57 }
 0x180   : > { %2813 = vmatprep.mubr.f32.mxu0 %v6031_v0  ;;  %3070 = vmatprep.mubr.f32.mxu1 %v6031_v0  ;;  %vm1414_vm8 = vcmp.lt.f32.partialorder %v6319_v25, 1.0  ;;  %v6325_v27 = vpop.f32.mrb[4].mxu1  ;;  %v6327_v60 = vpop.f32.mrb[5].mxu0  ;;  %v1901_v0 = vadd.f32 %v3551_v59, %v3547_v22 }
 0x181   : > { %vm1416_vm9 = vcmp.lt.f32.partialorder %v6325_v27, 1.0  ;;  %vm1415_vm10 = vcmp.lt.f32.partialorder %v6327_v60, 1.0 }
 0x182   : > { %v3554_v49 = vsel %vm1416_vm9, 1.0, %v8478_v57 }
 0x183   : > { %2814 = vmatmul.mubr.f32.gmra.mrb[106].mxu0 %v6039_v50  ;;  %3071 = vmatmul.mubr.f32.gmra.mrb[106].mxu1 %v6039_v50  ;;  %v3552_v50 = vsel %vm1414_vm8, 1.0, %v8478_v57  ;;  %v1865_v30 = vadd.f32 %v3554_v49, %v1864_v42  ;;  %v6348_v11 = vpop.f32.mrb[6].mxu0 }
 0x184   : > { %2819 = vmatprep.mubr.f32.mxu0 %v6045_v8  ;;  %3076 = vmatprep.mubr.f32.mxu1 %v6045_v8  ;;  %vm1418_vm12 = vcmp.lt.f32.partialorder %v6348_v11, 1.0  ;;  %v6355_v63 = vpop.f32.mrb[7].mxu0 }
 0x185   : > { %v3556_v1 = vsel %vm1418_vm12, 1.0, %v8478_v57  ;;  %vm1419_vm14 = vcmp.lt.f32.partialorder %v6355_v63, 1.0 }
 0x186   : > { %v3557_v7 = vsel %vm1419_vm14, 1.0, %v8478_v57 }
 0x187   : > { %2820 = vmatmul.mubr.f32.gmra.mrb[108].mxu0 %v6053_v39  ;;  %3077 = vmatmul.mubr.f32.gmra.mrb[108].mxu1 %v6053_v39  ;;  %v6333_v39 = vpop.f32.mrb[5].mxu1 }
 0x188   : > { %2825 = vmatprep.mubr.f32.mxu0 %v6059_v28  ;;  %3082 = vmatprep.mubr.f32.mxu1 %v6059_v28  ;;  %v1791_v28 = vadd.f32 %v3552_v50, %v1790_v41  ;;  %vm1417_vm11 = vcmp.lt.f32.partialorder %v6333_v39, 1.0  ;;  %v6353_v17 = vpop.f32.mrb[6].mxu1  ;;  %v6372_v41 = vpop.f32.mrb[8].mxu0 }
 0x189   : > { %vm1420_vm13 = vcmp.lt.f32.partialorder %v6353_v17, 1.0  ;;  %v6361_v23 = vpop.f32.mrb[7].mxu1  ;;  %vm1422_vm0 = vcmp.lt.f32.partialorder %v6372_v41, 1.0  ;;  %v6379_v42 = vpop.f32.mrb[9].mxu0 }
 0x18a   : > { %v1792_v47 = vadd.f32 %v3556_v1, %v1791_v28  ;;  %v3558_v48 = vsel %vm1420_vm13, 1.0, %v8478_v57  ;;  %vm1421_vm15 = vcmp.lt.f32.partialorder %v6361_v23, 1.0  ;;  %v6377_v16 = vpop.f32.mrb[8].mxu1  ;;  %v3560_v59 = vsel %vm1422_vm0, 1.0, %v8478_v57 }
 0x18b   : > { %2826 = vmatmul.mubr.f32.gmra.mrb[110].mxu0 %v6067_v44  ;;  %3083 = vmatmul.mubr.f32.gmra.mrb[110].mxu1 %v6067_v44  ;;  %v3553_v44 = vsel %vm1415_vm10, 1.0, %v8478_v57  ;;  %v1866_v54 = vadd.f32 %v3558_v48, %v1865_v30  ;;  %v3559_v2 = vsel %vm1421_vm15, 1.0, %v8478_v57  ;;  %vm1424_vm1 = vcmp.lt.f32.partialorder %v6377_v16, 1.0 }
 0x18c   : > { %2831 = vmatprep.mubr.f32.mxu0 %v6073_v43  ;;  %3088 = vmatprep.mubr.f32.mxu1 %v6073_v43  ;;  %v1828_v40 = vadd.f32 %v3553_v44, %v1827_v12  ;;  %v3555_v43 = vsel %vm1417_vm11, 1.0, %v8478_v57  ;;  %v1793_v50 = vadd.f32 %v3560_v59, %v1792_v47  ;;  %v3562_v49 = vsel %vm1424_vm1, 1.0, %v8478_v57 }
 0x18d   : > { %v1902_v56 = vadd.f32 %v3555_v43, %v1901_v0  ;;  %v6385_v0 = vpop.f32.mrb[9].mxu1  ;;  %vm1423_vm2 = vcmp.lt.f32.partialorder %v6379_v42, 1.0  ;;  %v1867_v21 = vadd.f32 %v3562_v49, %v1866_v54 }
 0x18e   : > { %v3561_v44 = vsel %vm1423_vm2, 1.0, %v8478_v57  ;;  %vm1425_vm3 = vcmp.lt.f32.partialorder %v6385_v0, 1.0  ;;  %v6401_v1 = vpop.f32.mrb[10].mxu1 }
 0x18f   : > { %2832 = vmatmul.mubr.f32.gmra.mrb[112].mxu0 %v6081_v62  ;;  %3089 = vmatmul.mubr.f32.gmra.mrb[112].mxu1 %v6081_v62  ;;  %v1829_v62 = vadd.f32 %v3557_v7, %v1828_v40  ;;  %v6396_v40 = vpop.f32.mrb[10].mxu0  ;;  %vm1428_vm5 = vcmp.lt.f32.partialorder %v6401_v1, 1.0  ;;  %v6409_v7 = vpop.f32.mrb[11].mxu1 }
 0x190   : > { %2837 = vmatprep.mubr.f32.mxu0 %v6087_v5  ;;  %3094 = vmatprep.mubr.f32.mxu1 %v6087_v5  ;;  %v1903_v5 = vadd.f32 %v3559_v2, %v1902_v56  ;;  %v3563_v56 = vsel %vm1425_vm3, 1.0, %v8478_v57  ;;  %vm1426_vm4 = vcmp.lt.f32.partialorder %v6396_v40, 1.0  ;;  %v6403_v47 = vpop.f32.mrb[11].mxu0  ;;  %v3566_v59 = vsel %vm1428_vm5, 1.0, %v8478_v57  ;;  %v6425_v2 = vpop.f32.mrb[12].mxu1 }
 0x191   : > { %v3564_v54 = vsel %vm1426_vm4, 1.0, %v8478_v57  ;;  %vm1427_vm6 = vcmp.lt.f32.partialorder %v6403_v47, 1.0  ;;  %vm1429_vm7 = vcmp.lt.f32.partialorder %v6409_v7, 1.0  ;;  %vm1432_vm9 = vcmp.lt.f32.partialorder %v6425_v2, 1.0 }
 0x192   : > { %v3570_v49 = vsel %vm1432_vm9, 1.0, %v8478_v57 }
 0x193   : > { %2838 = vmatmul.mubr.f32.gmra.mrb[114].mxu0 %v6095_v15  ;;  %3095 = vmatmul.mubr.f32.gmra.mrb[114].mxu1 %v6095_v15  ;;  %v1830_v15 = vadd.f32 %v3561_v44, %v1829_v62  ;;  %v1794_v62 = vadd.f32 %v3564_v54, %v1793_v50  ;;  %v3565_v44 = vsel %vm1427_vm6, 1.0, %v8478_v57  ;;  %v3567_v54 = vsel %vm1429_vm7, 1.0, %v8478_v57 }
 0x194   : > { %2843 = vmatprep.mubr.f32.mxu0 %v6101_v10  ;;  %3100 = vmatprep.mubr.f32.mxu1 %v6101_v10  ;;  %v1904_v10 = vadd.f32 %v3563_v56, %v1903_v5  ;;  %v1868_v5 = vadd.f32 %v3566_v59, %v1867_v21  ;;  %v6420_v56 = vpop.f32.mrb[12].mxu0 }
 0x195   : > { %vm1430_vm8 = vcmp.lt.f32.partialorder %v6420_v56, 1.0  ;;  %v6427_v48 = vpop.f32.mrb[13].mxu0 }
 0x196   : > { %v3568_v59 = vsel %vm1430_vm8, 1.0, %v8478_v57  ;;  %vm1431_vm10 = vcmp.lt.f32.partialorder %v6427_v48, 1.0  ;;  %v6444_v43 = vpop.f32.mrb[14].mxu0 }
 0x197   : > { %2844 = vmatmul.mubr.f32.gmra.mrb[116].mxu0 %v6109_v53  ;;  %3101 = vmatmul.mubr.f32.gmra.mrb[116].mxu1 %v6109_v53  ;;  %v1831_v53 = vadd.f32 %v3565_v44, %v1830_v15  ;;  %v6433_v15 = vpop.f32.mrb[13].mxu1  ;;  %v1795_v44 = vadd.f32 %v3568_v59, %v1794_v62  ;;  %v3569_v21 = vsel %vm1431_vm10, 1.0, %v8478_v57  ;;  %vm1434_vm12 = vcmp.lt.f32.partialorder %v6444_v43, 1.0  ;;  %v6451_v30 = vpop.f32.mrb[15].mxu0 }
 0x198   : > { %2849 = vmatprep.mubr.f32.mxu0 %v6115_v36  ;;  %3106 = vmatprep.mubr.f32.mxu1 %v6115_v36  ;;  %v1905_v36 = vadd.f32 %v3567_v54, %v1904_v10  ;;  %v1869_v10 = vadd.f32 %v3570_v49, %v1868_v5  ;;  %vm1433_vm11 = vcmp.lt.f32.partialorder %v6433_v15, 1.0  ;;  %v6449_v50 = vpop.f32.mrb[14].mxu1  ;;  %v3572_v49 = vsel %vm1434_vm12, 1.0, %v8478_v57  ;;  %v6468_v28 = vpop.f32.mrb[16].mxu0 }
 0x199   : > { %v3571_v59 = vsel %vm1433_vm11, 1.0, %v8478_v57  ;;  %vm1436_vm13 = vcmp.lt.f32.partialorder %v6449_v50, 1.0  ;;  %vm1435_vm14 = vcmp.lt.f32.partialorder %v6451_v30, 1.0  ;;  %vm1438_vm0 = vcmp.lt.f32.partialorder %v6468_v28, 1.0  ;;  %v6475_v12 = vpop.f32.mrb[17].mxu0 }
 0x19a   : > { %v3574_v54 = vsel %vm1436_vm13, 1.0, %v8478_v57  ;;  %v3573_v5 = vsel %vm1435_vm14, 1.0, %v8478_v57  ;;  %8645 = vst [vmem:[#allocation3_spill] sm:$0xff] %v6475_v12  ;;  %vm1439_vm2 = vcmp.lt.f32.partialorder %v6475_v12, 1.0 }
 0x19b   : > { %2850 = vmatmul.mubr.f32.gmra.mrb[118].mxu0 %v6123_v37  ;;  %3107 = vmatmul.mubr.f32.gmra.mrb[118].mxu1 %v6123_v37  ;;  %v1832_v37 = vadd.f32 %v3569_v21, %v1831_v53  ;;  %v6457_v53 = vpop.f32.mrb[15].mxu1  ;;  %v1796_v21 = vadd.f32 %v3572_v49, %v1795_v44 }
 0x19c   : > { %2855 = vmatprep.mubr.f32.mxu0 %v6129_v29  ;;  %3112 = vmatprep.mubr.f32.mxu1 %v6129_v29  ;;  %v1906_v29 = vadd.f32 %v3571_v59, %v1905_v36  ;;  %v1870_v36 = vadd.f32 %v3574_v54, %v1869_v10  ;;  %vm1437_vm15 = vcmp.lt.f32.partialorder %v6457_v53, 1.0  ;;  %v6473_v62 = vpop.f32.mrb[16].mxu1  ;;  %v3576_v54 = vsel %vm1438_vm0, 1.0, %v8478_v57 }
 0x19d   : > { %v3575_v49 = vsel %vm1437_vm15, 1.0, %v8478_v57  ;;  %vm1440_vm1 = vcmp.lt.f32.partialorder %v6473_v62, 1.0  ;;  %v3577_v10 = vsel %vm1439_vm2, 1.0, %v8478_v57  ;;  %v6492_v32 = vpop.f32.mrb[18].mxu0 }
 0x19e   : > { %v3578_v59 = vsel %vm1440_vm1, 1.0, %v8478_v57  ;;  %8647 = vst [vmem:[#allocation5_spill] sm:$0xff] %v6492_v32  ;;  %vm1442_vm4 = vcmp.lt.f32.partialorder %v6492_v32, 1.0  ;;  %v6499_v6 = vpop.f32.mrb[19].mxu0 }
 0x19f   : > { %2856 = vmatmul.mubr.f32.gmra.mrb[120].mxu0 %v6137_v58  ;;  %3113 = vmatmul.mubr.f32.gmra.mrb[120].mxu1 %v6137_v58  ;;  %v1833_v58 = vadd.f32 %v3573_v5, %v1832_v37  ;;  %v6481_v37 = vpop.f32.mrb[17].mxu1  ;;  %v1797_v5 = vadd.f32 %v3576_v54, %v1796_v21  ;;  %8649 = vst [vmem:[#allocation7_spill] sm:$0xff] %v6499_v6  ;;  %vm1443_vm6 = vcmp.lt.f32.partialorder %v6499_v6, 1.0 }
 0x1a0   : > { %2861 = vmatprep.mubr.f32.mxu0 %v6143_v33  ;;  %3118 = vmatprep.mubr.f32.mxu1 %v6143_v33  ;;  %v1907_v33 = vadd.f32 %v3575_v49, %v1906_v29  ;;  %8646 = vst [vmem:[#allocation4_spill] sm:$0xff] %v6481_v37  ;;  %v1871_v29 = vadd.f32 %v3578_v59, %v1870_v36  ;;  %vm1441_vm3 = vcmp.lt.f32.partialorder %v6481_v37, 1.0  ;;  %v6497_v44 = vpop.f32.mrb[18].mxu1  ;;  %v3580_v59 = vsel %vm1442_vm4, 1.0, %v8478_v57 }
 0x1a1   : > { %v3579_v54 = vsel %vm1441_vm3, 1.0, %v8478_v57  ;;  %8648 = vst [vmem:[#allocation6_spill] sm:$0xff] %v6497_v44  ;;  %vm1444_vm5 = vcmp.lt.f32.partialorder %v6497_v44, 1.0  ;;  %v3581_v36 = vsel %vm1443_vm6, 1.0, %v8478_v57 }
 0x1a2   : > { %v3582_v49 = vsel %vm1444_vm5, 1.0, %v8478_v57 }
 0x1a3   : > { %2862 = vmatmul.mubr.f32.gmra.mrb[122].mxu0 %v6151_v52  ;;  %3119 = vmatmul.mubr.f32.gmra.mrb[122].mxu1 %v6151_v52  ;;  %v1834_v52 = vadd.f32 %v3577_v10, %v1833_v58  ;;  %v6505_v58 = vpop.f32.mrb[19].mxu1  ;;  %v1798_v10 = vadd.f32 %v3580_v59, %v1797_v5 }
 0x1a4   : > { %2867 = vmatprep.mubr.f32.mxu0 %v6157_v18  ;;  %3124 = vmatprep.mubr.f32.mxu1 %v6157_v18  ;;  %v1908_v18 = vadd.f32 %v3579_v54, %v1907_v33  ;;  %8650 = vst [vmem:[#allocation8_spill] sm:$0xff] %v6505_v58  ;;  %v1872_v33 = vadd.f32 %v3582_v49, %v1871_v29  ;;  %vm1445_vm7 = vcmp.lt.f32.partialorder %v6505_v58, 1.0  ;;  %v6516_v22 = vpop.f32.mrb[20].mxu0  ;;  %v6521_v21 = vpop.f32.mrb[20].mxu1 }
 0x1a5   : > { %8651 = vst [vmem:[#allocation9_spill] sm:$0xff] %v6516_v22  ;;  %v3583_v59 = vsel %vm1445_vm7, 1.0, %v8478_v57  ;;  %vm1446_vm8 = vcmp.lt.f32.partialorder %v6516_v22, 1.0  ;;  %8652 = vst [vmem:[#allocation10_spill] sm:$0xff] %v6521_v21  ;;  %v6523_v14 = vpop.f32.mrb[21].mxu0  ;;  %vm1448_vm9 = vcmp.lt.f32.partialorder %v6521_v21, 1.0 }
 0x1a6   : > { %8653 = vst [vmem:[#allocation11_spill] sm:$0xff] %v6523_v14  ;;  %v3584_v49 = vsel %vm1446_vm8, 1.0, %v8478_v57  ;;  %v3586_v54 = vsel %vm1448_vm9, 1.0, %v8478_v57  ;;  %vm1447_vm10 = vcmp.lt.f32.partialorder %v6523_v14, 1.0 }
 0x1a7   : > { %2868 = vmatmul.mubr.f32.gmra.mrb[124].mxu0 %v6165_v19  ;;  %3125 = vmatmul.mubr.f32.gmra.mrb[124].mxu1 %v6165_v19  ;;  %v1835_v19 = vadd.f32 %v3581_v36, %v1834_v52  ;;  %v6529_v52 = vpop.f32.mrb[21].mxu1  ;;  %v1799_v36 = vadd.f32 %v3584_v49, %v1798_v10  ;;  %v1873_v51 = vadd.f32 %v3586_v54, %v1872_v33 }
 0x1a8   : > { %2873 = vmatprep.mubr.f32.mxu0 %v6171_v46  ;;  %3130 = vmatprep.mubr.f32.mxu1 %v6171_v46  ;;  %v1909_v46 = vadd.f32 %v3583_v59, %v1908_v18  ;;  %8654 = vst [vmem:[#allocation12_spill] sm:$0xff] %v6529_v52  ;;  %v3585_v59 = vsel %vm1447_vm10, 1.0, %v8478_v57  ;;  %vm1449_vm11 = vcmp.lt.f32.partialorder %v6529_v52, 1.0  ;;  %v8482_v52 = vlaneseq }
 0x1a9   : > { %v6538_v29 = vpop.f32.mrb[22].mxu0  ;;  %v1836_v20 = vadd.f32 %v3585_v59, %v1835_v19  ;;  %v6543_v10 = vpop.f32.mrb[22].mxu1 }
 0x1aa   : > { %8655 = vst [vmem:[#allocation13_spill] sm:$0xff] %v6538_v29  ;;  %vm1450_vm12 = vcmp.lt.f32.partialorder %v6538_v29, 1.0  ;;  %8656 = vst [vmem:[#allocation14_spill] sm:$0xff] %v6543_v10  ;;  %v6545_v49 = vpop.f32.mrb[23].mxu0  ;;  %vm1452_vm13 = vcmp.lt.f32.partialorder %v6543_v10, 1.0  ;;  %v6550_v5 = vpop.f32.mrb[23].mxu1 }
 0x1ab   : > { %2874 = vmatmul.mubr.f32.gmra.mrb[126].mxu0 %v6179_v4  ;;  %3131 = vmatmul.mubr.f32.gmra.mrb[126].mxu1 %v6179_v4  ;;  %v3587_v4 = vsel %vm1449_vm11, 1.0, %v8478_v57  ;;  %8657 = vst [vmem:[#allocation15_spill] sm:$0xff] %v6545_v49  ;;  %v3588_v18 = vsel %vm1450_vm12, 1.0, %v8478_v57  ;;  %8658 = vst [vmem:[#allocation16_spill] sm:$0xff] %v6550_v5  ;;  %v3590_v8 = vsel %vm1452_vm13, 1.0, %v8478_v57  ;;  %vm1451_vm14 = vcmp.lt.f32.partialorder %v6545_v49, 1.0 }
 0x1ac   : > { %v1910_v33 = vadd.f32 %v3587_v4, %v1909_v46  ;;  %v1800_v19 = vadd.f32 %v3588_v18, %v1799_v36  ;;  %v1874_v24 = vadd.f32 %v3590_v8, %v1873_v51  ;;  %v3589_v46 = vsel %vm1451_vm14, 1.0, %v8478_v57 }
 0x1ad   : > { %vm1453_vm15 = vcmp.lt.f32.partialorder %v6550_v5, 1.0  ;;  %v1837_v54 = vadd.f32 %v3589_v46, %v1836_v20 }
 0x1ae   : > { %v3591_v36 = vsel %vm1453_vm15, 1.0, %v8478_v57 }
 0x1af   : > { %v1911_v8 = vadd.f32 %v3591_v36, %v1910_v33 }
 0x1b0   : > { %v6558_v4 = vpop.f32.mrb[24].mxu0  ;;  %v6563_v18 = vpop.f32.mrb[24].mxu1 }
 0x1b1   : > { %8659 = vst [vmem:[#allocation17_spill] sm:$0xff] %v6558_v4  ;;  %vm1454_vm0 = vcmp.lt.f32.partialorder %v6558_v4, 1.0  ;;  %8660 = vst [vmem:[#allocation18_spill] sm:$0xff] %v6563_v18  ;;  %v6565_v59 = vpop.f32.mrb[25].mxu0  ;;  %vm1456_vm1 = vcmp.lt.f32.partialorder %v6563_v18, 1.0  ;;  %v6570_v31 = vpop.f32.mrb[25].mxu1 }
 0x1b2   : > { %8661 = vst [vmem:[#allocation19_spill] sm:$0xff] %v6565_v59  ;;  %v3592_v61 = vsel %vm1454_vm0, 1.0, %v8478_v57  ;;  %8662 = vst [vmem:[#allocation20_spill] sm:$0xff] %v6570_v31  ;;  %v3594_v26 = vsel %vm1456_vm1, 1.0, %v8478_v57  ;;  %vm1455_vm2 = vcmp.lt.f32.partialorder %v6565_v59, 1.0  ;;  %vm1457_vm3 = vcmp.lt.f32.partialorder %v6570_v31, 1.0 }
 0x1b3   : > { %v1801_v20 = vadd.f32 %v3592_v61, %v1800_v19  ;;  %v1875_v49 = vadd.f32 %v3594_v26, %v1874_v24  ;;  %v3593_v33 = vsel %vm1455_vm2, 1.0, %v8478_v57  ;;  %v3595_v61 = vsel %vm1457_vm3, 1.0, %v8478_v57 }
 0x1b4   : > { %v1838_v51 = vadd.f32 %v3593_v33, %v1837_v54  ;;  %v1912_v26 = vadd.f32 %v3595_v61, %v1911_v8 }
 0x1b5   : > { %v6578_v36 = vpop.f32.mrb[26].mxu0  ;;  %v6583_v19 = vpop.f32.mrb[26].mxu1 }
 0x1b6   : > { %8663 = vst [vmem:[#allocation21_spill] sm:$0xff] %v6578_v36  ;;  %vm1458_vm4 = vcmp.lt.f32.partialorder %v6578_v36, 1.0  ;;  %8664 = vst [vmem:[#allocation22_spill] sm:$0xff] %v6583_v19  ;;  %v6585_v46 = vpop.f32.mrb[27].mxu0  ;;  %vm1460_vm5 = vcmp.lt.f32.partialorder %v6583_v19, 1.0  ;;  %v6590_v18 = vpop.f32.mrb[27].mxu1 }
 0x1b7   : > { %8665 = vst [vmem:[#allocation23_spill] sm:$0xff] %v6585_v46  ;;  %v3596_v10 = vsel %vm1458_vm4, 1.0, %v8478_v57  ;;  %8666 = vst [vmem:[#allocation24_spill] sm:$0xff] %v6590_v18  ;;  %v3598_v5 = vsel %vm1460_vm5, 1.0, %v8478_v57  ;;  %vm1459_vm6 = vcmp.lt.f32.partialorder %v6585_v46, 1.0  ;;  %vm1461_vm7 = vcmp.lt.f32.partialorder %v6590_v18, 1.0 }
 0x1b8   : > { %v1802_v54 = vadd.f32 %v3596_v10, %v1801_v20  ;;  %v1876_v59 = vadd.f32 %v3598_v5, %v1875_v49  ;;  %v3597_v8 = vsel %vm1459_vm6, 1.0, %v8478_v57  ;;  %v3599_v10 = vsel %vm1461_vm7, 1.0, %v8478_v57 }
 0x1b9   : > { %v1839_v24 = vadd.f32 %v3597_v8, %v1838_v51  ;;  %v1913_v5 = vadd.f32 %v3599_v10, %v1912_v26 }
 0x1ba   : > { %v6598_v61 = vpop.f32.mrb[28].mxu0  ;;  %v6603_v20 = vpop.f32.mrb[28].mxu1 }
 0x1bb   : > { %8667 = vst [vmem:[#allocation25_spill] sm:$0xff] %v6598_v61  ;;  %vm1462_vm8 = vcmp.lt.f32.partialorder %v6598_v61, 1.0  ;;  %8668 = vst [vmem:[#allocation26_spill] sm:$0xff] %v6603_v20  ;;  %v6605_v33 = vpop.f32.mrb[29].mxu0  ;;  %vm1464_vm9 = vcmp.lt.f32.partialorder %v6603_v20, 1.0  ;;  %v6610_v19 = vpop.f32.mrb[29].mxu1 }
 0x1bc   : > { %8669 = vst [vmem:[#allocation27_spill] sm:$0xff] %v6605_v33  ;;  %v3600_v4 = vsel %vm1462_vm8, 1.0, %v8478_v57  ;;  %8670 = vst [vmem:[#allocation28_spill] sm:$0xff] %v6610_v19  ;;  %v3602_v31 = vsel %vm1464_vm9, 1.0, %v8478_v57  ;;  %vm1463_vm10 = vcmp.lt.f32.partialorder %v6605_v33, 1.0  ;;  %vm1465_vm11 = vcmp.lt.f32.partialorder %v6610_v19, 1.0 }
 0x1bd   : > { %v1803_v51 = vadd.f32 %v3600_v4, %v1802_v54  ;;  %v1877_v46 = vadd.f32 %v3602_v31, %v1876_v59  ;;  %v3601_v26 = vsel %vm1463_vm10, 1.0, %v8478_v57  ;;  %v3603_v4 = vsel %vm1465_vm11, 1.0, %v8478_v57 }
 0x1be   : > { %v6618_v10 = vpop.f32.mrb[30].mxu0  ;;  %v1840_v49 = vadd.f32 %v3601_v26, %v1839_v24  ;;  %v6623_v54 = vpop.f32.mrb[30].mxu1  ;;  %v1914_v31 = vadd.f32 %v3603_v4, %v1913_v5 }
 0x1bf   : > { %8671 = vst [vmem:[#allocation29_spill] sm:$0xff] %v6618_v10  ;;  %vm1466_vm12 = vcmp.lt.f32.partialorder %v6618_v10, 1.0  ;;  %8672 = vst [vmem:[#allocation30_spill] sm:$0xff] %v6623_v54  ;;  %v6625_v8 = vpop.f32.mrb[31].mxu0  ;;  %vm1468_vm13 = vcmp.lt.f32.partialorder %v6623_v54, 1.0  ;;  %v6630_v20 = vpop.f32.mrb[31].mxu1 }
 0x1c0   : > { %8673 = vst [vmem:[#allocation31_spill] sm:$0xff] %v6625_v8  ;;  %v3604_v36 = vsel %vm1466_vm12, 1.0, %v8478_v57  ;;  %8674 = vst [vmem:[#allocation32_spill] sm:$0xff] %v6630_v20  ;;  %v3606_v18 = vsel %vm1468_vm13, 1.0, %v8478_v57  ;;  %vm1467_vm14 = vcmp.lt.f32.partialorder %v6625_v8, 1.0  ;;  %vm1469_vm15 = vcmp.lt.f32.partialorder %v6630_v20, 1.0 }
 0x1c1   : > { %v1804_v24 = vadd.f32 %v3604_v36, %v1803_v51  ;;  %v1878_v33 = vadd.f32 %v3606_v18, %v1877_v46  ;;  %v3605_v5 = vsel %vm1467_vm14, 1.0, %v8478_v57  ;;  %v3607_v36 = vsel %vm1469_vm15, 1.0, %v8478_v57 }
 0x1c2   : > { %v6638_v4 = vpop.f32.mrb[32].mxu0  ;;  %v1841_v59 = vadd.f32 %v3605_v5, %v1840_v49  ;;  %v6643_v51 = vpop.f32.mrb[32].mxu1  ;;  %v1915_v18 = vadd.f32 %v3607_v36, %v1914_v31 }
 0x1c3   : > { %8675 = vst [vmem:[#allocation33_spill] sm:$0xff] %v6638_v4  ;;  %vm1470_vm0 = vcmp.lt.f32.partialorder %v6638_v4, 1.0  ;;  %8676 = vst [vmem:[#allocation34_spill] sm:$0xff] %v6643_v51  ;;  %v6645_v26 = vpop.f32.mrb[33].mxu0  ;;  %vm1472_vm1 = vcmp.lt.f32.partialorder %v6643_v51, 1.0  ;;  %v6650_v54 = vpop.f32.mrb[33].mxu1 }
 0x1c4   : > { %8677 = vst [vmem:[#allocation35_spill] sm:$0xff] %v6645_v26  ;;  %v3608_v61 = vsel %vm1470_vm0, 1.0, %v8478_v57  ;;  %8678 = vst [vmem:[#allocation36_spill] sm:$0xff] %v6650_v54  ;;  %v3610_v19 = vsel %vm1472_vm1, 1.0, %v8478_v57  ;;  %vm1471_vm2 = vcmp.lt.f32.partialorder %v6645_v26, 1.0  ;;  %vm1473_vm3 = vcmp.lt.f32.partialorder %v6650_v54, 1.0 }
 0x1c5   : > { %v1805_v49 = vadd.f32 %v3608_v61, %v1804_v24  ;;  %v1879_v8 = vadd.f32 %v3610_v19, %v1878_v33  ;;  %v3609_v31 = vsel %vm1471_vm2, 1.0, %v8478_v57  ;;  %v3611_v61 = vsel %vm1473_vm3, 1.0, %v8478_v57 }
 0x1c6   : > { %v6658_v36 = vpop.f32.mrb[34].mxu0  ;;  %v1842_v46 = vadd.f32 %v3609_v31, %v1841_v59  ;;  %v6663_v24 = vpop.f32.mrb[34].mxu1  ;;  %v1916_v19 = vadd.f32 %v3611_v61, %v1915_v18 }
 0x1c7   : > { %8679 = vst [vmem:[#allocation37_spill] sm:$0xff] %v6658_v36  ;;  %vm1474_vm4 = vcmp.lt.f32.partialorder %v6658_v36, 1.0  ;;  %8680 = vst [vmem:[#allocation38_spill] sm:$0xff] %v6663_v24  ;;  %v6665_v5 = vpop.f32.mrb[35].mxu0  ;;  %vm1476_vm5 = vcmp.lt.f32.partialorder %v6663_v24, 1.0  ;;  %v6670_v51 = vpop.f32.mrb[35].mxu1 }
 0x1c8   : > { %8681 = vst [vmem:[#allocation39_spill] sm:$0xff] %v6665_v5  ;;  %v3612_v10 = vsel %vm1474_vm4, 1.0, %v8478_v57  ;;  %8682 = vst [vmem:[#allocation40_spill] sm:$0xff] %v6670_v51  ;;  %v3614_v20 = vsel %vm1476_vm5, 1.0, %v8478_v57  ;;  %vm1475_vm6 = vcmp.lt.f32.partialorder %v6665_v5, 1.0  ;;  %vm1477_vm7 = vcmp.lt.f32.partialorder %v6670_v51, 1.0 }
 0x1c9   : > { %v1806_v59 = vadd.f32 %v3612_v10, %v1805_v49  ;;  %v1880_v26 = vadd.f32 %v3614_v20, %v1879_v8  ;;  %v3613_v18 = vsel %vm1475_vm6, 1.0, %v8478_v57  ;;  %v3615_v10 = vsel %vm1477_vm7, 1.0, %v8478_v57 }
 0x1ca   : > { %v6678_v61 = vpop.f32.mrb[36].mxu0  ;;  %v1843_v33 = vadd.f32 %v3613_v18, %v1842_v46  ;;  %v6683_v49 = vpop.f32.mrb[36].mxu1  ;;  %v1917_v20 = vadd.f32 %v3615_v10, %v1916_v19 }
 0x1cb   : > { %8683 = vst [vmem:[#allocation41_spill] sm:$0xff] %v6678_v61  ;;  %vm1478_vm8 = vcmp.lt.f32.partialorder %v6678_v61, 1.0  ;;  %8684 = vst [vmem:[#allocation42_spill] sm:$0xff] %v6683_v49  ;;  %v6685_v31 = vpop.f32.mrb[37].mxu0  ;;  %vm1480_vm9 = vcmp.lt.f32.partialorder %v6683_v49, 1.0  ;;  %v6690_v24 = vpop.f32.mrb[37].mxu1 }
 0x1cc   : > { %8685 = vst [vmem:[#allocation43_spill] sm:$0xff] %v6685_v31  ;;  %v3616_v4 = vsel %vm1478_vm8, 1.0, %v8478_v57  ;;  %8686 = vst [vmem:[#allocation44_spill] sm:$0xff] %v6690_v24  ;;  %v3618_v54 = vsel %vm1480_vm9, 1.0, %v8478_v57  ;;  %vm1479_vm10 = vcmp.lt.f32.partialorder %v6685_v31, 1.0  ;;  %vm1481_vm11 = vcmp.lt.f32.partialorder %v6690_v24, 1.0 }
 0x1cd   : > { %v1807_v46 = vadd.f32 %v3616_v4, %v1806_v59  ;;  %v1881_v5 = vadd.f32 %v3618_v54, %v1880_v26  ;;  %v3617_v19 = vsel %vm1479_vm10, 1.0, %v8478_v57  ;;  %v3619_v4 = vsel %vm1481_vm11, 1.0, %v8478_v57 }
 0x1ce   : > { %v6698_v10 = vpop.f32.mrb[38].mxu0  ;;  %v1844_v8 = vadd.f32 %v3617_v19, %v1843_v33  ;;  %v6703_v59 = vpop.f32.mrb[38].mxu1  ;;  %v1918_v54 = vadd.f32 %v3619_v4, %v1917_v20 }
 0x1cf   : > { %8687 = vst [vmem:[#allocation45_spill] sm:$0xff] %v6698_v10  ;;  %vm1482_vm12 = vcmp.lt.f32.partialorder %v6698_v10, 1.0  ;;  %8688 = vst [vmem:[#allocation46_spill] sm:$0xff] %v6703_v59  ;;  %v6705_v18 = vpop.f32.mrb[39].mxu0  ;;  %vm1484_vm13 = vcmp.lt.f32.partialorder %v6703_v59, 1.0  ;;  %v6710_v49 = vpop.f32.mrb[39].mxu1 }
 0x1d0   : > { %8689 = vst [vmem:[#allocation47_spill] sm:$0xff] %v6705_v18  ;;  %v3620_v36 = vsel %vm1482_vm12, 1.0, %v8478_v57  ;;  %8690 = vst [vmem:[#allocation48_spill] sm:$0xff] %v6710_v49  ;;  %v3622_v51 = vsel %vm1484_vm13, 1.0, %v8478_v57  ;;  %vm1483_vm14 = vcmp.lt.f32.partialorder %v6705_v18, 1.0  ;;  %vm1485_vm15 = vcmp.lt.f32.partialorder %v6710_v49, 1.0 }
 0x1d1   : > { %v1808_v33 = vadd.f32 %v3620_v36, %v1807_v46  ;;  %v1882_v31 = vadd.f32 %v3622_v51, %v1881_v5  ;;  %v3621_v20 = vsel %vm1483_vm14, 1.0, %v8478_v57  ;;  %v3623_v36 = vsel %vm1485_vm15, 1.0, %v8478_v57 }
 0x1d2   : > { %v6718_v4 = vpop.f32.mrb[40].mxu0  ;;  %v1845_v26 = vadd.f32 %v3621_v20, %v1844_v8  ;;  %v6723_v46 = vpop.f32.mrb[40].mxu1  ;;  %v1919_v51 = vadd.f32 %v3623_v36, %v1918_v54 }
 0x1d3   : > { %8691 = vst [vmem:[#allocation49_spill] sm:$0xff] %v6718_v4  ;;  %vm1486_vm0 = vcmp.lt.f32.partialorder %v6718_v4, 1.0  ;;  %8692 = vst [vmem:[#allocation50_spill] sm:$0xff] %v6723_v46  ;;  %v6725_v19 = vpop.f32.mrb[41].mxu0  ;;  %vm1488_vm1 = vcmp.lt.f32.partialorder %v6723_v46, 1.0  ;;  %v6730_v59 = vpop.f32.mrb[41].mxu1 }
 0x1d4   : > { %8693 = vst [vmem:[#allocation51_spill] sm:$0xff] %v6725_v19  ;;  %v3624_v61 = vsel %vm1486_vm0, 1.0, %v8478_v57  ;;  %8694 = vst [vmem:[#allocation52_spill] sm:$0xff] %v6730_v59  ;;  %v3626_v24 = vsel %vm1488_vm1, 1.0, %v8478_v57  ;;  %vm1487_vm2 = vcmp.lt.f32.partialorder %v6725_v19, 1.0  ;;  %vm1489_vm3 = vcmp.lt.f32.partialorder %v6730_v59, 1.0 }
 0x1d5   : > { %v1809_v8 = vadd.f32 %v3624_v61, %v1808_v33  ;;  %v1883_v18 = vadd.f32 %v3626_v24, %v1882_v31  ;;  %v3625_v54 = vsel %vm1487_vm2, 1.0, %v8478_v57  ;;  %v3627_v61 = vsel %vm1489_vm3, 1.0, %v8478_v57 }
 0x1d6   : > { %v6738_v36 = vpop.f32.mrb[42].mxu0  ;;  %v1846_v5 = vadd.f32 %v3625_v54, %v1845_v26  ;;  %v6743_v33 = vpop.f32.mrb[42].mxu1  ;;  %v1920_v24 = vadd.f32 %v3627_v61, %v1919_v51 }
 0x1d7   : > { %8695 = vst [vmem:[#allocation53_spill] sm:$0xff] %v6738_v36  ;;  %vm1490_vm4 = vcmp.lt.f32.partialorder %v6738_v36, 1.0  ;;  %8696 = vst [vmem:[#allocation54_spill] sm:$0xff] %v6743_v33  ;;  %v6745_v20 = vpop.f32.mrb[43].mxu0  ;;  %vm1492_vm5 = vcmp.lt.f32.partialorder %v6743_v33, 1.0  ;;  %v6750_v46 = vpop.f32.mrb[43].mxu1 }
 0x1d8   : > { %8697 = vst [vmem:[#allocation55_spill] sm:$0xff] %v6745_v20  ;;  %v3628_v10 = vsel %vm1490_vm4, 1.0, %v8478_v57  ;;  %8698 = vst [vmem:[#allocation56_spill] sm:$0xff] %v6750_v46  ;;  %v3630_v49 = vsel %vm1492_vm5, 1.0, %v8478_v57  ;;  %vm1491_vm6 = vcmp.lt.f32.partialorder %v6745_v20, 1.0  ;;  %vm1493_vm7 = vcmp.lt.f32.partialorder %v6750_v46, 1.0 }
 0x1d9   : > { %v1810_v26 = vadd.f32 %v3628_v10, %v1809_v8  ;;  %v1884_v19 = vadd.f32 %v3630_v49, %v1883_v18  ;;  %v3629_v51 = vsel %vm1491_vm6, 1.0, %v8478_v57  ;;  %v3631_v10 = vsel %vm1493_vm7, 1.0, %v8478_v57 }
 0x1da   : > { %v6758_v61 = vpop.f32.mrb[44].mxu0  ;;  %v1847_v31 = vadd.f32 %v3629_v51, %v1846_v5  ;;  %v6763_v8 = vpop.f32.mrb[44].mxu1  ;;  %v1921_v49 = vadd.f32 %v3631_v10, %v1920_v24 }
 0x1db   : > { %8699 = vst [vmem:[#allocation57_spill] sm:$0xff] %v6758_v61  ;;  %vm1494_vm8 = vcmp.lt.f32.partialorder %v6758_v61, 1.0  ;;  %8700 = vst [vmem:[#allocation58_spill] sm:$0xff] %v6763_v8  ;;  %v6765_v54 = vpop.f32.mrb[45].mxu0  ;;  %vm1496_vm9 = vcmp.lt.f32.partialorder %v6763_v8, 1.0  ;;  %v6770_v33 = vpop.f32.mrb[45].mxu1 }
 0x1dc   : > { %8701 = vst [vmem:[#allocation59_spill] sm:$0xff] %v6765_v54  ;;  %v3632_v4 = vsel %vm1494_vm8, 1.0, %v8478_v57  ;;  %8702 = vst [vmem:[#allocation60_spill] sm:$0xff] %v6770_v33  ;;  %v3634_v59 = vsel %vm1496_vm9, 1.0, %v8478_v57  ;;  %vm1495_vm10 = vcmp.lt.f32.partialorder %v6765_v54, 1.0  ;;  %vm1497_vm11 = vcmp.lt.f32.partialorder %v6770_v33, 1.0 }
 0x1dd   : > { %v1811_v5 = vadd.f32 %v3632_v4, %v1810_v26  ;;  %v1885_v20 = vadd.f32 %v3634_v59, %v1884_v19  ;;  %v3633_v24 = vsel %vm1495_vm10, 1.0, %v8478_v57  ;;  %v3635_v4 = vsel %vm1497_vm11, 1.0, %v8478_v57 }
 0x1de   : > { %v6778_v10 = vpop.f32.mrb[46].mxu0  ;;  %v1848_v18 = vadd.f32 %v3633_v24, %v1847_v31  ;;  %v6783_v26 = vpop.f32.mrb[46].mxu1  ;;  %v1922_v59 = vadd.f32 %v3635_v4, %v1921_v49 }
 0x1df   : > { %8703 = vst [vmem:[#allocation61_spill] sm:$0xff] %v6778_v10  ;;  %vm1498_vm12 = vcmp.lt.f32.partialorder %v6778_v10, 1.0  ;;  %8704 = vst [vmem:[#allocation62_spill] sm:$0xff] %v6783_v26  ;;  %v6785_v51 = vpop.f32.mrb[47].mxu0  ;;  %vm1500_vm13 = vcmp.lt.f32.partialorder %v6783_v26, 1.0  ;;  %v6790_v8 = vpop.f32.mrb[47].mxu1 }
 0x1e0   : > { %8705 = vst [vmem:[#allocation63_spill] sm:$0xff] %v6785_v51  ;;  %v3636_v36 = vsel %vm1498_vm12, 1.0, %v8478_v57  ;;  %8706 = vst [vmem:[#allocation64_spill] sm:$0xff] %v6790_v8  ;;  %v3638_v46 = vsel %vm1500_vm13, 1.0, %v8478_v57  ;;  %vm1499_vm14 = vcmp.lt.f32.partialorder %v6785_v51, 1.0  ;;  %vm1501_vm15 = vcmp.lt.f32.partialorder %v6790_v8, 1.0 }
 0x1e1   : > { %v1812_v31 = vadd.f32 %v3636_v36, %v1811_v5  ;;  %v1886_v54 = vadd.f32 %v3638_v46, %v1885_v20  ;;  %v3637_v49 = vsel %vm1499_vm14, 1.0, %v8478_v57  ;;  %v3639_v36 = vsel %vm1501_vm15, 1.0, %v8478_v57 }
 0x1e2   : > { %v6798_v4 = vpop.f32.mrb[48].mxu0  ;;  %v1849_v19 = vadd.f32 %v3637_v49, %v1848_v18  ;;  %v6803_v5 = vpop.f32.mrb[48].mxu1  ;;  %v1923_v46 = vadd.f32 %v3639_v36, %v1922_v59 }
 0x1e3   : > { %8707 = vst [vmem:[#allocation65_spill] sm:$0xff] %v6798_v4  ;;  %vm1502_vm0 = vcmp.lt.f32.partialorder %v6798_v4, 1.0  ;;  %8708 = vst [vmem:[#allocation66_spill] sm:$0xff] %v6803_v5  ;;  %v6805_v24 = vpop.f32.mrb[49].mxu0  ;;  %vm1504_vm1 = vcmp.lt.f32.partialorder %v6803_v5, 1.0  ;;  %v6810_v26 = vpop.f32.mrb[49].mxu1 }
 0x1e4   : > { %8709 = vst [vmem:[#allocation67_spill] sm:$0xff] %v6805_v24  ;;  %v3640_v61 = vsel %vm1502_vm0, 1.0, %v8478_v57  ;;  %8710 = vst [vmem:[#allocation68_spill] sm:$0xff] %v6810_v26  ;;  %v3642_v33 = vsel %vm1504_vm1, 1.0, %v8478_v57  ;;  %vm1503_vm2 = vcmp.lt.f32.partialorder %v6805_v24, 1.0  ;;  %vm1505_vm3 = vcmp.lt.f32.partialorder %v6810_v26, 1.0 }
 0x1e5   : > { %v1813_v18 = vadd.f32 %v3640_v61, %v1812_v31  ;;  %v1887_v51 = vadd.f32 %v3642_v33, %v1886_v54  ;;  %v3641_v59 = vsel %vm1503_vm2, 1.0, %v8478_v57  ;;  %v3643_v61 = vsel %vm1505_vm3, 1.0, %v8478_v57 }
 0x1e6   : > { %v6818_v36 = vpop.f32.mrb[50].mxu0  ;;  %v1850_v20 = vadd.f32 %v3641_v59, %v1849_v19  ;;  %v6823_v31 = vpop.f32.mrb[50].mxu1  ;;  %v1924_v33 = vadd.f32 %v3643_v61, %v1923_v46 }
 0x1e7   : > { %8711 = vst [vmem:[#allocation69_spill] sm:$0xff] %v6818_v36  ;;  %vm1506_vm4 = vcmp.lt.f32.partialorder %v6818_v36, 1.0  ;;  %8712 = vst [vmem:[#allocation70_spill] sm:$0xff] %v6823_v31  ;;  %v6825_v49 = vpop.f32.mrb[51].mxu0  ;;  %vm1508_vm5 = vcmp.lt.f32.partialorder %v6823_v31, 1.0  ;;  %v6830_v5 = vpop.f32.mrb[51].mxu1 }
 0x1e8   : > { %8713 = vst [vmem:[#allocation71_spill] sm:$0xff] %v6825_v49  ;;  %v3644_v10 = vsel %vm1506_vm4, 1.0, %v8478_v57  ;;  %8714 = vst [vmem:[#allocation72_spill] sm:$0xff] %v6830_v5  ;;  %v3646_v8 = vsel %vm1508_vm5, 1.0, %v8478_v57  ;;  %vm1507_vm6 = vcmp.lt.f32.partialorder %v6825_v49, 1.0  ;;  %vm1509_vm7 = vcmp.lt.f32.partialorder %v6830_v5, 1.0 }
 0x1e9   : > { %v1814_v19 = vadd.f32 %v3644_v10, %v1813_v18  ;;  %v1888_v24 = vadd.f32 %v3646_v8, %v1887_v51  ;;  %v3645_v46 = vsel %vm1507_vm6, 1.0, %v8478_v57  ;;  %v3647_v10 = vsel %vm1509_vm7, 1.0, %v8478_v57 }
 0x1ea   : > { %v6838_v61 = vpop.f32.mrb[52].mxu0  ;;  %v1851_v54 = vadd.f32 %v3645_v46, %v1850_v20  ;;  %v6843_v18 = vpop.f32.mrb[52].mxu1  ;;  %v1925_v8 = vadd.f32 %v3647_v10, %v1924_v33 }
 0x1eb   : > { %8715 = vst [vmem:[#allocation73_spill] sm:$0xff] %v6838_v61  ;;  %vm1510_vm8 = vcmp.lt.f32.partialorder %v6838_v61, 1.0  ;;  %8716 = vst [vmem:[#allocation74_spill] sm:$0xff] %v6843_v18  ;;  %v6845_v59 = vpop.f32.mrb[53].mxu0  ;;  %vm1512_vm9 = vcmp.lt.f32.partialorder %v6843_v18, 1.0  ;;  %v6850_v31 = vpop.f32.mrb[53].mxu1 }
 0x1ec   : > { %8717 = vst [vmem:[#allocation75_spill] sm:$0xff] %v6845_v59  ;;  %v3648_v4 = vsel %vm1510_vm8, 1.0, %v8478_v57  ;;  %8718 = vst [vmem:[#allocation76_spill] sm:$0xff] %v6850_v31  ;;  %v3650_v26 = vsel %vm1512_vm9, 1.0, %v8478_v57  ;;  %vm1511_vm10 = vcmp.lt.f32.partialorder %v6845_v59, 1.0  ;;  %vm1513_vm11 = vcmp.lt.f32.partialorder %v6850_v31, 1.0 }
 0x1ed   : > { %v1815_v20 = vadd.f32 %v3648_v4, %v1814_v19  ;;  %v1889_v49 = vadd.f32 %v3650_v26, %v1888_v24  ;;  %v3649_v33 = vsel %vm1511_vm10, 1.0, %v8478_v57  ;;  %v3651_v4 = vsel %vm1513_vm11, 1.0, %v8478_v57 }
 0x1ee   : > { %v6858_v10 = vpop.f32.mrb[54].mxu0  ;;  %v1852_v51 = vadd.f32 %v3649_v33, %v1851_v54  ;;  %v6863_v19 = vpop.f32.mrb[54].mxu1  ;;  %v1926_v26 = vadd.f32 %v3651_v4, %v1925_v8 }
 0x1ef   : > { %8719 = vst [vmem:[#allocation77_spill] sm:$0xff] %v6858_v10  ;;  %vm1514_vm12 = vcmp.lt.f32.partialorder %v6858_v10, 1.0  ;;  %8720 = vst [vmem:[#allocation78_spill] sm:$0xff] %v6863_v19  ;;  %v6865_v46 = vpop.f32.mrb[55].mxu0  ;;  %vm1516_vm13 = vcmp.lt.f32.partialorder %v6863_v19, 1.0  ;;  %v6870_v18 = vpop.f32.mrb[55].mxu1 }
 0x1f0   : > { %8721 = vst [vmem:[#allocation79_spill] sm:$0xff] %v6865_v46  ;;  %v3652_v36 = vsel %vm1514_vm12, 1.0, %v8478_v57  ;;  %8722 = vst [vmem:[#allocation80_spill] sm:$0xff] %v6870_v18  ;;  %v3654_v5 = vsel %vm1516_vm13, 1.0, %v8478_v57  ;;  %vm1515_vm14 = vcmp.lt.f32.partialorder %v6865_v46, 1.0  ;;  %vm1517_vm15 = vcmp.lt.f32.partialorder %v6870_v18, 1.0 }
 0x1f1   : > { %v1816_v54 = vadd.f32 %v3652_v36, %v1815_v20  ;;  %v1890_v59 = vadd.f32 %v3654_v5, %v1889_v49  ;;  %v3653_v8 = vsel %vm1515_vm14, 1.0, %v8478_v57  ;;  %v3655_v36 = vsel %vm1517_vm15, 1.0, %v8478_v57 }
 0x1f2   : > { %v6878_v4 = vpop.f32.mrb[56].mxu0  ;;  %v1853_v24 = vadd.f32 %v3653_v8, %v1852_v51  ;;  %v6883_v20 = vpop.f32.mrb[56].mxu1  ;;  %v1927_v5 = vadd.f32 %v3655_v36, %v1926_v26 }
 0x1f3   : > { %8723 = vst [vmem:[#allocation81_spill] sm:$0xff] %v6878_v4  ;;  %vm1518_vm0 = vcmp.lt.f32.partialorder %v6878_v4, 1.0  ;;  %8724 = vst [vmem:[#allocation82_spill] sm:$0xff] %v6883_v20  ;;  %v6885_v33 = vpop.f32.mrb[57].mxu0  ;;  %vm1520_vm1 = vcmp.lt.f32.partialorder %v6883_v20, 1.0  ;;  %v6890_v19 = vpop.f32.mrb[57].mxu1 }
 0x1f4   : > { %8725 = vst [vmem:[#allocation83_spill] sm:$0xff] %v6885_v33  ;;  %v3656_v61 = vsel %vm1518_vm0, 1.0, %v8478_v57  ;;  %8726 = vst [vmem:[#allocation84_spill] sm:$0xff] %v6890_v19  ;;  %v3658_v31 = vsel %vm1520_vm1, 1.0, %v8478_v57  ;;  %vm1519_vm2 = vcmp.lt.f32.partialorder %v6885_v33, 1.0  ;;  %vm1521_vm3 = vcmp.lt.f32.partialorder %v6890_v19, 1.0 }
 0x1f5   : > { %v1817_v51 = vadd.f32 %v3656_v61, %v1816_v54  ;;  %v1891_v46 = vadd.f32 %v3658_v31, %v1890_v59  ;;  %v3657_v26 = vsel %vm1519_vm2, 1.0, %v8478_v57  ;;  %v3659_v61 = vsel %vm1521_vm3, 1.0, %v8478_v57 }
 0x1f6   : > { %v6898_v36 = vpop.f32.mrb[58].mxu0  ;;  %v1854_v49 = vadd.f32 %v3657_v26, %v1853_v24  ;;  %v6903_v54 = vpop.f32.mrb[58].mxu1  ;;  %v1928_v31 = vadd.f32 %v3659_v61, %v1927_v5 }
 0x1f7   : > { %8727 = vst [vmem:[#allocation85_spill] sm:$0xff] %v6898_v36  ;;  %vm1522_vm4 = vcmp.lt.f32.partialorder %v6898_v36, 1.0  ;;  %8728 = vst [vmem:[#allocation86_spill] sm:$0xff] %v6903_v54  ;;  %v6905_v8 = vpop.f32.mrb[59].mxu0  ;;  %vm1524_vm5 = vcmp.lt.f32.partialorder %v6903_v54, 1.0  ;;  %v6910_v20 = vpop.f32.mrb[59].mxu1 }
 0x1f8   : > { %8729 = vst [vmem:[#allocation87_spill] sm:$0xff] %v6905_v8  ;;  %v3660_v10 = vsel %vm1522_vm4, 1.0, %v8478_v57  ;;  %8730 = vst [vmem:[#allocation88_spill] sm:$0xff] %v6910_v20  ;;  %v3662_v18 = vsel %vm1524_vm5, 1.0, %v8478_v57  ;;  %vm1523_vm6 = vcmp.lt.f32.partialorder %v6905_v8, 1.0  ;;  %vm1525_vm7 = vcmp.lt.f32.partialorder %v6910_v20, 1.0 }
 0x1f9   : > { %v1818_v24 = vadd.f32 %v3660_v10, %v1817_v51  ;;  %v1892_v33 = vadd.f32 %v3662_v18, %v1891_v46  ;;  %v3661_v5 = vsel %vm1523_vm6, 1.0, %v8478_v57  ;;  %v3663_v10 = vsel %vm1525_vm7, 1.0, %v8478_v57 }
 0x1fa   : > { %v6918_v61 = vpop.f32.mrb[60].mxu0  ;;  %v1855_v59 = vadd.f32 %v3661_v5, %v1854_v49  ;;  %v6923_v51 = vpop.f32.mrb[60].mxu1  ;;  %v1929_v18 = vadd.f32 %v3663_v10, %v1928_v31 }
 0x1fb   : > { %8731 = vst [vmem:[#allocation89_spill] sm:$0xff] %v6918_v61  ;;  %vm1526_vm8 = vcmp.lt.f32.partialorder %v6918_v61, 1.0  ;;  %8732 = vst [vmem:[#allocation90_spill] sm:$0xff] %v6923_v51  ;;  %v6925_v26 = vpop.f32.mrb[61].mxu0  ;;  %vm1528_vm9 = vcmp.lt.f32.partialorder %v6923_v51, 1.0  ;;  %v6930_v54 = vpop.f32.mrb[61].mxu1 }
 0x1fc   : > { %8733 = vst [vmem:[#allocation91_spill] sm:$0xff] %v6925_v26  ;;  %v3664_v4 = vsel %vm1526_vm8, 1.0, %v8478_v57  ;;  %8734 = vst [vmem:[#allocation92_spill] sm:$0xff] %v6930_v54  ;;  %v3666_v19 = vsel %vm1528_vm9, 1.0, %v8478_v57  ;;  %vm1527_vm10 = vcmp.lt.f32.partialorder %v6925_v26, 1.0  ;;  %vm1529_vm11 = vcmp.lt.f32.partialorder %v6930_v54, 1.0 }
 0x1fd   : > { %v1819_v49 = vadd.f32 %v3664_v4, %v1818_v24  ;;  %v1893_v8 = vadd.f32 %v3666_v19, %v1892_v33  ;;  %v3665_v31 = vsel %vm1527_vm10, 1.0, %v8478_v57  ;;  %v3667_v4 = vsel %vm1529_vm11, 1.0, %v8478_v57 }
 0x1fe   : > { %v6938_v10 = vpop.f32.mrb[62].mxu0  ;;  %v1856_v46 = vadd.f32 %v3665_v31, %v1855_v59  ;;  %v6943_v24 = vpop.f32.mrb[62].mxu1  ;;  %v1930_v19 = vadd.f32 %v3667_v4, %v1929_v18 }
 0x1ff   : > { %8735 = vst [vmem:[#allocation93_spill] sm:$0xff] %v6938_v10  ;;  %vm1530_vm12 = vcmp.lt.f32.partialorder %v6938_v10, 1.0  ;;  %8736 = vst [vmem:[#allocation94_spill] sm:$0xff] %v6943_v24  ;;  %v6945_v5 = vpop.f32.mrb[63].mxu0  ;;  %vm1532_vm13 = vcmp.lt.f32.partialorder %v6943_v24, 1.0  ;;  %v6950_v51 = vpop.f32.mrb[63].mxu1 }
 0x200   : > { %8737 = vst [vmem:[#allocation95_spill] sm:$0xff] %v6945_v5  ;;  %v3668_v36 = vsel %vm1530_vm12, 1.0, %v8478_v57  ;;  %8738 = vst [vmem:[#allocation96_spill] sm:$0xff] %v6950_v51  ;;  %v3670_v20 = vsel %vm1532_vm13, 1.0, %v8478_v57  ;;  %vm1531_vm14 = vcmp.lt.f32.partialorder %v6945_v5, 1.0  ;;  %vm1533_vm15 = vcmp.lt.f32.partialorder %v6950_v51, 1.0 }
 0x201   : > { %v1820_v59 = vadd.f32 %v3668_v36, %v1819_v49  ;;  %v1894_v26 = vadd.f32 %v3670_v20, %v1893_v8  ;;  %v3669_v18 = vsel %vm1531_vm14, 1.0, %v8478_v57  ;;  %v3671_v29 = vsel %vm1533_vm15, 1.0, %v8478_v57 }
 0x202   : > { %v2689_v4 = vpop.f32.mrb[64].mxu0  ;;  %v1857_v54 = vadd.f32 %v3669_v18, %v1856_v46  ;;  %v2946_v36 = vpop.f32.mrb[64].mxu1  ;;  %v1931_v10 = vadd.f32 %v3671_v29, %v1930_v19  ;;  %v6966_v51 = vshrl.u32 %v8482_v52, 7 }
 0x203   : > { %v1821_v33 = vrot.slane %v1820_v59, 4  ;;  %v2691_v49 = vpop.f32.mrb[65].mxu0  ;;  %v1895_v31 = vrot.slane %v1894_v26, 4  ;;  %v6960_v14 = vadd.f32 %v2689_v4, %v6294_v34  ;;  %v6963_v20 = vadd.f32 %v2946_v36, %v6299_v55  ;;  %v2948_v8 = vpop.f32.mrb[65].mxu1  ;;  %v4110_v34 = vld [vmem:[%s8313_s1 + $0x20] sm:$0xff] }
 0x204   : > { %v1858_v24 = vrot.slane %v1857_v54, 4  ;;  %v6969_v46 = vadd.f32 %v2691_v49, %v6315_v9  ;;  %v1932_v57 = vrot.slane %v1931_v10, 4  ;;  %v6972_v5 = vadd.f32 %v2948_v8, %v6343_v38  ;;  %v4111_v9 = vld [vmem:[%s8313_s1 + $0x30] sm:$0xff] }
 0x205   : > { %v1822_v61 = vadd.f32 %v1821_v33, %v1820_v59  ;;  %v1896_v18 = vadd.f32 %v1895_v31, %v1894_v26  ;;  %v8739_v55 = vsub.f32 1.0, %v6283_v45  ;;  %v6980_v4 = vadd.s32 8, %v6966_v51  ;;  %v4112_v45 = vld [vmem:[%s8313_s1 + $0x28] sm:$0xff] }
 0x206   : > { %v2695_v19 = vpop.f32.mrb[66].mxu0  ;;  %v1859_v59 = vadd.f32 %v1858_v24, %v1857_v54  ;;  %v8740_v38 = vsub.f32 1.0, %v6286_v3  ;;  %v2952_v31 = vpop.f32.mrb[66].mxu1  ;;  %v1933_v8 = vadd.f32 %v1932_v57, %v1931_v10  ;;  %v8741_v54 = vsub.f32 1.0, %v6288_v13  ;;  %v4113_v3 = vld [vmem:[%s8313_s1 + $0x38] sm:$0xff] }
 0x207   : > { %v2499_v29 = vmul.f32 %v4110_v34, %v8739_v55  ;;  %v1823_v33 = vrot.slane %v1822_v61, 2  ;;  %v2697_v36 = vpop.f32.mrb[67].mxu0  ;;  %v1897_v49 = vrot.slane %v1896_v18, 2  ;;  %v2954_v34 = vpop.f32.mrb[67].mxu1  ;;  %v8742_v57 = vsub.f32 1.0, %v6305_v35 }
 0x208   : > { %v2501_v26 = vmul.f32 %v4111_v9, %v8740_v38  ;;  %v2500_v24 = vmul.f32 %v4112_v45, %v8741_v54  ;;  %v1860_v21 = vrot.slane %v1859_v59, 2  ;;  %v7004_v38 = vadd.s32 16, %v6966_v51 }
 0x209   : > { %v6987_v52 = vadd.f32 %v2695_v19, %v2499_v29  ;;  %v1824_v55 = vadd.f32 %v1823_v33, %v1822_v61  ;;  %v2502_v10 = vmul.f32 %v4113_v3, %v8742_v57  ;;  %v1898_v29 = vadd.f32 %v1897_v49, %v1896_v18 }
 0x20a   : > { %v6994_v22 = vadd.f32 %v2952_v31, %v2501_v26  ;;  %v1934_v19 = vrot.slane %v1933_v8, 2  ;;  %v7001_v9 = vadd.f32 %v2697_v36, %v2500_v24  ;;  %v2701_v13 = vpop.f32.mrb[68].mxu0  ;;  %v1861_v61 = vadd.f32 %v1860_v21, %v1859_v59  ;;  %v4114_v26 = vld [vmem:[%s8313_s1 + $0x40] sm:$0xff]  ;;  %v2958_v54 = vpop.f32.mrb[68].mxu1  ;;  %v4115_v24 = vld [vmem:[%s8313_s1 + $0x50] sm:$0xff]  ;;  %v4116_v59 = vld [vmem:[%s8313_s1 + $0x48] sm:$0xff] }
 0x20b   : > { %v1825_v45 = vrot.slane %v1824_v55, 1  ;;  %v7006_v33 = vadd.f32 %v2954_v34, %v2502_v10  ;;  %v8743_v31 = vsub.f32 1.0, %v6319_v25  ;;  %v2703_v18 = vpop.f32.mrb[69].mxu0  ;;  %v1899_v49 = vrot.slane %v1898_v29, 1  ;;  %v2960_v25 = vpop.f32.mrb[69].mxu1 }
 0x20c   : > { %v1935_v36 = vadd.f32 %v1934_v19, %v1933_v8  ;;  %v8744_v3 = vsub.f32 1.0, %v6325_v27  ;;  %v8745_v34 = vsub.f32 1.0, %v6327_v60  ;;  %v4117_v8 = vld [vmem:[%s8313_s1 + $0x58] sm:$0xff]  ;;  %v8746_v19 = vsub.f32 1.0, %v6333_v39  ;;  %v4118_v39 = vld [vmem:[%s8313_s1 + $0x60] sm:$0xff] }
 0x20d   : > { %v2503_v35 = vmul.f32 %v4114_v26, %v8743_v31  ;;  %v1826_v10 = vadd.f32 %v1825_v45, %v1824_v55  ;;  %v1862_v26 = vrot.slane %v1861_v61, 1 }
 0x20e   : > { %v2505_v21 = vmul.f32 %v4115_v24, %v8744_v3  ;;  %v2504_v57 = vmul.f32 %v4116_v59, %v8745_v34  ;;  %v2506_v27 = vmul.f32 %v4117_v8, %v8746_v19  ;;  %v1900_v24 = vadd.f32 %v1899_v49, %v1898_v29  ;;  %v2707_v60 = vpop.f32.mrb[70].mxu0  ;;  %v2964_v45 = vpop.f32.mrb[70].mxu1 }
 0x20f   : > { %v7023_v31 = vadd.f32 %v2701_v13, %v2503_v35  ;;  %v1936_v3 = vrot.slane %v1935_v36, 1  ;;  %v4059_v59 = vtrunc.f32 %v1826_v10  ;;  %v1863_v34 = vadd.f32 %v1862_v26, %v1861_v61  ;;  %v2709_v35 = vpop.f32.mrb[71].mxu0  ;;  %v4119_v61 = vld [vmem:[%s8313_s1 + $0x70] sm:$0xff] }
 0x210   : > { %v7030_v58 = vadd.f32 %v2958_v54, %v2505_v21  ;;  %v7032_v6 = vadd.f32 %v2703_v18, %v2504_v57  ;;  %v7034_v55 = vadd.f32 %v2960_v25, %v2506_v27  ;;  %v7037_v13 = vadd.s32 24, %v6966_v51  ;;  %v2966_v21 = vpop.f32.mrb[71].mxu1 }
 0x211   : > { %v4063_v44 = vtrunc.f32 %v1900_v24  ;;  %v1937_v32 = vadd.f32 %v1936_v3, %v1935_v36  ;;  %v8747_v29 = vsub.f32 1.0, %v6348_v11  ;;  %v8748_v18 = vsub.f32 1.0, %v6353_v17  ;;  %v4120_v36 = vld [vmem:[%s8313_s1 + $0x68] sm:$0xff]  ;;  %v4121_v11 = vld [vmem:[%s8313_s1 + $0x78] sm:$0xff] }
 0x212   : > { %v4060_v57 = vcvt.f32.s32 %v4059_v59  ;;  %v4061_v25 = vtrunc.f32 %v1863_v34  ;;  %v8749_v10 = vsub.f32 1.0, %v6355_v63  ;;  %v8750_v8 = vsub.f32 1.0, %v6361_v23  ;;  %v7063_v59 = vpop.f32.mrb[72].mxu0 }
 0x213   : > { %v2507_v54 = vmul.f32 %v4118_v39, %v8747_v29  ;;  %v2509_v49 = vmul.f32 %v4119_v61, %v8748_v18  ;;  %v4064_v27 = vcvt.f32.s32 %v4063_v44  ;;  %v4065_v17 = vtrunc.f32 %v1937_v32  ;;  %v7069_v29 = vpop.f32.mrb[72].mxu1  ;;  %v7071_v61 = vpop.f32.mrb[73].mxu0 }
 0x214   : > { %v2508_v26 = vmul.f32 %v4120_v36, %v8749_v10  ;;  %v2510_v19 = vmul.f32 %v4121_v11, %v8750_v8  ;;  %vm1942_vm0 = vcmp.lt.s32.totalorder %v4060_v57, 255  ;;  %v4062_v34 = vcvt.f32.s32 %v4061_v25 }
 0x215   : > { %v7059_v24 = vadd.f32 %v2707_v60, %v2507_v54  ;;  %v7061_v3 = vadd.f32 %v2964_v45, %v2509_v49  ;;  %v7073_v23 = vsel %vm1942_vm0, %v4060_v57, 255  ;;  %vm1946_vm1 = vcmp.lt.s32.totalorder %v4064_v27, 255  ;;  %v7078_v60 = vpop.f32.mrb[73].mxu1 }
 0x216   : > { %v7065_v39 = vadd.f32 %v2709_v35, %v2508_v26  ;;  %v7067_v63 = vadd.f32 %v2966_v21, %v2510_v19  ;;  %v4066_v32 = vcvt.f32.s32 %v4065_v17  ;;  %v7076_v44 = vadd.s32 32, %v6966_v51  ;;  %v7091_v49 = vpop.f32.mrb[74].mxu0  ;;  %v7099_v36 = vpop.f32.mrb[74].mxu1 }
 0x217   : > { %v7080_v45 = vsel %vm1946_vm1, %v4064_v27, 255  ;;  %vm1944_vm2 = vcmp.lt.s32.totalorder %v4062_v34, 255  ;;  %vm1983_vm3 = vcmp.eq.s32.totalorder %v6966_v51, %v7073_v23  ;;  %vm1987_vm4 = vcmp.eq.s32.totalorder %v6980_v4, %v7073_v23  ;;  %v7101_v10 = vpop.f32.mrb[75].mxu0  ;;  %v7108_v19 = vpop.f32.mrb[75].mxu1 }
 0x218   : > { %v7086_v35 = vsel %vm1944_vm2, %v4062_v34, 255  ;;  %vm1948_vm5 = vcmp.lt.s32.totalorder %v4066_v32, 255  ;;  %v8751_v54 = vmov 0.0   ;;  %vm1985_vm6 = vcmp.eq.s32.totalorder %v6966_v51, %v7080_v45 }
 0x219   : > { %v3672_v18 = vsel %vm1983_vm3, 1.0, %v8751_v54  ;;  %v7093_v21 = vsel %vm1948_vm5, %v4066_v32, 255  ;;  %v3674_v25 = vsel %vm1985_vm6, 1.0, %v8751_v54  ;;  %vm1984_vm7 = vcmp.eq.s32.totalorder %v6966_v51, %v7086_v35 }
 0x21a   : > { %v3137_v57 = vmul.f32 %v3672_v18, %v6960_v14  ;;  %v3139_v26 = vmul.f32 %v3674_v25, %v6963_v20  ;;  %v3673_v11 = vsel %vm1984_vm7, 1.0, %v8751_v54  ;;  %vm1986_vm8 = vcmp.eq.s32.totalorder %v6966_v51, %v7093_v21  ;;  %v7121_v32 = vpop.f32.mrb[76].mxu0 }
 0x21b   : > { %v3676_v8 = vsel %vm1987_vm4, 1.0, %v8751_v54  ;;  %v3138_v14 = vmul.f32 %v3673_v11, %v6969_v46  ;;  %v3675_v27 = vsel %vm1986_vm8, 1.0, %v8751_v54  ;;  %vm1989_vm9 = vcmp.eq.s32.totalorder %v6980_v4, %v7080_v45  ;;  %v7126_v11 = vpop.f32.mrb[76].mxu1 }
 0x21c   : > { %v3141_v17 = vmul.f32 %v3676_v8, %v6987_v52  ;;  %v3140_v20 = vmul.f32 %v3675_v27, %v6972_v5  ;;  %v3678_v34 = vsel %vm1989_vm9, 1.0, %v8751_v54  ;;  %vm1988_vm10 = vcmp.eq.s32.totalorder %v6980_v4, %v7086_v35  ;;  %v7128_v5 = vpop.f32.mrb[77].mxu0 }
 0x21d   : > { %vm1990_vm11 = vcmp.eq.s32.totalorder %v6980_v4, %v7093_v21  ;;  %v3143_v18 = vmul.f32 %v3678_v34, %v6994_v22  ;;  %v3677_v52 = vsel %vm1988_vm10, 1.0, %v8751_v54  ;;  %vm1991_vm12 = vcmp.eq.s32.totalorder %v7004_v38, %v7073_v23  ;;  %v7136_v4 = vpop.f32.mrb[77].mxu1 }
 0x21e   : > { %v3265_v46 = vadd.f32 %v3141_v17, %v3137_v57  ;;  %v3679_v25 = vsel %vm1990_vm11, 1.0, %v8751_v54  ;;  %v3142_v8 = vmul.f32 %v3677_v52, %v7001_v9  ;;  %vm1993_vm13 = vcmp.eq.s32.totalorder %v7004_v38, %v7080_v45 }
 0x21f   : > { %v3144_v27 = vmul.f32 %v3679_v25, %v7006_v33  ;;  %v3339_v22 = vadd.f32 %v3143_v18, %v3139_v26  ;;  %v3680_v57 = vsel %vm1991_vm12, 1.0, %v8751_v54  ;;  %v3682_v17 = vsel %vm1993_vm13, 1.0, %v8751_v54  ;;  %v7144_v25 = vpop.f32.mrb[78].mxu0  ;;  %v7153_v26 = vpop.f32.mrb[78].mxu1 }
 0x220   : > { %vm1992_vm14 = vcmp.eq.s32.totalorder %v7004_v38, %v7086_v35  ;;  %v3302_v34 = vadd.f32 %v3142_v8, %v3138_v14  ;;  %v3145_v33 = vmul.f32 %v3680_v57, %v7023_v31  ;;  %v3147_v52 = vmul.f32 %v3682_v17, %v7030_v58  ;;  %v7155_v14 = vpop.f32.mrb[79].mxu0  ;;  %v7159_v8 = vpop.f32.mrb[79].mxu1 }
 0x221   : > { %v3376_v9 = vadd.f32 %v3144_v27, %v3140_v20  ;;  %v3681_v37 = vsel %vm1992_vm14, 1.0, %v8751_v54  ;;  %vm1994_vm15 = vcmp.eq.s32.totalorder %v7004_v38, %v7093_v21  ;;  %vm1995_vm0 = vcmp.eq.s32.totalorder %v7037_v13, %v7073_v23 }
 0x222   : > { %vm1997_vm1 = vcmp.eq.s32.totalorder %v7037_v13, %v7080_v45  ;;  %v3266_v31 = vadd.f32 %v3265_v46, %v3145_v33  ;;  %v3340_v20 = vadd.f32 %v3339_v22, %v3147_v52  ;;  %v3146_v58 = vmul.f32 %v3681_v37, %v7032_v6  ;;  %v7169_v37 = vpop.f32.mrb[80].mxu0 }
 0x223   : > { %v3683_v18 = vsel %vm1994_vm15, 1.0, %v8751_v54  ;;  %v3684_v27 = vsel %vm1995_vm0, 1.0, %v8751_v54  ;;  %v3686_v57 = vsel %vm1997_vm1, 1.0, %v8751_v54  ;;  %vm1996_vm2 = vcmp.eq.s32.totalorder %v7037_v13, %v7086_v35 }
 0x224   : > { %v3148_v38 = vmul.f32 %v3683_v18, %v7034_v55  ;;  %v3303_v17 = vadd.f32 %v3302_v34, %v3146_v58  ;;  %v3149_v12 = vmul.f32 %v3684_v27, %v7059_v24  ;;  %v3151_v46 = vmul.f32 %v3686_v57, %v7061_v3  ;;  %v7176_v55 = vpop.f32.mrb[80].mxu1  ;;  %v7178_v34 = vpop.f32.mrb[81].mxu0 }
 0x225   : > { %v3685_v6 = vsel %vm1996_vm2, 1.0, %v8751_v54  ;;  %vm1998_vm3 = vcmp.eq.s32.totalorder %v7037_v13, %v7093_v21  ;;  %vm1999_vm4 = vcmp.eq.s32.totalorder %v7076_v44, %v7073_v23  ;;  %v7182_v18 = vpop.f32.mrb[81].mxu1  ;;  %v4122_v13 = vld [vmem:[%s8313_s1 + $0x80] sm:$0xff]  ;;  %vm2001_vm5 = vcmp.eq.s32.totalorder %v7076_v44, %v7080_v45 }
 0x226   : > { %v3377_v22 = vadd.f32 %v3376_v9, %v3148_v38  ;;  %v3150_v33 = vmul.f32 %v3685_v6, %v7065_v39  ;;  %v3267_v24 = vadd.f32 %v3266_v31, %v3149_v12  ;;  %v3341_v52 = vadd.f32 %v3340_v20, %v3151_v46  ;;  %v4123_v31 = vld [vmem:[%s8313_s1 + $0x90] sm:$0xff]  ;;  %v7205_v46 = vpop.f32.mrb[82].mxu0 }
 0x227   : > { %v3687_v3 = vsel %vm1998_vm3, 1.0, %v8751_v54  ;;  %v3688_v58 = vsel %vm1999_vm4, 1.0, %v8751_v54  ;;  %v8752_v38 = vsub.f32 1.0, %v6372_v41  ;;  %v3690_v12 = vsel %vm2001_vm5, 1.0, %v8751_v54  ;;  %v4124_v41 = vld [vmem:[%s8313_s1 + $0x88] sm:$0xff] }
 0x228   : > { %v3304_v9 = vadd.f32 %v3303_v17, %v3150_v33  ;;  %v3152_v39 = vmul.f32 %v3687_v3, %v7067_v63  ;;  %v8753_v20 = vsub.f32 1.0, %v6377_v16  ;;  %vm2000_vm6 = vcmp.eq.s32.totalorder %v7076_v44, %v7086_v35  ;;  %v7211_v16 = vpop.f32.mrb[82].mxu1 }
 0x229   : > { %v2511_v27 = vmul.f32 %v4122_v13, %v8752_v38  ;;  %v8754_v63 = vsub.f32 1.0, %v6379_v42  ;;  %v3689_v3 = vsel %vm2000_vm6, 1.0, %v8751_v54  ;;  %vm2002_vm7 = vcmp.eq.s32.totalorder %v7076_v44, %v7093_v21  ;;  %v7213_v13 = vpop.f32.mrb[83].mxu0 }
 0x22a   : > { %v2513_v57 = vmul.f32 %v4123_v31, %v8753_v20  ;;  %v3378_v6 = vadd.f32 %v3377_v22, %v3152_v39  ;;  %v3691_v42 = vsel %vm2002_vm7, 1.0, %v8751_v54  ;;  %v4125_v22 = vld [vmem:[%s8313_s1 + $0x98] sm:$0xff]  ;;  %v1956_v20 = vadd.s32 40, %v6966_v51 }
 0x22b   : > { %v2512_v17 = vmul.f32 %v4124_v41, %v8754_v63  ;;  %v2714_v33 = vadd.f32 %v7063_v59, %v2511_v27  ;;  %v8755_v59 = vsub.f32 1.0, %v6385_v0  ;;  %v7223_v27 = vpop.f32.mrb[83].mxu1  ;;  %v4127_v41 = vld [vmem:[%s8313_s1 + $0xb0] sm:$0xff]  ;;  %v8758_v63 = vsub.f32 1.0, %v6401_v1 }
 0x22c   : > { %v2971_v38 = vadd.f32 %v7069_v29, %v2513_v57  ;;  %8756 = vst [vmem:[#allocation97_spill] sm:$0xff] %v7223_v27  ;;  %v4126_v29 = vld [vmem:[%s8313_s1 + $0xa0] sm:$0xff]  ;;  %vm2003_vm8 = vcmp.eq.s32.totalorder %v1956_v20, %v7073_v23  ;;  %vm2005_vm9 = vcmp.eq.s32.totalorder %v1956_v20, %v7080_v45  ;;  %v7247_v1 = vpop.f32.mrb[84].mxu1  ;;  %vm2004_vm10 = vcmp.eq.s32.totalorder %v1956_v20, %v7086_v35 }
 0x22d   : > { %v2716_v31 = vadd.f32 %v7071_v61, %v2512_v17  ;;  %v2514_v39 = vmul.f32 %v4125_v22, %v8755_v59  ;;  %v3153_v44 = vmul.f32 %v3688_v58, %v2714_v33  ;;  %v8757_v61 = vsub.f32 1.0, %v6396_v40  ;;  %v4128_v33 = vld [vmem:[%s8313_s1 + $0xa8] sm:$0xff]  ;;  %v7242_v40 = vpop.f32.mrb[84].mxu0 }
 0x22e   : > { %v2517_v0 = vmul.f32 %v4127_v41, %v8758_v63  ;;  %v3155_v17 = vmul.f32 %v3690_v12, %v2971_v38  ;;  %v8759_v59 = vsub.f32 1.0, %v6403_v47  ;;  %v7249_v12 = vpop.f32.mrb[85].mxu0  ;;  %v7252_v47 = vpop.f32.mrb[85].mxu1  ;;  %vm2006_vm11 = vcmp.eq.s32.totalorder %v1956_v20, %v7093_v21  ;;  %v4130_v20 = vld [vmem:[%s8313_s1 + $0xc0] sm:$0xff] }
 0x22f   : > { %v2515_v57 = vmul.f32 %v4126_v29, %v8757_v61  ;;  %v3154_v22 = vmul.f32 %v3689_v3, %v2716_v31  ;;  %v2973_v58 = vadd.f32 %v7078_v60, %v2514_v39  ;;  %v3268_v29 = vadd.f32 %v3267_v24, %v3153_v44 }
 0x230   : > { %v2516_v27 = vmul.f32 %v4128_v33, %v8759_v59  ;;  %v3342_v60 = vadd.f32 %v3341_v52, %v3155_v17  ;;  %v3692_v31 = vsel %vm2003_vm8, 1.0, %v8751_v54  ;;  %v3694_v24 = vsel %vm2005_vm9, 1.0, %v8751_v54  ;;  %v7260_v52 = vpop.f32.mrb[86].mxu0  ;;  %v4129_v17 = vld [vmem:[%s8313_s1 + $0xb8] sm:$0xff]  ;;  %v4131_v59 = vld [vmem:[%s8313_s1 + $0xd0] sm:$0xff] }
 0x231   : > { %v2720_v61 = vadd.f32 %v7091_v49, %v2515_v57  ;;  %v3305_v3 = vadd.f32 %v3304_v9, %v3154_v22  ;;  %v3156_v38 = vmul.f32 %v3691_v42, %v2973_v58  ;;  %v2977_v44 = vadd.f32 %v7099_v36, %v2517_v0  ;;  %v7270_v22 = vpop.f32.mrb[87].mxu0 }
 0x232   : > { %v3693_v57 = vsel %vm2004_vm10, 1.0, %v8751_v54  ;;  %v2722_v41 = vadd.f32 %v7101_v10, %v2516_v27  ;;  %v3695_v63 = vsel %vm2006_vm11, 1.0, %v8751_v54  ;;  %v8760_v36 = vsub.f32 1.0, %v6409_v7 }
 0x233   : > { %v3157_v39 = vmul.f32 %v3692_v31, %v2720_v61  ;;  %v3379_v49 = vadd.f32 %v3378_v6, %v3156_v38  ;;  %v3159_v42 = vmul.f32 %v3694_v24, %v2977_v44  ;;  %v7268_v6 = vpop.f32.mrb[86].mxu1  ;;  %v1957_v27 = vadd.s32 48, %v6966_v51  ;;  %v4133_v44 = vld [vmem:[%s8313_s1 + $0xd8] sm:$0xff] }
 0x234   : > { %v2518_v0 = vmul.f32 %v4129_v17, %v8760_v36  ;;  %v3158_v10 = vmul.f32 %v3693_v57, %v2722_v41  ;;  %v8761_v58 = vsub.f32 1.0, %v6420_v56  ;;  %v8762_v7 = vsub.f32 1.0, %v6425_v2  ;;  %v7283_v61 = vpop.f32.mrb[87].mxu1 }
 0x235   : > { %v3269_v9 = vadd.f32 %v3268_v29, %v3157_v39  ;;  %v3343_v38 = vadd.f32 %v3342_v60, %v3159_v42  ;;  %v4132_v39 = vld [vmem:[%s8313_s1 + $0xc8] sm:$0xff]  ;;  %v8763_v24 = vsub.f32 1.0, %v6427_v48  ;;  %v8764_v57 = vsub.f32 1.0, %v6433_v15 }
 0x236   : > { %v2519_v33 = vmul.f32 %v4130_v20, %v8761_v58  ;;  %v2521_v29 = vmul.f32 %v4131_v59, %v8762_v7  ;;  %v2979_v31 = vadd.f32 %v7108_v19, %v2518_v0  ;;  %v3306_v41 = vadd.f32 %v3305_v3, %v3158_v10  ;;  %v7299_v19 = vpop.f32.mrb[88].mxu0  ;;  %v7304_v0 = vpop.f32.mrb[88].mxu1 }
 0x237   : > { %v2520_v56 = vmul.f32 %v4132_v39, %v8763_v24  ;;  %v2522_v2 = vmul.f32 %v4133_v44, %v8764_v57  ;;  %vm2007_vm12 = vcmp.eq.s32.totalorder %v1957_v27, %v7073_v23  ;;  %vm2009_vm13 = vcmp.eq.s32.totalorder %v1957_v27, %v7080_v45  ;;  %v7306_v15 = vpop.f32.mrb[89].mxu0  ;;  %v7311_v10 = vpop.f32.mrb[89].mxu1  ;;  %v4135_v24 = vld [vmem:[%s8313_s1 + $0xf0] sm:$0xff] }
 0x238   : > { %v2726_v60 = vadd.f32 %v7121_v32, %v2519_v33  ;;  %v3160_v42 = vmul.f32 %v3695_v63, %v2979_v31  ;;  %v3696_v48 = vsel %vm2007_vm12, 1.0, %v8751_v54  ;;  %v3698_v17 = vsel %vm2009_vm13, 1.0, %v8751_v54  ;;  %v7317_v31 = vpop.f32.mrb[90].mxu0  ;;  %v7334_v57 = vpop.f32.mrb[90].mxu1 }
 0x239   : > { %v2983_v36 = vadd.f32 %v7126_v11, %v2521_v29  ;;  %vm2008_vm14 = vcmp.eq.s32.totalorder %v1957_v27, %v7086_v35  ;;  %v2728_v32 = vadd.f32 %v7128_v5, %v2520_v56  ;;  %vm2010_vm15 = vcmp.eq.s32.totalorder %v1957_v27, %v7093_v21  ;;  %v4134_v5 = vld [vmem:[%s8313_s1 + $0xe0] sm:$0xff] }
 0x23a   : > { %v3161_v3 = vmul.f32 %v3696_v48, %v2726_v60  ;;  %v3380_v63 = vadd.f32 %v3379_v49, %v3160_v42  ;;  %v3697_v58 = vsel %vm2008_vm14, 1.0, %v8751_v54  ;;  %v3699_v33 = vsel %vm2010_vm15, 1.0, %v8751_v54  ;;  %v7340_v42 = vpop.f32.mrb[91].mxu1 }
 0x23b   : > { %v3163_v20 = vmul.f32 %v3698_v17, %v2983_v36  ;;  %v3162_v59 = vmul.f32 %v3697_v58, %v2728_v32  ;;  %v2985_v7 = vadd.f32 %v7136_v4, %v2522_v2  ;;  %v1958_v29 = vadd.s32 56, %v6966_v51  ;;  %v4136_v4 = vld [vmem:[%s8313_s1 + $0xe8] sm:$0xff]  ;;  %v7336_v2 = vpop.f32.mrb[91].mxu0 }
 0x23c   : > { %v3270_v11 = vadd.f32 %v3269_v9, %v3161_v3  ;;  %v8765_v49 = vsub.f32 1.0, %v6444_v43  ;;  %v8766_v9 = vsub.f32 1.0, %v6449_v50  ;;  %v7349_v3 = vpop.f32.mrb[92].mxu0 }
 0x23d   : > { %v3344_v39 = vadd.f32 %v3343_v38, %v3163_v20  ;;  %v8767_v38 = vsub.f32 1.0, %v6451_v30  ;;  %v3307_v43 = vadd.f32 %v3306_v41, %v3162_v59  ;;  %v3164_v60 = vmul.f32 %v3699_v33, %v2985_v7  ;;  %v7355_v59 = vpop.f32.mrb[93].mxu0 }
 0x23e   : > { %v2523_v27 = vmul.f32 %v4134_v5, %v8765_v49  ;;  %v2525_v56 = vmul.f32 %v4135_v24, %v8766_v9  ;;  %vm2011_vm0 = vcmp.eq.s32.totalorder %v1958_v29, %v7073_v23  ;;  %vm2013_vm1 = vcmp.eq.s32.totalorder %v1958_v29, %v7080_v45  ;;  %v4138_v5 = vld [vmem:[%s8313_s1 + $0x100] sm:$0xff] }
 0x23f   : > { %v2524_v44 = vmul.f32 %v4136_v4, %v8767_v38  ;;  %v3700_v50 = vsel %vm2011_vm0, 1.0, %v8751_v54  ;;  %v3702_v17 = vsel %vm2013_vm1, 1.0, %v8751_v54  ;;  %v3381_v36 = vadd.f32 %v3380_v63, %v3164_v60  ;;  %v4137_v63 = vld [vmem:[%s8313_s1 + $0xf8] sm:$0xff]  ;;  %v4139_v4 = vld [vmem:[%s8313_s1 + $0x110] sm:$0xff]  ;;  %v8771_v60 = vld [vmem:[#allocation3_spill] sm:$0xff] }
 0x240   : > { %v2732_v48 = vadd.f32 %v7144_v25, %v2523_v27  ;;  %v2989_v30 = vadd.f32 %v7153_v26, %v2525_v56  ;;  %vm2012_vm2 = vcmp.eq.s32.totalorder %v1958_v29, %v7086_v35  ;;  %vm2014_vm3 = vcmp.eq.s32.totalorder %v1958_v29, %v7093_v21  ;;  %v7353_v25 = vpop.f32.mrb[92].mxu1 }
 0x241   : > { %v2734_v41 = vadd.f32 %v7155_v14, %v2524_v44  ;;  %v3701_v58 = vsel %vm2012_vm2, 1.0, %v8751_v54  ;;  %v3703_v33 = vsel %vm2014_vm3, 1.0, %v8751_v54  ;;  %v8768_v14 = vsub.f32 1.0, %v6457_v53  ;;  %v7368_v24 = vpop.f32.mrb[93].mxu1  ;;  %v4140_v44 = vld [vmem:[%s8313_s1 + $0x108] sm:$0xff] }
 0x242   : > { %v3165_v32 = vmul.f32 %v3700_v50, %v2732_v48  ;;  %v3167_v20 = vmul.f32 %v3702_v17, %v2989_v30  ;;  %v1959_v29 = vadd.s32 64, %v6966_v51  ;;  %v8769_v49 = vsub.f32 1.0, %v6468_v28 }
 0x243   : > { %v3166_v26 = vmul.f32 %v3701_v58, %v2734_v41  ;;  %v2526_v7 = vmul.f32 %v4137_v63, %v8768_v14  ;;  %v8770_v53 = vsub.f32 1.0, %v6473_v62  ;;  %v8772_v50 = vsub.f32 1.0, %v8771_v60  ;;  %v7389_v41 = vpop.f32.mrb[94].mxu1  ;;  %v8773_v14 = vld [vmem:[#allocation4_spill] sm:$0xff]  ;;  %v8775_v60 = vld [vmem:[#allocation5_spill] sm:$0xff] }
 0x244   : > { %v2527_v27 = vmul.f32 %v4138_v5, %v8769_v49  ;;  %v3271_v9 = vadd.f32 %v3270_v11, %v3165_v32  ;;  %v3345_v56 = vadd.f32 %v3344_v39, %v3167_v20  ;;  %vm2015_vm4 = vcmp.eq.s32.totalorder %v1959_v29, %v7073_v23  ;;  %v7383_v39 = vpop.f32.mrb[94].mxu0  ;;  %v7395_v58 = vpop.f32.mrb[95].mxu1 }
 0x245   : > { %v2529_v38 = vmul.f32 %v4139_v4, %v8770_v53  ;;  %v2528_v48 = vmul.f32 %v4140_v44, %v8772_v50  ;;  %v3308_v28 = vadd.f32 %v3307_v43, %v3166_v26  ;;  %v2991_v17 = vadd.f32 %v7159_v8, %v2526_v7  ;;  %v7391_v32 = vpop.f32.mrb[95].mxu0 }
 0x246   : > { %v2738_v11 = vadd.f32 %v7169_v37, %v2527_v27  ;;  %v3704_v30 = vsel %vm2015_vm4, 1.0, %v8751_v54  ;;  %vm2017_vm5 = vcmp.eq.s32.totalorder %v1959_v29, %v7080_v45  ;;  %vm2016_vm6 = vcmp.eq.s32.totalorder %v1959_v29, %v7086_v35  ;;  %v7406_v53 = vpop.f32.mrb[96].mxu0 }
 0x247   : > { %v2995_v62 = vadd.f32 %v7176_v55, %v2529_v38  ;;  %v3168_v43 = vmul.f32 %v3703_v33, %v2991_v17  ;;  %v3706_v20 = vsel %vm2017_vm5, 1.0, %v8751_v54  ;;  %v3705_v37 = vsel %vm2016_vm6, 1.0, %v8751_v54  ;;  %v4141_v55 = vld [vmem:[%s8313_s1 + $0x118] sm:$0xff]  ;;  %v7414_v17 = vpop.f32.mrb[96].mxu1 }
 0x248   : > { %v3169_v8 = vmul.f32 %v3704_v30, %v2738_v11  ;;  %v2740_v63 = vadd.f32 %v7178_v34, %v2528_v48  ;;  %vm2018_vm7 = vcmp.eq.s32.totalorder %v1959_v29, %v7093_v21  ;;  %v8774_v7 = vsub.f32 1.0, %v8773_v14  ;;  %v4142_v29 = vld [vmem:[%s8313_s1 + $0x120] sm:$0xff]  ;;  %v7426_v30 = vpop.f32.mrb[97].mxu1 }
 0x249   : > { %v3171_v26 = vmul.f32 %v3706_v20, %v2995_v62  ;;  %v3382_v33 = vadd.f32 %v3381_v36, %v3168_v43  ;;  %v3707_v27 = vsel %vm2018_vm7, 1.0, %v8751_v54  ;;  %v1960_v4 = vadd.s32 72, %v6966_v51  ;;  %v7416_v36 = vpop.f32.mrb[97].mxu0  ;;  %v8779_v14 = vld [vmem:[#allocation7_spill] sm:$0xff] }
 0x24a   : > { %v2530_v5 = vmul.f32 %v4141_v55, %v8774_v7  ;;  %v3272_v49 = vadd.f32 %v3271_v9, %v3169_v8  ;;  %v3170_v44 = vmul.f32 %v3705_v37, %v2740_v63  ;;  %v8776_v50 = vsub.f32 1.0, %v8775_v60  ;;  %v4143_v9 = vld [vmem:[%s8313_s1 + $0x130] sm:$0xff]  ;;  %v4144_v55 = vld [vmem:[%s8313_s1 + $0x128] sm:$0xff]  ;;  %v7446_v60 = vpop.f32.mrb[98].mxu1 }
 0x24b   : > { %v3346_v38 = vadd.f32 %v3345_v56, %v3171_v26  ;;  %vm2019_vm8 = vcmp.eq.s32.totalorder %v1960_v4, %v7073_v23  ;;  %vm2021_vm9 = vcmp.eq.s32.totalorder %v1960_v4, %v7080_v45  ;;  %vm2020_vm10 = vcmp.eq.s32.totalorder %v1960_v4, %v7086_v35 }
 0x24c   : > { %v2997_v34 = vadd.f32 %v7182_v18, %v2530_v5  ;;  %v2531_v48 = vmul.f32 %v4142_v29, %v8776_v50  ;;  %v8777_v18 = vld [vmem:[#allocation6_spill] sm:$0xff]  ;;  %v3309_v62 = vadd.f32 %v3308_v28, %v3170_v44  ;;  %v3708_v8 = vsel %vm2019_vm8, 1.0, %v8751_v54  ;;  %v7438_v29 = vpop.f32.mrb[98].mxu0 }
 0x24d   : > { %v8778_v56 = vsub.f32 1.0, %v8777_v18  ;;  %v3710_v37 = vsel %vm2021_vm9, 1.0, %v8751_v54  ;;  %v3709_v63 = vsel %vm2020_vm10, 1.0, %v8751_v54  ;;  %v8780_v7 = vsub.f32 1.0, %v8779_v14  ;;  %v7448_v50 = vpop.f32.mrb[99].mxu0 }
 0x24e   : > { %v3172_v43 = vmul.f32 %v3707_v27, %v2997_v34  ;;  %v2744_v20 = vadd.f32 %v7205_v46, %v2531_v48  ;;  %vm2022_vm11 = vcmp.eq.s32.totalorder %v1960_v4, %v7093_v21  ;;  %v4145_v46 = vld [vmem:[%s8313_s1 + $0x138] sm:$0xff] }
 0x24f   : > { %v2533_v11 = vmul.f32 %v4143_v9, %v8778_v56  ;;  %v2532_v5 = vmul.f32 %v4144_v55, %v8780_v7  ;;  %v3711_v18 = vsel %vm2022_vm11, 1.0, %v8751_v54  ;;  %v7453_v56 = vpop.f32.mrb[99].mxu1 }
 0x250   : > { %v3383_v28 = vadd.f32 %v3382_v33, %v3172_v43  ;;  %v3173_v27 = vmul.f32 %v3708_v8, %v2744_v20  ;;  %v1961_v33 = vadd.s32 80, %v6966_v51  ;;  %v4146_v8 = vld [vmem:[%s8313_s1 + $0x140] sm:$0xff]  ;;  %v8784_v20 = vld [vmem:[#allocation9_spill] sm:$0xff] }
 0x251   : > { %v3001_v26 = vadd.f32 %v7211_v16, %v2533_v11  ;;  %v8781_v16 = vld [vmem:[#allocation8_spill] sm:$0xff]  ;;  %v2746_v9 = vadd.f32 %v7213_v13, %v2532_v5  ;;  %v8783_v11 = vld [vmem:[#allocation97_spill] sm:$0xff]  ;;  %v8785_v55 = vsub.f32 1.0, %v8784_v20 }
 0x252   : > { %v8782_v44 = vsub.f32 1.0, %v8781_v16  ;;  %v3273_v4 = vadd.f32 %v3272_v49, %v3173_v27  ;;  %v4147_v13 = vld [vmem:[%s8313_s1 + $0x150] sm:$0xff]  ;;  %vm2023_vm12 = vcmp.eq.s32.totalorder %v1961_v33, %v7073_v23  ;;  %vm2025_vm13 = vcmp.eq.s32.totalorder %v1961_v33, %v7080_v45  ;;  %v7468_v49 = vpop.f32.mrb[100].mxu0 }
 0x253   : > { %v3175_v48 = vmul.f32 %v3710_v37, %v3001_v26  ;;  %v2535_v14 = vmul.f32 %v4146_v8, %v8785_v55  ;;  %v8786_v37 = vld [vmem:[#allocation10_spill] sm:$0xff]  ;;  %v3712_v16 = vsel %vm2023_vm12, 1.0, %v8751_v54  ;;  %v7475_v8 = vpop.f32.mrb[101].mxu0  ;;  %vm2024_vm14 = vcmp.eq.s32.totalorder %v1961_v33, %v7086_v35 }
 0x254   : > { %v2534_v34 = vmul.f32 %v4145_v46, %v8782_v44  ;;  %v8787_v26 = vsub.f32 1.0, %v8786_v37  ;;  %v3174_v46 = vmul.f32 %v3709_v63, %v2746_v9  ;;  %v4148_v63 = vld [vmem:[%s8313_s1 + $0x148] sm:$0xff]  ;;  %vm2026_vm15 = vcmp.eq.s32.totalorder %v1961_v33, %v7093_v21  ;;  %v4149_v37 = vld [vmem:[%s8313_s1 + $0x158] sm:$0xff]  ;;  %v4150_v33 = vld [vmem:[%s8313_s1 + $0x160] sm:$0xff] }
 0x255   : > { %v3347_v5 = vadd.f32 %v3346_v38, %v3175_v48  ;;  %v2750_v44 = vadd.f32 %v7242_v40, %v2535_v14  ;;  %v8788_v48 = vld [vmem:[#allocation11_spill] sm:$0xff]  ;;  %v3713_v14 = vsel %vm2024_vm14, 1.0, %v8751_v54 }
 0x256   : > { %v3003_v43 = vadd.f32 %v8783_v11, %v2534_v34  ;;  %v2537_v7 = vmul.f32 %v4147_v13, %v8787_v26  ;;  %v3714_v34 = vsel %vm2025_vm13, 1.0, %v8751_v54  ;;  %v7473_v11 = vpop.f32.mrb[100].mxu1  ;;  %v3310_v20 = vadd.f32 %v3309_v62, %v3174_v46  ;;  %v8790_v26 = vld [vmem:[#allocation12_spill] sm:$0xff] }
 0x257   : > { %v8789_v9 = vsub.f32 1.0, %v8788_v48  ;;  %v3177_v55 = vmul.f32 %v3712_v16, %v2750_v44  ;;  %v3715_v13 = vsel %vm2026_vm15, 1.0, %v8751_v54  ;;  %v8793_v16 = vld [vmem:[#allocation13_spill] sm:$0xff] }
 0x258   : > { %v3176_v27 = vmul.f32 %v3711_v18, %v3003_v43  ;;  %v3007_v38 = vadd.f32 %v7247_v1, %v2537_v7  ;;  %v7484_v43 = vpop.f32.mrb[101].mxu1  ;;  %v8791_v7 = vsub.f32 1.0, %v8790_v26 }
 0x259   : > { %v2536_v18 = vmul.f32 %v4148_v63, %v8789_v9  ;;  %v7495_v63 = vpop.f32.mrb[102].mxu0 }
 0x25a   : > { %v3384_v40 = vadd.f32 %v3383_v28, %v3176_v27  ;;  %v3179_v62 = vmul.f32 %v3714_v34, %v3007_v38  ;;  %v2538_v46 = vmul.f32 %v4149_v37, %v8791_v7  ;;  %8792 = vst [vmem:[#allocation3_spill] sm:$0xff] %v7495_v63  ;;  %v3274_v28 = vadd.f32 %v3273_v4, %v3177_v55  ;;  %v4151_v34 = vld [vmem:[%s8313_s1 + $0x170] sm:$0xff]  ;;  %v8795_v38 = vld [vmem:[#allocation14_spill] sm:$0xff]  ;;  %v7510_v37 = vpop.f32.mrb[103].mxu0  ;;  %v4152_v7 = vld [vmem:[%s8313_s1 + $0x168] sm:$0xff] }
 0x25b   : > { %v2752_v1 = vadd.f32 %v7249_v12, %v2536_v18  ;;  %v1962_v27 = vadd.s32 88, %v6966_v51  ;;  %v8794_v12 = vsub.f32 1.0, %v8793_v16  ;;  %v8796_v48 = vsub.f32 1.0, %v8795_v38  ;;  %v7508_v18 = vpop.f32.mrb[102].mxu1 }
 0x25c   : > { %v3348_v4 = vadd.f32 %v3347_v5, %v3179_v62  ;;  %v3009_v26 = vadd.f32 %v7252_v47, %v2538_v46  ;;  %v7518_v63 = vpop.f32.mrb[103].mxu1  ;;  %v7526_v46 = vpop.f32.mrb[104].mxu0 }
 0x25d   : > { %v2539_v44 = vmul.f32 %v4150_v33, %v8794_v12  ;;  %v2541_v9 = vmul.f32 %v4151_v34, %v8796_v48  ;;  %v3178_v55 = vmul.f32 %v3713_v14, %v2752_v1  ;;  %v8797_v33 = vld [vmem:[#allocation15_spill] sm:$0xff]  ;;  %vm2027_vm0 = vcmp.eq.s32.totalorder %v1962_v27, %v7073_v23 }
 0x25e   : > { %v8798_v16 = vsub.f32 1.0, %v8797_v33  ;;  %vm2029_vm1 = vcmp.eq.s32.totalorder %v1962_v27, %v7080_v45  ;;  %v3180_v62 = vmul.f32 %v3715_v13, %v3009_v26  ;;  %v3716_v47 = vsel %vm2027_vm0, 1.0, %v8751_v54  ;;  %v7530_v33 = vpop.f32.mrb[104].mxu1  ;;  %v8799_v13 = vld [vmem:[#allocation16_spill] sm:$0xff] }
 0x25f   : > { %v2756_v34 = vadd.f32 %v7260_v52, %v2539_v44  ;;  %v3013_v5 = vadd.f32 %v7268_v6, %v2541_v9  ;;  %v3311_v14 = vadd.f32 %v3310_v20, %v3178_v55  ;;  %v3718_v1 = vsel %vm2029_vm1, 1.0, %v8751_v54  ;;  %v7532_v52 = vpop.f32.mrb[105].mxu0  ;;  %v4153_v20 = vld [vmem:[%s8313_s1 + $0x178] sm:$0xff]  ;;  %v7541_v26 = vpop.f32.mrb[105].mxu1 }
 0x260   : > { %v2540_v12 = vmul.f32 %v4152_v7, %v8798_v16  ;;  %vm2028_vm2 = vcmp.eq.s32.totalorder %v1962_v27, %v7086_v35  ;;  %v3385_v44 = vadd.f32 %v3384_v40, %v3180_v62  ;;  %vm2030_vm3 = vcmp.eq.s32.totalorder %v1962_v27, %v7093_v21  ;;  %v4154_v27 = vld [vmem:[%s8313_s1 + $0x180] sm:$0xff]  ;;  %v8801_v62 = vld [vmem:[#allocation17_spill] sm:$0xff] }
 0x261   : > { %v3181_v38 = vmul.f32 %v3716_v47, %v2756_v34  ;;  %v3183_v48 = vmul.f32 %v3718_v1, %v3013_v5  ;;  %v3717_v6 = vsel %vm2028_vm2, 1.0, %v8751_v54  ;;  %v8800_v9 = vsub.f32 1.0, %v8799_v13 }
 0x262   : > { %v2758_v7 = vadd.f32 %v7270_v22, %v2540_v12  ;;  %v3719_v34 = vsel %vm2030_vm3, 1.0, %v8751_v54  ;;  %v1963_v5 = vadd.s32 96, %v6966_v51  ;;  %v8802_v47 = vsub.f32 1.0, %v8801_v62 }
 0x263   : > { %v2542_v55 = vmul.f32 %v4153_v20, %v8800_v9  ;;  %v3275_v16 = vadd.f32 %v3274_v28, %v3181_v38  ;;  %v3349_v22 = vadd.f32 %v3348_v4, %v3183_v48  ;;  %v4155_v20 = vld [vmem:[%s8313_s1 + $0x190] sm:$0xff]  ;;  %v8803_v28 = vld [vmem:[#allocation18_spill] sm:$0xff]  ;;  %v7556_v48 = vpop.f32.mrb[106].mxu0 }
 0x264   : > { %v3182_v12 = vmul.f32 %v3717_v6, %v2758_v7  ;;  %v2543_v1 = vmul.f32 %v4154_v27, %v8802_v47  ;;  %v8804_v4 = vsub.f32 1.0, %v8803_v28  ;;  %v8805_v6 = vld [vmem:[#allocation19_spill] sm:$0xff]  ;;  %v8807_v27 = vld [vmem:[#allocation20_spill] sm:$0xff]  ;;  %v1964_v28 = vadd.s32 104, %v6966_v51 }
 0x265   : > { %v3015_v40 = vadd.f32 %v7283_v61, %v2542_v55  ;;  %v4156_v61 = vld [vmem:[%s8313_s1 + $0x188] sm:$0xff]  ;;  %v8806_v13 = vsub.f32 1.0, %v8805_v6  ;;  %v4157_v55 = vld [vmem:[%s8313_s1 + $0x198] sm:$0xff]  ;;  %v8808_v62 = vsub.f32 1.0, %v8807_v27  ;;  %vm2031_vm4 = vcmp.eq.s32.totalorder %v1963_v5, %v7073_v23 }
 0x266   : > { %v2545_v38 = vmul.f32 %v4155_v20, %v8804_v4  ;;  %v3312_v7 = vadd.f32 %v3311_v14, %v3182_v12  ;;  %v7569_v20 = vpop.f32.mrb[106].mxu1  ;;  %v7571_v4 = vpop.f32.mrb[107].mxu0  ;;  %v2762_v12 = vadd.f32 %v7299_v19, %v2543_v1  ;;  %vm2033_vm5 = vcmp.eq.s32.totalorder %v1963_v5, %v7080_v45 }
 0x267   : > { %v2544_v9 = vmul.f32 %v4156_v61, %v8806_v13  ;;  %v2546_v47 = vmul.f32 %v4157_v55, %v8808_v62  ;;  %8809 = vst [vmem:[#allocation4_spill] sm:$0xff] %v7571_v4  ;;  %v3184_v14 = vmul.f32 %v3719_v34, %v3015_v40  ;;  %v7576_v61 = vpop.f32.mrb[107].mxu1  ;;  %v3720_v6 = vsel %vm2031_vm4, 1.0, %v8751_v54  ;;  %v7584_v4 = vpop.f32.mrb[108].mxu0 }
 0x268   : > { %8810 = vst [vmem:[#allocation5_spill] sm:$0xff] %v7576_v61  ;;  %v3722_v13 = vsel %vm2033_vm5, 1.0, %v8751_v54  ;;  %v3019_v55 = vadd.f32 %v7304_v0, %v2545_v38  ;;  %vm2032_vm6 = vcmp.eq.s32.totalorder %v1963_v5, %v7086_v35  ;;  %v3185_v62 = vmul.f32 %v3720_v6, %v2762_v12  ;;  %v7589_v61 = vpop.f32.mrb[108].mxu1  ;;  %v7591_v0 = vpop.f32.mrb[109].mxu0 }
 0x269   : > { %v3386_v27 = vadd.f32 %v3385_v44, %v3184_v14  ;;  %v3721_v34 = vsel %vm2032_vm6, 1.0, %v8751_v54  ;;  %v2764_v40 = vadd.f32 %v7306_v15, %v2544_v9  ;;  %vm2034_vm7 = vcmp.eq.s32.totalorder %v1963_v5, %v7093_v21  ;;  %v7595_v15 = vpop.f32.mrb[109].mxu1  ;;  %v8812_v5 = vld [vmem:[#allocation21_spill] sm:$0xff] }
 0x26a   : > { %v3187_v19 = vmul.f32 %v3722_v13, %v3019_v55  ;;  %v3021_v1 = vadd.f32 %v7311_v10, %v2546_v47  ;;  %vm2035_vm8 = vcmp.eq.s32.totalorder %v1964_v28, %v7073_v23  ;;  %v3276_v38 = vadd.f32 %v3275_v16, %v3185_v62  ;;  %8811 = vst [vmem:[#allocation6_spill] sm:$0xff] %v7595_v15  ;;  %v4158_v10 = vld [vmem:[%s8313_s1 + $0x1a0] sm:$0xff]  ;;  %v4159_v62 = vld [vmem:[%s8313_s1 + $0x1b0] sm:$0xff]  ;;  %v7619_v15 = vpop.f32.mrb[110].mxu1 }
 0x26b   : > { %v3186_v44 = vmul.f32 %v3721_v34, %v2764_v40  ;;  %v3723_v14 = vsel %vm2034_vm7, 1.0, %v8751_v54  ;;  %v3724_v12 = vsel %vm2035_vm8, 1.0, %v8751_v54  ;;  %v8813_v47 = vsub.f32 1.0, %v8812_v5  ;;  %v8814_v34 = vld [vmem:[#allocation22_spill] sm:$0xff]  ;;  %8819 = vst [vmem:[#allocation8_spill] sm:$0xff] %v7619_v15 }
 0x26c   : > { %v3350_v9 = vadd.f32 %v3349_v22, %v3187_v19  ;;  %v3188_v6 = vmul.f32 %v3723_v14, %v3021_v1  ;;  %vm2037_vm9 = vcmp.eq.s32.totalorder %v1964_v28, %v7080_v45  ;;  %v8815_v40 = vsub.f32 1.0, %v8814_v34  ;;  %v7610_v19 = vpop.f32.mrb[110].mxu0 }
 0x26d   : > { %v2547_v13 = vmul.f32 %v4158_v10, %v8813_v47  ;;  %v3313_v55 = vadd.f32 %v3312_v7, %v3186_v44  ;;  %v3726_v16 = vsel %vm2037_vm9, 1.0, %v8751_v54  ;;  %vm2036_vm10 = vcmp.eq.s32.totalorder %v1964_v28, %v7086_v35  ;;  %8816 = vst [vmem:[#allocation7_spill] sm:$0xff] %v7610_v19  ;;  %v4160_v7 = vld [vmem:[%s8313_s1 + $0x1a8] sm:$0xff]  ;;  %v8817_v44 = vld [vmem:[#allocation23_spill] sm:$0xff]  ;;  %v7621_v34 = vpop.f32.mrb[111].mxu0  ;;  %v7631_v19 = vpop.f32.mrb[111].mxu1 }
 0x26e   : > { %v2549_v22 = vmul.f32 %v4159_v62, %v8815_v40  ;;  %v3387_v1 = vadd.f32 %v3386_v27, %v3188_v6  ;;  %v3725_v10 = vsel %vm2036_vm10, 1.0, %v8751_v54  ;;  %v8818_v5 = vsub.f32 1.0, %v8817_v44  ;;  %8820 = vst [vmem:[#allocation97_spill] sm:$0xff] %v7621_v34  ;;  %v8821_v27 = vld [vmem:[#allocation24_spill] sm:$0xff]  ;;  %8823 = vst [vmem:[#allocation9_spill] sm:$0xff] %v7631_v19 }
 0x26f   : > { %v2768_v14 = vadd.f32 %v7317_v31, %v2547_v13  ;;  %vm2038_vm11 = vcmp.eq.s32.totalorder %v1964_v28, %v7093_v21  ;;  %v4161_v31 = vld [vmem:[%s8313_s1 + $0x1b8] sm:$0xff]  ;;  %v8822_v6 = vsub.f32 1.0, %v8821_v27  ;;  %v1965_v40 = vadd.s32 112, %v6966_v51  ;;  %v8824_v28 = vld [vmem:[#allocation25_spill] sm:$0xff] }
 0x270   : > { %v2548_v47 = vmul.f32 %v4160_v7, %v8818_v5  ;;  %v3025_v62 = vadd.f32 %v7334_v57, %v2549_v22  ;;  %v3727_v5 = vsel %vm2038_vm11, 1.0, %v8751_v54  ;;  %v4162_v57 = vld [vmem:[%s8313_s1 + $0x1c0] sm:$0xff]  ;;  %v8825_v22 = vsub.f32 1.0, %v8824_v28 }
 0x271   : > { %v2550_v13 = vmul.f32 %v4161_v31, %v8822_v6  ;;  %v3189_v7 = vmul.f32 %v3724_v12, %v2768_v14  ;;  %vm2039_vm12 = vcmp.eq.s32.totalorder %v1965_v40, %v7073_v23  ;;  %vm2041_vm13 = vcmp.eq.s32.totalorder %v1965_v40, %v7080_v45  ;;  %v7643_v31 = vpop.f32.mrb[112].mxu0  ;;  %v7647_v6 = vpop.f32.mrb[112].mxu1 }
 0x272   : > { %v2770_v44 = vadd.f32 %v7336_v2, %v2548_v47  ;;  %v2551_v34 = vmul.f32 %v4162_v57, %v8825_v22  ;;  %v3191_v15 = vmul.f32 %v3726_v16, %v3025_v62  ;;  %v3728_v14 = vsel %vm2039_vm12, 1.0, %v8751_v54  ;;  %v7649_v19 = vpop.f32.mrb[113].mxu0  ;;  %v4163_v62 = vld [vmem:[%s8313_s1 + $0x1d0] sm:$0xff] }
 0x273   : > { %v3027_v27 = vadd.f32 %v7340_v42, %v2550_v13  ;;  %v3277_v12 = vadd.f32 %v3276_v38, %v3189_v7  ;;  %v3730_v42 = vsel %vm2041_vm13, 1.0, %v8751_v54  ;;  %v8826_v13 = vld [vmem:[#allocation26_spill] sm:$0xff]  ;;  %vm2040_vm14 = vcmp.eq.s32.totalorder %v1965_v40, %v7086_v35 }
 0x274   : > { %v3190_v2 = vmul.f32 %v3725_v10, %v2770_v44  ;;  %v2774_v47 = vadd.f32 %v7349_v3, %v2551_v34  ;;  %v3351_v57 = vadd.f32 %v3350_v9, %v3191_v15  ;;  %v8827_v28 = vsub.f32 1.0, %v8826_v13  ;;  %v7657_v10 = vpop.f32.mrb[113].mxu1  ;;  %v4164_v3 = vld [vmem:[%s8313_s1 + $0x1c8] sm:$0xff]  ;;  %v8828_v15 = vld [vmem:[#allocation27_spill] sm:$0xff] }
 0x275   : > { %v3192_v16 = vmul.f32 %v3727_v5, %v3027_v27  ;;  %v8829_v9 = vsub.f32 1.0, %v8828_v15  ;;  %v3729_v27 = vsel %vm2040_vm14, 1.0, %v8751_v54  ;;  %vm2042_vm15 = vcmp.eq.s32.totalorder %v1965_v40, %v7093_v21  ;;  %v8831_v13 = vld [vmem:[#allocation28_spill] sm:$0xff]  ;;  %v4167_v15 = vld [vmem:[%s8313_s1 + $0x1f0] sm:$0xff] }
 0x276   : > { %v2553_v38 = vmul.f32 %v4163_v62, %v8827_v28  ;;  %v3314_v7 = vadd.f32 %v3313_v55, %v3190_v2  ;;  %v3193_v44 = vmul.f32 %v3728_v14, %v2774_v47  ;;  %v7668_v62 = vpop.f32.mrb[114].mxu0  ;;  %v3731_v14 = vsel %vm2042_vm15, 1.0, %v8751_v54  ;;  %v4165_v47 = vld [vmem:[%s8313_s1 + $0x1d8] sm:$0xff] }
 0x277   : > { %v2552_v34 = vmul.f32 %v4164_v3, %v8829_v9  ;;  %v3388_v5 = vadd.f32 %v3387_v1, %v3192_v16  ;;  %8830 = vst [vmem:[#allocation10_spill] sm:$0xff] %v7668_v62  ;;  %v8832_v28 = vsub.f32 1.0, %v8831_v13  ;;  %v7677_v16 = vpop.f32.mrb[114].mxu1  ;;  %v1966_v40 = vadd.s32 120, %v6966_v51  ;;  %v8837_v9 = vld [vmem:[#allocation30_spill] sm:$0xff] }
 0x278   : > { %v3031_v22 = vadd.f32 %v7353_v25, %v2553_v38  ;;  %v3278_v55 = vadd.f32 %v3277_v12, %v3193_v44  ;;  %8833 = vst [vmem:[#allocation11_spill] sm:$0xff] %v7677_v16  ;;  %v7679_v25 = vpop.f32.mrb[115].mxu0  ;;  %v8835_v12 = vld [vmem:[#allocation29_spill] sm:$0xff]  ;;  %v7692_v13 = vpop.f32.mrb[115].mxu1 }
 0x279   : > { %v2776_v2 = vadd.f32 %v7355_v59, %v2552_v34  ;;  %v2554_v1 = vmul.f32 %v4165_v47, %v8832_v28  ;;  %8834 = vst [vmem:[#allocation12_spill] sm:$0xff] %v7679_v25  ;;  %v4166_v59 = vld [vmem:[%s8313_s1 + $0x1e0] sm:$0xff]  ;;  %v8836_v44 = vsub.f32 1.0, %v8835_v12  ;;  %v8838_v34 = vsub.f32 1.0, %v8837_v9 }
 0x27a   : > { %v3195_v38 = vmul.f32 %v3730_v42, %v3031_v22  ;;  %v4168_v22 = vld [vmem:[%s8313_s1 + $0x1e8] sm:$0xff]  ;;  %v8839_v25 = vld [vmem:[#allocation31_spill] sm:$0xff]  ;;  %vm2043_vm0 = vcmp.eq.s32.totalorder %v1966_v40, %v7073_v23  ;;  %vm2045_vm1 = vcmp.eq.s32.totalorder %v1966_v40, %v7080_v45  ;;  %vm2044_vm2 = vcmp.eq.s32.totalorder %v1966_v40, %v7086_v35 }
 0x27b   : > { %v2555_v3 = vmul.f32 %v4166_v59, %v8836_v44  ;;  %v2557_v47 = vmul.f32 %v4167_v15, %v8838_v34  ;;  %v3194_v28 = vmul.f32 %v3729_v27, %v2776_v2  ;;  %v3033_v42 = vadd.f32 %v7368_v24, %v2554_v1  ;;  %v4169_v59 = vld [vmem:[%s8313_s1 + $0x1f8] sm:$0xff]  ;;  %v8841_v44 = vld [vmem:[#allocation32_spill] sm:$0xff]  ;;  %v7708_v24 = vpop.f32.mrb[116].mxu0  ;;  %v7712_v34 = vpop.f32.mrb[116].mxu1 }
 0x27c   : > { %v8840_v16 = vsub.f32 1.0, %v8839_v25  ;;  %v8842_v62 = vsub.f32 1.0, %v8841_v44  ;;  %v3352_v15 = vadd.f32 %v3351_v57, %v3195_v38  ;;  %v3734_v25 = vsel %vm2045_vm1, 1.0, %v8751_v54  ;;  %v7719_v38 = vpop.f32.mrb[117].mxu1 }
 0x27d   : > { %v2780_v27 = vadd.f32 %v7383_v39, %v2555_v3  ;;  %v3315_v2 = vadd.f32 %v3314_v7, %v3194_v28  ;;  %v3196_v1 = vmul.f32 %v3731_v14, %v3033_v42  ;;  %v3037_v57 = vadd.f32 %v7389_v41, %v2557_v47 }
 0x27e   : > { %v2556_v12 = vmul.f32 %v4168_v22, %v8840_v16  ;;  %v2558_v9 = vmul.f32 %v4169_v59, %v8842_v62  ;;  %v3732_v16 = vsel %vm2043_vm0, 1.0, %v8751_v54  ;;  %v7714_v22 = vpop.f32.mrb[117].mxu0  ;;  %v3733_v7 = vsel %vm2044_vm2, 1.0, %v8751_v54 }
 0x27f   : > { %v3197_v62 = vmul.f32 %v3732_v16, %v2780_v27  ;;  %v3389_v3 = vadd.f32 %v3388_v5, %v3196_v1  ;;  %vm2046_vm3 = vcmp.eq.s32.totalorder %v1966_v40, %v7093_v21  ;;  %v3199_v42 = vmul.f32 %v3734_v25, %v3037_v57  ;;  %v7725_v27 = vpop.f32.mrb[118].mxu0  ;;  %v8843_v5 = vld [vmem:[#allocation33_spill] sm:$0xff]  ;;  %v7738_v16 = vpop.f32.mrb[118].mxu1 }
 0x280   : > { %v2782_v39 = vadd.f32 %v7391_v32, %v2556_v12  ;;  %v3039_v14 = vadd.f32 %v7395_v58, %v2558_v9  ;;  %v3735_v44 = vsel %vm2046_vm3, 1.0, %v8751_v54  ;;  %v1967_v47 = vadd.s32 128, %v6966_v51  ;;  %v4170_v32 = vld [vmem:[%s8313_s1 + $0x200] sm:$0xff]  ;;  %v4171_v58 = vld [vmem:[%s8313_s1 + $0x210] sm:$0xff]  ;;  %v7740_v25 = vpop.f32.mrb[119].mxu0 }
 0x281   : > { %v3279_v28 = vadd.f32 %v3278_v55, %v3197_v62  ;;  %v8844_v12 = vsub.f32 1.0, %v8843_v5  ;;  %v8845_v55 = vld [vmem:[#allocation34_spill] sm:$0xff]  ;;  %v3353_v62 = vadd.f32 %v3352_v15, %v3199_v42  ;;  %v8849_v5 = vld [vmem:[#allocation36_spill] sm:$0xff] }
 0x282   : > { %v3198_v59 = vmul.f32 %v3733_v7, %v2782_v39  ;;  %v3200_v41 = vmul.f32 %v3735_v44, %v3039_v14  ;;  %v8846_v40 = vsub.f32 1.0, %v8845_v55  ;;  %v4172_v39 = vld [vmem:[%s8313_s1 + $0x208] sm:$0xff]  ;;  %v8847_v7 = vld [vmem:[#allocation35_spill] sm:$0xff]  ;;  %v7752_v55 = vpop.f32.mrb[119].mxu1  ;;  %vm2047_vm4 = vcmp.eq.s32.totalorder %v1967_v47, %v7073_v23 }
 0x283   : > { %v2559_v1 = vmul.f32 %v4170_v32, %v8844_v12  ;;  %v8848_v14 = vsub.f32 1.0, %v8847_v7  ;;  %v4173_v32 = vld [vmem:[%s8313_s1 + $0x218] sm:$0xff]  ;;  %v8850_v12 = vsub.f32 1.0, %v8849_v5  ;;  %vm2049_vm5 = vcmp.eq.s32.totalorder %v1967_v47, %v7080_v45 }
 0x284   : > { %v2561_v9 = vmul.f32 %v4171_v58, %v8846_v40  ;;  %v3316_v57 = vadd.f32 %v3315_v2, %v3198_v59  ;;  %v3390_v40 = vadd.f32 %v3389_v3, %v3200_v41  ;;  %v3736_v2 = vsel %vm2047_vm4, 1.0, %v8751_v54 }
 0x285   : > { %v2560_v44 = vmul.f32 %v4172_v39, %v8848_v14  ;;  %v2562_v58 = vmul.f32 %v4173_v32, %v8850_v12  ;;  %v2786_v15 = vadd.f32 %v7406_v53, %v2559_v1  ;;  %v3738_v42 = vsel %vm2049_vm5, 1.0, %v8751_v54  ;;  %v7761_v39 = vpop.f32.mrb[120].mxu0  ;;  %v7766_v53 = vpop.f32.mrb[120].mxu1 }
 0x286   : > { %v3043_v59 = vadd.f32 %v7414_v17, %v2561_v9  ;;  %vm2048_vm6 = vcmp.eq.s32.totalorder %v1967_v47, %v7086_v35  ;;  %vm2050_vm7 = vcmp.eq.s32.totalorder %v1967_v47, %v7093_v21  ;;  %8851 = vst [vmem:[#allocation13_spill] sm:$0xff] %v7766_v53  ;;  %v7768_v41 = vpop.f32.mrb[121].mxu0  ;;  %v1968_v9 = vadd.s32 136, %v6966_v51  ;;  %v7773_v5 = vpop.f32.mrb[121].mxu1  ;;  %v8853_v47 = vld [vmem:[#allocation37_spill] sm:$0xff] }
 0x287   : > { %v3201_v7 = vmul.f32 %v3736_v2, %v2786_v15  ;;  %v3737_v14 = vsel %vm2048_vm6, 1.0, %v8751_v54  ;;  %v2788_v3 = vadd.f32 %v7416_v36, %v2560_v44  ;;  %8852 = vst [vmem:[#allocation14_spill] sm:$0xff] %v7768_v41  ;;  %v3739_v32 = vsel %vm2050_vm7, 1.0, %v8751_v54  ;;  %v4174_v36 = vld [vmem:[%s8313_s1 + $0x220] sm:$0xff] }
 0x288   : > { %v3203_v1 = vmul.f32 %v3738_v42, %v3043_v59  ;;  %v3045_v17 = vadd.f32 %v7426_v30, %v2562_v58  ;;  %v8854_v44 = vsub.f32 1.0, %v8853_v47  ;;  %v4175_v42 = vld [vmem:[%s8313_s1 + $0x230] sm:$0xff]  ;;  %v8855_v59 = vld [vmem:[#allocation38_spill] sm:$0xff]  ;;  %vm2051_vm8 = vcmp.eq.s32.totalorder %v1968_v9, %v7073_v23  ;;  %v7792_v47 = vpop.f32.mrb[122].mxu1 }
 0x289   : > { %v3280_v12 = vadd.f32 %v3279_v28, %v3201_v7  ;;  %v3202_v15 = vmul.f32 %v3737_v14, %v2788_v3  ;;  %v8856_v41 = vsub.f32 1.0, %v8855_v59  ;;  %vm2053_vm9 = vcmp.eq.s32.totalorder %v1968_v9, %v7080_v45  ;;  %v7787_v28 = vpop.f32.mrb[122].mxu0 }
 0x28a   : > { %v2563_v2 = vmul.f32 %v4174_v36, %v8854_v44  ;;  %v3354_v58 = vadd.f32 %v3353_v62, %v3203_v1  ;;  %v3204_v53 = vmul.f32 %v3739_v32, %v3045_v17  ;;  %v3740_v14 = vsel %vm2051_vm8, 1.0, %v8751_v54  ;;  %v7794_v44 = vpop.f32.mrb[123].mxu0  ;;  %v4176_v1 = vld [vmem:[%s8313_s1 + $0x228] sm:$0xff] }
 0x28b   : > { %v2565_v30 = vmul.f32 %v4175_v42, %v8856_v41  ;;  %v3317_v7 = vadd.f32 %v3316_v57, %v3202_v15  ;;  %v3742_v36 = vsel %vm2053_vm9, 1.0, %v8751_v54  ;;  %8857 = vst [vmem:[#allocation15_spill] sm:$0xff] %v7794_v44  ;;  %vm2052_vm10 = vcmp.eq.s32.totalorder %v1968_v9, %v7086_v35  ;;  %v8858_v57 = vld [vmem:[#allocation39_spill] sm:$0xff]  ;;  %v7803_v15 = vpop.f32.mrb[123].mxu1 }
 0x28c   : > { %v2792_v3 = vadd.f32 %v7438_v29, %v2563_v2  ;;  %v3391_v41 = vadd.f32 %v3390_v40, %v3204_v53  ;;  %v8859_v32 = vsub.f32 1.0, %v8858_v57  ;;  %8860 = vst [vmem:[#allocation16_spill] sm:$0xff] %v7803_v15  ;;  %v3741_v2 = vsel %vm2052_vm10, 1.0, %v8751_v54  ;;  %v8861_v40 = vld [vmem:[#allocation40_spill] sm:$0xff]  ;;  %v8863_v15 = vld [vmem:[#allocation41_spill] sm:$0xff] }
 0x28d   : > { %v3049_v62 = vadd.f32 %v7446_v60, %v2565_v30  ;;  %vm2054_vm11 = vcmp.eq.s32.totalorder %v1968_v9, %v7093_v21  ;;  %v4177_v60 = vld [vmem:[%s8313_s1 + $0x238] sm:$0xff]  ;;  %v8862_v53 = vsub.f32 1.0, %v8861_v40  ;;  %v4178_v9 = vld [vmem:[%s8313_s1 + $0x240] sm:$0xff]  ;;  %v8864_v44 = vsub.f32 1.0, %v8863_v15 }
 0x28e   : > { %v2564_v17 = vmul.f32 %v4176_v1, %v8859_v32  ;;  %v3205_v29 = vmul.f32 %v3740_v14, %v2792_v3  ;;  %v3743_v57 = vsel %vm2054_vm11, 1.0, %v8751_v54  ;;  %v1969_v1 = vadd.s32 144, %v6966_v51  ;;  %v7815_v32 = vpop.f32.mrb[124].mxu0 }
 0x28f   : > { %v2566_v42 = vmul.f32 %v4177_v60, %v8862_v53  ;;  %v3207_v59 = vmul.f32 %v3742_v36, %v3049_v62  ;;  %v2567_v40 = vmul.f32 %v4178_v9, %v8864_v44  ;;  %v8865_v36 = vld [vmem:[#allocation42_spill] sm:$0xff]  ;;  %v7828_v60 = vpop.f32.mrb[124].mxu1  ;;  %v7830_v53 = vpop.f32.mrb[125].mxu0 }
 0x290   : > { %v2794_v30 = vadd.f32 %v7448_v50, %v2564_v17  ;;  %v3281_v14 = vadd.f32 %v3280_v12, %v3205_v29  ;;  %v4179_v50 = vld [vmem:[%s8313_s1 + $0x250] sm:$0xff]  ;;  %v8866_v62 = vsub.f32 1.0, %v8865_v36  ;;  %vm2055_vm12 = vcmp.eq.s32.totalorder %v1969_v1, %v7073_v23  ;;  %v7834_v29 = vpop.f32.mrb[125].mxu1 }
 0x291   : > { %v3051_v3 = vadd.f32 %v7453_v56, %v2566_v42  ;;  %v3355_v12 = vadd.f32 %v3354_v58, %v3207_v59  ;;  %vm2057_vm13 = vcmp.eq.s32.totalorder %v1969_v1, %v7080_v45  ;;  %8867 = vst [vmem:[#allocation17_spill] sm:$0xff] %v7834_v29  ;;  %v3744_v15 = vsel %vm2055_vm12, 1.0, %v8751_v54  ;;  %v4180_v58 = vld [vmem:[%s8313_s1 + $0x248] sm:$0xff] }
 0x292   : > { %v2569_v17 = vmul.f32 %v4179_v50, %v8866_v62  ;;  %v3206_v56 = vmul.f32 %v3741_v2, %v2794_v30  ;;  %v2798_v42 = vadd.f32 %v7468_v49, %v2567_v40  ;;  %v3746_v9 = vsel %vm2057_vm13, 1.0, %v8751_v54  ;;  %v8868_v2 = vld [vmem:[#allocation43_spill] sm:$0xff]  ;;  %v7846_v62 = vpop.f32.mrb[126].mxu0 }
 0x293   : > { %v3208_v44 = vmul.f32 %v3743_v57, %v3051_v3  ;;  %vm2056_vm14 = vcmp.eq.s32.totalorder %v1969_v1, %v7086_v35  ;;  %v8869_v59 = vsub.f32 1.0, %v8868_v2  ;;  %8870 = vst [vmem:[#allocation18_spill] sm:$0xff] %v7846_v62  ;;  %vm2058_vm15 = vcmp.eq.s32.totalorder %v1969_v1, %v7093_v21  ;;  %v8873_v2 = vld [vmem:[#allocation44_spill] sm:$0xff] }
 0x294   : > { %v3318_v50 = vadd.f32 %v3317_v7, %v3206_v56  ;;  %v3055_v36 = vadd.f32 %v7473_v11, %v2569_v17  ;;  %v3209_v3 = vmul.f32 %v3744_v15, %v2798_v42  ;;  %v3745_v49 = vsel %vm2056_vm14, 1.0, %v8751_v54  ;;  %v7850_v7 = vpop.f32.mrb[126].mxu1  ;;  %v7852_v11 = vpop.f32.mrb[127].mxu0 }
 0x295   : > { %v2568_v30 = vmul.f32 %v4180_v58, %v8869_v59  ;;  %v3392_v57 = vadd.f32 %v3391_v41, %v3208_v44  ;;  %8871 = vst [vmem:[#allocation19_spill] sm:$0xff] %v7850_v7  ;;  %8872 = vst [vmem:[#allocation20_spill] sm:$0xff] %v7852_v11  ;;  %v3747_v56 = vsel %vm2058_vm15, 1.0, %v8751_v54  ;;  %v4181_v58 = vld [vmem:[%s8313_s1 + $0x258] sm:$0xff]  ;;  %v8874_v41 = vsub.f32 1.0, %v8873_v2  ;;  %v7861_v15 = vpop.f32.mrb[127].mxu1 }
 0x296   : > { %v3211_v40 = vmul.f32 %v3746_v9, %v3055_v36  ;;  %8875 = vst [vmem:[#allocation21_spill] sm:$0xff] %v7861_v15  ;;  %v3282_v42 = vadd.f32 %v3281_v14, %v3209_v3  ;;  %v1970_v1 = vadd.s32 152, %v6966_v51  ;;  %v4182_v9 = vld [vmem:[%s8313_s1 + $0x260] sm:$0xff]  ;;  %v8876_v36 = vld [vmem:[#allocation45_spill] sm:$0xff]  ;;  %v8878_v11 = vld [vmem:[#allocation46_spill] sm:$0xff] }
 0x297   : > { %v2800_v17 = vadd.f32 %v7475_v8, %v2568_v30  ;;  %v2570_v44 = vmul.f32 %v4181_v58, %v8874_v41  ;;  %v8877_v8 = vsub.f32 1.0, %v8876_v36  ;;  %v4183_v30 = vld [vmem:[%s8313_s1 + $0x270] sm:$0xff]  ;;  %v8879_v7 = vsub.f32 1.0, %v8878_v11  ;;  %v4184_v3 = vld [vmem:[%s8313_s1 + $0x268] sm:$0xff]  ;;  %v8880_v15 = vld [vmem:[#allocation47_spill] sm:$0xff] }
 0x298   : > { %v3356_v58 = vadd.f32 %v3355_v12, %v3211_v40  ;;  %v8881_v62 = vsub.f32 1.0, %v8880_v15  ;;  %vm2059_vm0 = vcmp.eq.s32.totalorder %v1970_v1, %v7073_v23  ;;  %vm2061_vm1 = vcmp.eq.s32.totalorder %v1970_v1, %v7080_v45 }
 0x299   : > { %v2571_v59 = vmul.f32 %v4182_v9, %v8877_v8  ;;  %v2573_v2 = vmul.f32 %v4183_v30, %v8879_v7  ;;  %v3210_v41 = vmul.f32 %v3745_v49, %v2800_v17  ;;  %v3057_v14 = vadd.f32 %v7484_v43, %v2570_v44  ;;  %v8882_v9 = vld [vmem:[#allocation3_spill] sm:$0xff] }
 0x29a   : > { %v2572_v29 = vmul.f32 %v4184_v3, %v8881_v62  ;;  %v3748_v49 = vsel %vm2059_vm0, 1.0, %v8751_v54  ;;  %v3750_v43 = vsel %vm2061_vm1, 1.0, %v8751_v54  ;;  %vm2060_vm2 = vcmp.eq.s32.totalorder %v1970_v1, %v7086_v35 }
 0x29b   : > { %v2804_v36 = vadd.f32 %v8882_v9, %v2571_v59  ;;  %v3061_v11 = vadd.f32 %v7508_v18, %v2573_v2  ;;  %v3319_v7 = vadd.f32 %v3318_v50, %v3210_v41  ;;  %v3212_v12 = vmul.f32 %v3747_v56, %v3057_v14  ;;  %v4185_v18 = vld [vmem:[%s8313_s1 + $0x278] sm:$0xff]  ;;  %v8883_v50 = vld [vmem:[#allocation48_spill] sm:$0xff]  ;;  %v4187_v9 = vld [vmem:[%s8313_s1 + $0x290] sm:$0xff] }
 0x29c   : > { %v2806_v62 = vadd.f32 %v7510_v37, %v2572_v29  ;;  %v3749_v15 = vsel %vm2060_vm2, 1.0, %v8751_v54  ;;  %vm2062_vm3 = vcmp.eq.s32.totalorder %v1970_v1, %v7093_v21  ;;  %v8884_v56 = vsub.f32 1.0, %v8883_v50  ;;  %v4186_v29 = vld [vmem:[%s8313_s1 + $0x280] sm:$0xff] }
 0x29d   : > { %v3213_v40 = vmul.f32 %v3748_v49, %v2804_v36  ;;  %v3215_v17 = vmul.f32 %v3750_v43, %v3061_v11  ;;  %v3393_v44 = vadd.f32 %v3392_v57, %v3212_v12  ;;  %v3751_v41 = vsel %vm2062_vm3, 1.0, %v8751_v54  ;;  %v8885_v57 = vld [vmem:[#allocation49_spill] sm:$0xff]  ;;  %v8889_v12 = vld [vmem:[#allocation51_spill] sm:$0xff] }
 0x29e   : > { %v2574_v8 = vmul.f32 %v4185_v18, %v8884_v56  ;;  %v3214_v2 = vmul.f32 %v3749_v15, %v2806_v62  ;;  %v1971_v37 = vadd.s32 160, %v6966_v51  ;;  %v8886_v1 = vsub.f32 1.0, %v8885_v57 }
 0x29f   : > { %v3283_v59 = vadd.f32 %v3282_v42, %v3213_v40  ;;  %v3357_v30 = vadd.f32 %v3356_v58, %v3215_v17  ;;  %v8887_v42 = vld [vmem:[#allocation50_spill] sm:$0xff]  ;;  %v8890_v49 = vsub.f32 1.0, %v8889_v12  ;;  %v8891_v17 = vld [vmem:[#allocation52_spill] sm:$0xff]  ;;  %v1972_v18 = vadd.s32 168, %v6966_v51 }
 0x2a0   : > { %v3063_v14 = vadd.f32 %v7518_v63, %v2574_v8  ;;  %v2575_v3 = vmul.f32 %v4186_v29, %v8886_v1  ;;  %v8888_v58 = vsub.f32 1.0, %v8887_v42  ;;  %v3320_v11 = vadd.f32 %v3319_v7, %v3214_v2  ;;  %v4188_v63 = vld [vmem:[%s8313_s1 + $0x288] sm:$0xff]  ;;  %v4189_v40 = vld [vmem:[%s8313_s1 + $0x298] sm:$0xff] }
 0x2a1   : > { %v2576_v43 = vmul.f32 %v4188_v63, %v8890_v49  ;;  %v8892_v62 = vsub.f32 1.0, %v8891_v17  ;;  %vm2063_vm4 = vcmp.eq.s32.totalorder %v1971_v37, %v7073_v23  ;;  %vm2065_vm5 = vcmp.eq.s32.totalorder %v1971_v37, %v7080_v45  ;;  %v8895_v49 = vld [vmem:[#allocation54_spill] sm:$0xff] }
 0x2a2   : > { %v2577_v36 = vmul.f32 %v4187_v9, %v8888_v58  ;;  %v3216_v50 = vmul.f32 %v3751_v41, %v3063_v14  ;;  %v2810_v7 = vadd.f32 %v7526_v46, %v2575_v3  ;;  %v3752_v56 = vsel %vm2063_vm4, 1.0, %v8751_v54 }
 0x2a3   : > { %v2578_v15 = vmul.f32 %v4189_v40, %v8892_v62  ;;  %v3754_v8 = vsel %vm2065_vm5, 1.0, %v8751_v54  ;;  %vm2064_vm6 = vcmp.eq.s32.totalorder %v1971_v37, %v7086_v35  ;;  %v2812_v41 = vadd.f32 %v7532_v52, %v2576_v43  ;;  %v8893_v52 = vld [vmem:[#allocation53_spill] sm:$0xff] }
 0x2a4   : > { %v3067_v2 = vadd.f32 %v7530_v33, %v2577_v36  ;;  %v3394_v29 = vadd.f32 %v3393_v44, %v3216_v50  ;;  %v3217_v57 = vmul.f32 %v3752_v56, %v2810_v7  ;;  %v3753_v1 = vsel %vm2064_vm6, 1.0, %v8751_v54  ;;  %v4190_v36 = vld [vmem:[%s8313_s1 + $0x2a0] sm:$0xff] }
 0x2a5   : > { %vm2066_vm7 = vcmp.eq.s32.totalorder %v1971_v37, %v7093_v21  ;;  %v3069_v46 = vadd.f32 %v7541_v26, %v2578_v15  ;;  %vm2067_vm8 = vcmp.eq.s32.totalorder %v1972_v18, %v7073_v23  ;;  %v3218_v9 = vmul.f32 %v3753_v1, %v2812_v41  ;;  %v8897_v15 = vld [vmem:[#allocation55_spill] sm:$0xff]  ;;  %v8901_v41 = vld [vmem:[#allocation4_spill] sm:$0xff] }
 0x2a6   : > { %v3219_v14 = vmul.f32 %v3754_v8, %v3067_v2  ;;  %v3284_v3 = vadd.f32 %v3283_v59, %v3217_v57  ;;  %v3755_v42 = vsel %vm2066_vm7, 1.0, %v8751_v54  ;;  %v3756_v33 = vsel %vm2067_vm8, 1.0, %v8751_v54  ;;  %v4191_v59 = vld [vmem:[%s8313_s1 + $0x2b0] sm:$0xff]  ;;  %v4193_v8 = vld [vmem:[%s8313_s1 + $0x2b8] sm:$0xff]  ;;  %v8899_v2 = vld [vmem:[#allocation56_spill] sm:$0xff] }
 0x2a7   : > { %v3220_v44 = vmul.f32 %v3755_v42, %v3069_v46  ;;  %v8894_v63 = vsub.f32 1.0, %v8893_v52  ;;  %vm2069_vm9 = vcmp.eq.s32.totalorder %v1972_v18, %v7080_v45  ;;  %v3321_v26 = vadd.f32 %v3320_v11, %v3218_v9  ;;  %v4192_v11 = vld [vmem:[%s8313_s1 + $0x2a8] sm:$0xff]  ;;  %v8902_v9 = vld [vmem:[#allocation57_spill] sm:$0xff] }
 0x2a8   : > { %v3358_v58 = vadd.f32 %v3357_v30, %v3219_v14  ;;  %v3758_v37 = vsel %vm2069_vm9, 1.0, %v8751_v54  ;;  %v8896_v43 = vsub.f32 1.0, %v8895_v49  ;;  %vm2068_vm10 = vcmp.eq.s32.totalorder %v1972_v18, %v7086_v35 }
 0x2a9   : > { %v2579_v12 = vmul.f32 %v4190_v36, %v8894_v63  ;;  %v3395_v40 = vadd.f32 %v3394_v29, %v3220_v44  ;;  %v3757_v62 = vsel %vm2068_vm10, 1.0, %v8751_v54  ;;  %v8898_v50 = vsub.f32 1.0, %v8897_v15  ;;  %v8904_v36 = vld [vmem:[#allocation5_spill] sm:$0xff] }
 0x2aa   : > { %v2581_v30 = vmul.f32 %v4191_v59, %v8896_v43  ;;  %vm2070_vm11 = vcmp.eq.s32.totalorder %v1972_v18, %v7093_v21  ;;  %v8900_v29 = vsub.f32 1.0, %v8899_v2  ;;  %v1973_v57 = vadd.s32 176, %v6966_v51 }
 0x2ab   : > { %v2816_v17 = vadd.f32 %v7556_v48, %v2579_v12  ;;  %v2580_v7 = vmul.f32 %v4192_v11, %v8898_v50  ;;  %v3759_v46 = vsel %vm2070_vm11, 1.0, %v8751_v54  ;;  %v8903_v18 = vsub.f32 1.0, %v8902_v9 }
 0x2ac   : > { %v3073_v56 = vadd.f32 %v7569_v20, %v2581_v30  ;;  %v2582_v48 = vmul.f32 %v4193_v8, %v8900_v29  ;;  %v4194_v20 = vld [vmem:[%s8313_s1 + $0x2c0] sm:$0xff]  ;;  %vm2071_vm12 = vcmp.eq.s32.totalorder %v1973_v57, %v7073_v23  ;;  %vm2073_vm13 = vcmp.eq.s32.totalorder %v1973_v57, %v7080_v45 }
 0x2ad   : > { %v3221_v1 = vmul.f32 %v3756_v33, %v2816_v17  ;;  %v2818_v14 = vadd.f32 %v8901_v41, %v2580_v7  ;;  %v2583_v42 = vmul.f32 %v4194_v20, %v8903_v18  ;;  %v3760_v12 = vsel %vm2071_vm12, 1.0, %v8751_v54  ;;  %v8905_v17 = vld [vmem:[#allocation58_spill] sm:$0xff]  ;;  %v8909_v41 = vld [vmem:[#allocation60_spill] sm:$0xff] }
 0x2ae   : > { %v3223_v44 = vmul.f32 %v3758_v37, %v3073_v56  ;;  %v3075_v52 = vadd.f32 %v8904_v36, %v2582_v48  ;;  %v3762_v30 = vsel %vm2073_vm13, 1.0, %v8751_v54  ;;  %v4195_v37 = vld [vmem:[%s8313_s1 + $0x2d0] sm:$0xff]  ;;  %v8906_v11 = vsub.f32 1.0, %v8905_v17  ;;  %v8918_v17 = vld [vmem:[#allocation64_spill] sm:$0xff] }
 0x2af   : > { %v3285_v63 = vadd.f32 %v3284_v3, %v3221_v1  ;;  %v3222_v33 = vmul.f32 %v3757_v62, %v2818_v14  ;;  %v2822_v59 = vadd.f32 %v7584_v4, %v2583_v42  ;;  %vm2072_vm14 = vcmp.eq.s32.totalorder %v1973_v57, %v7086_v35  ;;  %v4196_v3 = vld [vmem:[%s8313_s1 + $0x2c8] sm:$0xff]  ;;  %v8907_v4 = vld [vmem:[#allocation59_spill] sm:$0xff]  ;;  %v4197_v1 = vld [vmem:[%s8313_s1 + $0x2d8] sm:$0xff] }
 0x2b0   : > { %v3359_v49 = vadd.f32 %v3358_v58, %v3223_v44  ;;  %v3224_v43 = vmul.f32 %v3759_v46, %v3075_v52  ;;  %v2585_v15 = vmul.f32 %v4195_v37, %v8906_v11  ;;  %v8908_v58 = vsub.f32 1.0, %v8907_v4  ;;  %v8913_v42 = vld [vmem:[#allocation62_spill] sm:$0xff] }
 0x2b1   : > { %v3322_v50 = vadd.f32 %v3321_v26, %v3222_v33  ;;  %v3225_v7 = vmul.f32 %v3760_v12, %v2822_v59  ;;  %v3761_v2 = vsel %vm2072_vm14, 1.0, %v8751_v54  ;;  %vm2074_vm15 = vcmp.eq.s32.totalorder %v1973_v57, %v7093_v21  ;;  %v8911_v57 = vld [vmem:[#allocation61_spill] sm:$0xff]  ;;  %v4200_v12 = vld [vmem:[%s8313_s1 + $0x2e8] sm:$0xff]  ;;  %v8916_v59 = vld [vmem:[#allocation63_spill] sm:$0xff] }
 0x2b2   : > { %v2584_v62 = vmul.f32 %v4196_v3, %v8908_v58  ;;  %v3396_v56 = vadd.f32 %v3395_v40, %v3224_v43  ;;  %v3079_v8 = vadd.f32 %v7589_v61, %v2585_v15  ;;  %v3763_v48 = vsel %vm2074_vm15, 1.0, %v8751_v54  ;;  %v4198_v61 = vld [vmem:[%s8313_s1 + $0x2e0] sm:$0xff]  ;;  %v4201_v37 = vld [vmem:[%s8313_s1 + $0x2f8] sm:$0xff] }
 0x2b3   : > { %v3286_v29 = vadd.f32 %v3285_v63, %v3225_v7  ;;  %v8910_v14 = vsub.f32 1.0, %v8909_v41  ;;  %v1974_v40 = vadd.s32 184, %v6966_v51  ;;  %v8912_v9 = vsub.f32 1.0, %v8911_v57  ;;  %v8915_v63 = vld [vmem:[#allocation6_spill] sm:$0xff]  ;;  %v8920_v3 = vld [vmem:[#allocation7_spill] sm:$0xff] }
 0x2b4   : > { %v2824_v26 = vadd.f32 %v7591_v0, %v2584_v62  ;;  %v3227_v20 = vmul.f32 %v3762_v30, %v3079_v8  ;;  %v4199_v0 = vld [vmem:[%s8313_s1 + $0x2f0] sm:$0xff]  ;;  %v8914_v44 = vsub.f32 1.0, %v8913_v42  ;;  %v8917_v43 = vsub.f32 1.0, %v8916_v59 }
 0x2b5   : > { %v2586_v46 = vmul.f32 %v4197_v1, %v8910_v14  ;;  %v2587_v18 = vmul.f32 %v4198_v61, %v8912_v9  ;;  %v8919_v11 = vsub.f32 1.0, %v8918_v17  ;;  %vm2075_vm0 = vcmp.eq.s32.totalorder %v1974_v40, %v7073_v23  ;;  %v8921_v1 = vld [vmem:[#allocation8_spill] sm:$0xff]  ;;  %v8922_v14 = vld [vmem:[#allocation97_spill] sm:$0xff] }
 0x2b6   : > { %v2589_v36 = vmul.f32 %v4199_v0, %v8914_v44  ;;  %v3226_v52 = vmul.f32 %v3761_v2, %v2824_v26  ;;  %v2588_v30 = vmul.f32 %v4200_v12, %v8917_v43  ;;  %v3360_v7 = vadd.f32 %v3359_v49, %v3227_v20  ;;  %v8923_v61 = vld [vmem:[#allocation9_spill] sm:$0xff]  ;;  %v4202_v44 = vld [vmem:[%s8313_s1 + $0x300] sm:$0xff]  ;;  %v4204_v43 = vld [vmem:[%s8313_s1 + $0x308] sm:$0xff] }
 0x2b7   : > { %v3081_v33 = vadd.f32 %v8915_v63, %v2586_v46  ;;  %v2590_v15 = vmul.f32 %v4201_v37, %v8919_v11  ;;  %v2828_v4 = vadd.f32 %v8920_v3, %v2587_v18  ;;  %vm2077_vm1 = vcmp.eq.s32.totalorder %v1974_v40, %v7080_v45  ;;  %v8926_v63 = vld [vmem:[#allocation66_spill] sm:$0xff] }
 0x2b8   : > { %v3323_v58 = vadd.f32 %v3322_v50, %v3226_v52  ;;  %v3764_v8 = vsel %vm2075_vm0, 1.0, %v8751_v54  ;;  %v3766_v2 = vsel %vm2077_vm1, 1.0, %v8751_v54  ;;  %v3085_v41 = vadd.f32 %v8921_v1, %v2589_v36  ;;  %v8924_v36 = vld [vmem:[#allocation65_spill] sm:$0xff]  ;;  %v4205_v11 = vld [vmem:[%s8313_s1 + $0x318] sm:$0xff] }
 0x2b9   : > { %v3228_v62 = vmul.f32 %v3763_v48, %v3081_v33  ;;  %v3229_v26 = vmul.f32 %v3764_v8, %v2828_v4  ;;  %vm2076_vm2 = vcmp.eq.s32.totalorder %v1974_v40, %v7086_v35  ;;  %v2830_v46 = vadd.f32 %v8922_v14, %v2588_v30  ;;  %v8928_v30 = vld [vmem:[#allocation67_spill] sm:$0xff] }
 0x2ba   : > { %v3765_v20 = vsel %vm2076_vm2, 1.0, %v8751_v54  ;;  %vm2078_vm3 = vcmp.eq.s32.totalorder %v1974_v40, %v7093_v21  ;;  %v3087_v57 = vadd.f32 %v8923_v61, %v2590_v15  ;;  %v3231_v48 = vmul.f32 %v3766_v2, %v3085_v41  ;;  %v4203_v40 = vld [vmem:[%s8313_s1 + $0x310] sm:$0xff]  ;;  %v8930_v15 = vld [vmem:[#allocation68_spill] sm:$0xff] }
 0x2bb   : > { %v3397_v49 = vadd.f32 %v3396_v56, %v3228_v62  ;;  %v3287_v50 = vadd.f32 %v3286_v29, %v3229_v26  ;;  %v3230_v9 = vmul.f32 %v3765_v20, %v2830_v46  ;;  %v3767_v18 = vsel %vm2078_vm3, 1.0, %v8751_v54 }
 0x2bc   : > { %v3232_v0 = vmul.f32 %v3767_v18, %v3087_v57  ;;  %v1975_v42 = vadd.s32 192, %v6966_v51  ;;  %v8925_v56 = vsub.f32 1.0, %v8924_v36  ;;  %v8927_v29 = vsub.f32 1.0, %v8926_v63  ;;  %v8932_v57 = vld [vmem:[#allocation69_spill] sm:$0xff]  ;;  %v8934_v18 = vld [vmem:[#allocation70_spill] sm:$0xff] }
 0x2bd   : > { %v3361_v12 = vadd.f32 %v3360_v7, %v3231_v48  ;;  %v3324_v59 = vadd.f32 %v3323_v58, %v3230_v9  ;;  %v8929_v37 = vsub.f32 1.0, %v8928_v30  ;;  %v8931_v3 = vsub.f32 1.0, %v8930_v15  ;;  %v8940_v15 = vld [vmem:[#allocation72_spill] sm:$0xff] }
 0x2be   : > { %v2591_v52 = vmul.f32 %v4202_v44, %v8925_v56  ;;  %v2593_v33 = vmul.f32 %v4203_v40, %v8927_v29  ;;  %v3398_v62 = vadd.f32 %v3397_v49, %v3232_v0  ;;  %vm2079_vm4 = vcmp.eq.s32.totalorder %v1975_v42, %v7073_v23  ;;  %v8936_v56 = vld [vmem:[#allocation10_spill] sm:$0xff]  ;;  %v8937_v29 = vld [vmem:[#allocation11_spill] sm:$0xff] }
 0x2bf   : > { %v2592_v17 = vmul.f32 %v4204_v43, %v8929_v37  ;;  %v2594_v4 = vmul.f32 %v4205_v11, %v8931_v3  ;;  %vm2081_vm5 = vcmp.eq.s32.totalorder %v1975_v42, %v7080_v45  ;;  %v3768_v58 = vsel %vm2079_vm4, 1.0, %v8751_v54  ;;  %v8938_v43 = vld [vmem:[#allocation71_spill] sm:$0xff]  ;;  %v4209_v11 = vld [vmem:[%s8313_s1 + $0x338] sm:$0xff] }
 0x2c0   : > { %v2834_v7 = vadd.f32 %v7643_v31, %v2591_v52  ;;  %v3770_v8 = vsel %vm2081_vm5, 1.0, %v8751_v54  ;;  %v3091_v2 = vadd.f32 %v7647_v6, %v2593_v33  ;;  %vm2080_vm6 = vcmp.eq.s32.totalorder %v1975_v42, %v7086_v35  ;;  %v4206_v6 = vld [vmem:[%s8313_s1 + $0x320] sm:$0xff] }
 0x2c1   : > { %v3769_v1 = vsel %vm2080_vm6, 1.0, %v8751_v54  ;;  %v2836_v41 = vadd.f32 %v7649_v19, %v2592_v17  ;;  %vm2082_vm7 = vcmp.eq.s32.totalorder %v1975_v42, %v7093_v21  ;;  %v3093_v46 = vadd.f32 %v7657_v10, %v2594_v4  ;;  %v4207_v19 = vld [vmem:[%s8313_s1 + $0x330] sm:$0xff] }
 0x2c2   : > { %v3233_v26 = vmul.f32 %v3768_v58, %v2834_v7  ;;  %v3235_v14 = vmul.f32 %v3770_v8, %v3091_v2  ;;  %v3771_v31 = vsel %vm2082_vm7, 1.0, %v8751_v54  ;;  %v1976_v49 = vadd.s32 200, %v6966_v51  ;;  %v8942_v7 = vld [vmem:[#allocation12_spill] sm:$0xff] }
 0x2c3   : > { %v3234_v61 = vmul.f32 %v3769_v1, %v2836_v41  ;;  %v8933_v48 = vsub.f32 1.0, %v8932_v57  ;;  %v8935_v0 = vsub.f32 1.0, %v8934_v18  ;;  %v3236_v10 = vmul.f32 %v3771_v31, %v3093_v46  ;;  %v4210_v41 = vld [vmem:[%s8313_s1 + $0x340] sm:$0xff] }
 0x2c4   : > { %v3288_v20 = vadd.f32 %v3287_v50, %v3233_v26  ;;  %v3362_v44 = vadd.f32 %v3361_v12, %v3235_v14  ;;  %vm2083_vm8 = vcmp.eq.s32.totalorder %v1976_v49, %v7073_v23  ;;  %vm2085_vm9 = vcmp.eq.s32.totalorder %v1976_v49, %v7080_v45  ;;  %v4208_v12 = vld [vmem:[%s8313_s1 + $0x328] sm:$0xff]  ;;  %v8943_v14 = vld [vmem:[#allocation73_spill] sm:$0xff] }
 0x2c5   : > { %v2595_v9 = vmul.f32 %v4206_v6, %v8933_v48  ;;  %v2597_v42 = vmul.f32 %v4207_v19, %v8935_v0  ;;  %v3325_v50 = vadd.f32 %v3324_v59, %v3234_v61  ;;  %v3772_v36 = vsel %vm2083_vm8, 1.0, %v8751_v54  ;;  %v8945_v61 = vld [vmem:[#allocation74_spill] sm:$0xff] }
 0x2c6   : > { %v3774_v40 = vsel %vm2085_vm9, 1.0, %v8751_v54  ;;  %v3399_v63 = vadd.f32 %v3398_v62, %v3236_v10  ;;  %vm2084_vm10 = vcmp.eq.s32.totalorder %v1976_v49, %v7086_v35  ;;  %v8939_v30 = vsub.f32 1.0, %v8938_v43  ;;  %v8947_v10 = vld [vmem:[#allocation75_spill] sm:$0xff] }
 0x2c7   : > { %v2840_v52 = vadd.f32 %v8936_v56, %v2595_v9  ;;  %v3097_v33 = vadd.f32 %v8937_v29, %v2597_v42  ;;  %v3773_v59 = vsel %vm2084_vm10, 1.0, %v8751_v54  ;;  %vm2086_vm11 = vcmp.eq.s32.totalorder %v1976_v49, %v7093_v21  ;;  %v4211_v49 = vld [vmem:[%s8313_s1 + $0x350] sm:$0xff] }
 0x2c8   : > { %v2596_v37 = vmul.f32 %v4208_v12, %v8939_v30  ;;  %v8941_v3 = vsub.f32 1.0, %v8940_v15  ;;  %v3775_v8 = vsel %vm2086_vm11, 1.0, %v8751_v54  ;;  %v1977_v2 = vadd.s32 208, %v6966_v51  ;;  %v8949_v12 = vld [vmem:[#allocation76_spill] sm:$0xff] }
 0x2c9   : > { %v3237_v17 = vmul.f32 %v3772_v36, %v2840_v52  ;;  %v3239_v62 = vmul.f32 %v3774_v40, %v3097_v33  ;;  %v8944_v31 = vsub.f32 1.0, %v8943_v14  ;;  %v8946_v6 = vsub.f32 1.0, %v8945_v61  ;;  %v4213_v33 = vld [vmem:[%s8313_s1 + $0x358] sm:$0xff] }
 0x2ca   : > { %v2598_v4 = vmul.f32 %v4209_v11, %v8941_v3  ;;  %v2842_v58 = vadd.f32 %v8942_v7, %v2596_v37  ;;  %vm2087_vm12 = vcmp.eq.s32.totalorder %v1977_v2, %v7073_v23  ;;  %vm2089_vm13 = vcmp.eq.s32.totalorder %v1977_v2, %v7080_v45  ;;  %v8953_v3 = vld [vmem:[#allocation78_spill] sm:$0xff] }
 0x2cb   : > { %v3289_v26 = vadd.f32 %v3288_v20, %v3237_v17  ;;  %v2599_v46 = vmul.f32 %v4210_v41, %v8944_v31  ;;  %v2601_v57 = vmul.f32 %v4211_v49, %v8946_v6  ;;  %v3363_v48 = vadd.f32 %v3362_v44, %v3239_v62  ;;  %v4212_v44 = vld [vmem:[%s8313_s1 + $0x348] sm:$0xff]  ;;  %v4214_v17 = vld [vmem:[%s8313_s1 + $0x360] sm:$0xff] }
 0x2cc   : > { %v3099_v1 = vadd.f32 %v7692_v13, %v2598_v4  ;;  %v3238_v9 = vmul.f32 %v3773_v59, %v2842_v58  ;;  %v3776_v20 = vsel %vm2087_vm12, 1.0, %v8751_v54  ;;  %v3778_v18 = vsel %vm2089_vm13, 1.0, %v8751_v54  ;;  %v8951_v59 = vld [vmem:[#allocation77_spill] sm:$0xff] }
 0x2cd   : > { %v2846_v19 = vadd.f32 %v7708_v24, %v2599_v46  ;;  %v3103_v42 = vadd.f32 %v7712_v34, %v2601_v57  ;;  %vm2088_vm14 = vcmp.eq.s32.totalorder %v1977_v2, %v7086_v35  ;;  %v8948_v36 = vsub.f32 1.0, %v8947_v10 }
 0x2ce   : > { %v3240_v13 = vmul.f32 %v3775_v8, %v3099_v1  ;;  %v3326_v0 = vadd.f32 %v3325_v50, %v3238_v9  ;;  %v3777_v29 = vsel %vm2088_vm14, 1.0, %v8751_v54  ;;  %vm2090_vm15 = vcmp.eq.s32.totalorder %v1977_v2, %v7093_v21  ;;  %v4216_v2 = vld [vmem:[%s8313_s1 + $0x368] sm:$0xff] }
 0x2cf   : > { %v2600_v56 = vmul.f32 %v4212_v44, %v8948_v36  ;;  %v3241_v40 = vmul.f32 %v3776_v20, %v2846_v19  ;;  %v3243_v24 = vmul.f32 %v3778_v18, %v3103_v42  ;;  %v3779_v34 = vsel %vm2090_vm15, 1.0, %v8751_v54  ;;  %v4218_v36 = vld [vmem:[%s8313_s1 + $0x380] sm:$0xff] }
 0x2d0   : > { %v3400_v52 = vadd.f32 %v3399_v63, %v3240_v13  ;;  %v8950_v43 = vsub.f32 1.0, %v8949_v12  ;;  %v1978_v63 = vadd.s32 216, %v6966_v51  ;;  %v8952_v11 = vsub.f32 1.0, %v8951_v59  ;;  %v8963_v12 = vld [vmem:[#allocation83_spill] sm:$0xff] }
 0x2d1   : > { %v2848_v50 = vadd.f32 %v7714_v22, %v2600_v56  ;;  %v3290_v37 = vadd.f32 %v3289_v26, %v3241_v40  ;;  %v4215_v22 = vld [vmem:[%s8313_s1 + $0x370] sm:$0xff]  ;;  %v8954_v4 = vsub.f32 1.0, %v8953_v3  ;;  %v3364_v7 = vadd.f32 %v3363_v48, %v3243_v24  ;;  %v8955_v26 = vld [vmem:[#allocation79_spill] sm:$0xff]  ;;  %v8961_v24 = vld [vmem:[#allocation82_spill] sm:$0xff] }
 0x2d2   : > { %v2602_v30 = vmul.f32 %v4213_v33, %v8950_v43  ;;  %v2603_v15 = vmul.f32 %v4214_v17, %v8952_v11  ;;  %v8956_v1 = vsub.f32 1.0, %v8955_v26  ;;  %vm2091_vm0 = vcmp.eq.s32.totalorder %v1978_v63, %v7073_v23  ;;  %v8959_v56 = vld [vmem:[#allocation81_spill] sm:$0xff]  ;;  %v8968_v26 = vld [vmem:[#allocation14_spill] sm:$0xff] }
 0x2d3   : > { %v2605_v62 = vmul.f32 %v4215_v22, %v8954_v4  ;;  %v3242_v58 = vmul.f32 %v3777_v29, %v2848_v50  ;;  %vm2093_vm1 = vcmp.eq.s32.totalorder %v1978_v63, %v7080_v45  ;;  %v3780_v61 = vsel %vm2091_vm0, 1.0, %v8751_v54  ;;  %v4219_v29 = vld [vmem:[%s8313_s1 + $0x390] sm:$0xff] }
 0x2d4   : > { %v3105_v8 = vadd.f32 %v7719_v38, %v2602_v30  ;;  %v2604_v41 = vmul.f32 %v4216_v2, %v8956_v1  ;;  %v2852_v14 = vadd.f32 %v7725_v27, %v2603_v15  ;;  %v3782_v38 = vsel %vm2093_vm1, 1.0, %v8751_v54  ;;  %v4217_v27 = vld [vmem:[%s8313_s1 + $0x378] sm:$0xff] }
 0x2d5   : > { %v3109_v31 = vadd.f32 %v7738_v16, %v2605_v62  ;;  %v3327_v46 = vadd.f32 %v3326_v0, %v3242_v58  ;;  %vm2092_vm2 = vcmp.eq.s32.totalorder %v1978_v63, %v7086_v35  ;;  %vm2094_vm3 = vcmp.eq.s32.totalorder %v1978_v63, %v7093_v21  ;;  %v8957_v16 = vld [vmem:[#allocation80_spill] sm:$0xff]  ;;  %v8967_v62 = vld [vmem:[#allocation13_spill] sm:$0xff] }
 0x2d6   : > { %v3244_v49 = vmul.f32 %v3779_v34, %v3105_v8  ;;  %v3245_v6 = vmul.f32 %v3780_v61, %v2852_v14  ;;  %v2854_v48 = vadd.f32 %v7740_v25, %v2604_v41  ;;  %v3781_v13 = vsel %vm2092_vm2, 1.0, %v8751_v54  ;;  %v8965_v63 = vld [vmem:[#allocation84_spill] sm:$0xff]  ;;  %v8969_v14 = vld [vmem:[#allocation95_spill] sm:$0xff] }
 0x2d7   : > { %v3247_v57 = vmul.f32 %v3782_v38, %v3109_v31  ;;  %v8958_v20 = vsub.f32 1.0, %v8957_v16  ;;  %v3783_v44 = vsel %vm2094_vm3, 1.0, %v8751_v54  ;;  %v1979_v25 = vadd.s32 224, %v6966_v51  ;;  %v4223_v16 = vld [vmem:[%s8313_s1 + $0x3b0] sm:$0xff] }
 0x2d8   : > { %v3401_v9 = vadd.f32 %v3400_v52, %v3244_v49  ;;  %v3291_v18 = vadd.f32 %v3290_v37, %v3245_v6  ;;  %v3246_v42 = vmul.f32 %v3781_v13, %v2854_v48  ;;  %v8960_v52 = vsub.f32 1.0, %v8959_v56  ;;  %v4221_v37 = vld [vmem:[%s8313_s1 + $0x398] sm:$0xff]  ;;  %v8970_v48 = vld [vmem:[#allocation85_spill] sm:$0xff] }
 0x2d9   : > { %v2606_v19 = vmul.f32 %v4217_v27, %v8958_v20  ;;  %v3365_v0 = vadd.f32 %v3364_v7, %v3247_v57  ;;  %v8962_v50 = vsub.f32 1.0, %v8961_v24  ;;  %v8964_v43 = vsub.f32 1.0, %v8963_v12  ;;  %v4222_v57 = vld [vmem:[%s8313_s1 + $0x3a0] sm:$0xff]  ;;  %v8972_v20 = vld [vmem:[#allocation86_spill] sm:$0xff] }
 0x2da   : > { %v2607_v40 = vmul.f32 %v4218_v36, %v8960_v52  ;;  %v3328_v33 = vadd.f32 %v3327_v46, %v3246_v42  ;;  %v8966_v17 = vsub.f32 1.0, %v8965_v63  ;;  %v1980_v11 = vadd.s32 232, %v6966_v51 }
 0x2db   : > { %v3111_v10 = vadd.f32 %v7752_v55, %v2606_v19  ;;  %v2609_v34 = vmul.f32 %v4219_v29, %v8962_v50  ;;  %v4220_v55 = vld [vmem:[%s8313_s1 + $0x388] sm:$0xff]  ;;  %vm2095_vm4 = vcmp.eq.s32.totalorder %v1979_v25, %v7073_v23  ;;  %vm2097_vm5 = vcmp.eq.s32.totalorder %v1979_v25, %v7080_v45 }
 0x2dc   : > { %v2608_v30 = vmul.f32 %v4220_v55, %v8964_v43  ;;  %v2610_v59 = vmul.f32 %v4221_v37, %v8966_v17  ;;  %v2858_v22 = vadd.f32 %v7761_v39, %v2607_v40  ;;  %v3784_v3 = vsel %vm2095_vm4, 1.0, %v8751_v54  ;;  %v4225_v40 = vld [vmem:[%s8313_s1 + $0x3b8] sm:$0xff]  ;;  %v8976_v29 = vld [vmem:[#allocation88_spill] sm:$0xff]  ;;  %v8978_v55 = vld [vmem:[#allocation15_spill] sm:$0xff] }
 0x2dd   : > { %v3248_v15 = vmul.f32 %v3783_v44, %v3111_v10  ;;  %v3786_v4 = vsel %vm2097_vm5, 1.0, %v8751_v54  ;;  %v3115_v7 = vadd.f32 %v8967_v62, %v2609_v34  ;;  %vm2096_vm6 = vcmp.eq.s32.totalorder %v1979_v25, %v7086_v35  ;;  %v4224_v10 = vld [vmem:[%s8313_s1 + $0x3a8] sm:$0xff]  ;;  %v8979_v43 = vld [vmem:[#allocation89_spill] sm:$0xff] }
 0x2de   : > { %v3249_v8 = vmul.f32 %v3784_v3, %v2858_v22  ;;  %v3785_v2 = vsel %vm2096_vm6, 1.0, %v8751_v54  ;;  %v2860_v1 = vadd.f32 %v8968_v26, %v2608_v30  ;;  %vm2098_vm7 = vcmp.eq.s32.totalorder %v1979_v25, %v7093_v21  ;;  %v8974_v25 = vld [vmem:[#allocation87_spill] sm:$0xff] }
 0x2df   : > { %v3402_v58 = vadd.f32 %v3401_v9, %v3248_v15  ;;  %v3251_v41 = vmul.f32 %v3786_v4, %v3115_v7  ;;  %v3117_v39 = vadd.f32 %v7773_v5, %v2610_v59  ;;  %vm2099_vm8 = vcmp.eq.s32.totalorder %v1980_v11, %v7073_v23  ;;  %v8981_v59 = vld [vmem:[#allocation16_spill] sm:$0xff] }
 0x2e0   : > { %v2492_v31 = vsub.f32 1.0, %v8969_v14  ;;  %v3292_v46 = vadd.f32 %v3291_v18, %v3249_v8  ;;  %v3250_v49 = vmul.f32 %v3785_v2, %v2860_v1  ;;  %v3787_v61 = vsel %vm2098_vm7, 1.0, %v8751_v54  ;;  %v8982_v8 = vld [vmem:[#allocation90_spill] sm:$0xff]  ;;  %v8996_v14 = vld [vmem:[#allocation20_spill] sm:$0xff] }
 0x2e1   : > { %v3366_v38 = vadd.f32 %v3365_v0, %v3251_v41  ;;  %v3252_v6 = vmul.f32 %v3787_v61, %v3117_v39  ;;  %v8971_v9 = vsub.f32 1.0, %v8970_v48  ;;  %vm2101_vm9 = vcmp.eq.s32.totalorder %v1980_v11, %v7080_v45  ;;  %v8984_v39 = vld [vmem:[#allocation91_spill] sm:$0xff] }
 0x2e2   : > { %v3329_v5 = vadd.f32 %v3328_v33, %v3250_v49  ;;  %v3788_v27 = vsel %vm2099_vm8, 1.0, %v8751_v54  ;;  %v8973_v19 = vsub.f32 1.0, %v8972_v20  ;;  %vm2100_vm10 = vcmp.eq.s32.totalorder %v1980_v11, %v7086_v35 }
 0x2e3   : > { %v2611_v13 = vmul.f32 %v4222_v57, %v8971_v9  ;;  %v3403_v0 = vadd.f32 %v3402_v58, %v3252_v6  ;;  %v3790_v44 = vsel %vm2101_vm9, 1.0, %v8751_v54  ;;  %v8975_v36 = vsub.f32 1.0, %v8974_v25  ;;  %v4227_v58 = vld [vmem:[%s8313_s1 + $0x3d0] sm:$0xff] }
 0x2e4   : > { %v2613_v18 = vmul.f32 %v4223_v16, %v8973_v19  ;;  %vm2102_vm11 = vcmp.eq.s32.totalorder %v1980_v11, %v7093_v21  ;;  %v8977_v24 = vsub.f32 1.0, %v8976_v29  ;;  %v1981_v50 = vadd.s32 240, %v6966_v51  ;;  %v4232_v29 = vld [vmem:[%s8313_s1 + $0x3e8] sm:$0xff] }
 0x2e5   : > { %v2864_v42 = vadd.f32 %v7787_v28, %v2611_v13  ;;  %v2612_v56 = vmul.f32 %v4224_v10, %v8975_v36  ;;  %v3789_v33 = vsel %vm2100_vm10, 1.0, %v8751_v54  ;;  %v8980_v30 = vsub.f32 1.0, %v8979_v43  ;;  %v4229_v13 = vld [vmem:[%s8313_s1 + $0x3d8] sm:$0xff]  ;;  %v8990_v10 = vld [vmem:[#allocation17_spill] sm:$0xff] }
 0x2e6   : > { %v3121_v52 = vadd.f32 %v7792_v47, %v2613_v18  ;;  %v2614_v28 = vmul.f32 %v4225_v40, %v8977_v24  ;;  %v4226_v47 = vld [vmem:[%s8313_s1 + $0x3c0] sm:$0xff]  ;;  %v3791_v17 = vsel %vm2102_vm11, 1.0, %v8751_v54  ;;  %vm2103_vm12 = vcmp.eq.s32.totalorder %v1981_v50, %v7073_v23  ;;  %v4231_v36 = vld [vmem:[%s8313_s1 + $0x3f0] sm:$0xff] }
 0x2e7   : > { %v3253_v34 = vmul.f32 %v3788_v27, %v2864_v42  ;;  %v2866_v12 = vadd.f32 %v8978_v55, %v2612_v56  ;;  %v2615_v37 = vmul.f32 %v4226_v47, %v8980_v30  ;;  %vm2105_vm13 = vcmp.eq.s32.totalorder %v1981_v50, %v7080_v45  ;;  %v8991_v56 = vld [vmem:[#allocation94_spill] sm:$0xff] }
 0x2e8   : > { %v3255_v63 = vmul.f32 %v3790_v44, %v3121_v52  ;;  %v3123_v11 = vadd.f32 %v8981_v59, %v2614_v28  ;;  %v3792_v7 = vsel %vm2103_vm12, 1.0, %v8751_v54  ;;  %v8983_v2 = vsub.f32 1.0, %v8982_v8 }
 0x2e9   : > { %v3293_v15 = vadd.f32 %v3292_v46, %v3253_v34  ;;  %v3254_v22 = vmul.f32 %v3789_v33, %v2866_v12  ;;  %v2870_v3 = vadd.f32 %v7815_v32, %v2615_v37  ;;  %vm2104_vm14 = vcmp.eq.s32.totalorder %v1981_v50, %v7086_v35  ;;  %v4228_v32 = vld [vmem:[%s8313_s1 + $0x3c8] sm:$0xff]  ;;  %v8995_v37 = vld [vmem:[#allocation19_spill] sm:$0xff] }
 0x2ea   : > { %v3367_v4 = vadd.f32 %v3366_v38, %v3255_v63  ;;  %v3256_v62 = vmul.f32 %v3791_v17, %v3123_v11  ;;  %v2617_v26 = vmul.f32 %v4227_v58, %v8983_v2  ;;  %v8985_v46 = vsub.f32 1.0, %v8984_v39  ;;  %v8994_v33 = vld [vmem:[#allocation96_spill] sm:$0xff] }
 0x2eb   : > { %v3330_v1 = vadd.f32 %v3329_v5, %v3254_v22  ;;  %v3257_v41 = vmul.f32 %v3792_v7, %v2870_v3  ;;  %v3794_v38 = vsel %vm2105_vm13, 1.0, %v8751_v54  ;;  %vm2106_vm15 = vcmp.eq.s32.totalorder %v1981_v50, %v7093_v21  ;;  %v8986_v5 = vld [vmem:[#allocation92_spill] sm:$0xff]  ;;  %v8993_v50 = vld [vmem:[#allocation18_spill] sm:$0xff]  ;;  %v8997_v7 = vld [vmem:[#allocation21_spill] sm:$0xff] }
 0x2ec   : > { %v2616_v49 = vmul.f32 %v4228_v32, %v8985_v46  ;;  %v3404_v61 = vadd.f32 %v3403_v0, %v3256_v62  ;;  %v3127_v6 = vadd.f32 %v7828_v60, %v2617_v26  ;;  %v3793_v48 = vsel %vm2104_vm14, 1.0, %v8751_v54  ;;  %v4230_v60 = vld [vmem:[%s8313_s1 + $0x3e0] sm:$0xff]  ;;  %v8988_v0 = vld [vmem:[#allocation93_spill] sm:$0xff]  ;;  %v4233_v22 = vld [vmem:[%s8313_s1 + $0x3f8] sm:$0xff] }
 0x2ed   : > { %v3294_v57 = vadd.f32 %v3293_v15, %v3257_v41  ;;  %v8987_v27 = vsub.f32 1.0, %v8986_v5  ;;  %v3795_v19 = vsel %vm2106_vm15, 1.0, %v8751_v54  ;;  %v1982_v18 = vadd.s32 248, %v6966_v51 }
 0x2ee   : > { %v2872_v9 = vadd.f32 %v7830_v53, %v2616_v49  ;;  %v3259_v20 = vmul.f32 %v3794_v38, %v3127_v6  ;;  %v8989_v42 = vsub.f32 1.0, %v8988_v0  ;;  %v8992_v52 = vsub.f32 1.0, %v8991_v56 }
 0x2ef   : > { %v2618_v16 = vmul.f32 %v4229_v13, %v8987_v27  ;;  %v2620_v24 = vmul.f32 %v4232_v29, %v2492_v31  ;;  %vm2107_vm0 = vcmp.eq.s32.totalorder %v1982_v18, %v7073_v23  ;;  %vm2109_vm1 = vcmp.eq.s32.totalorder %v1982_v18, %v7080_v45 }
 0x2f0   : > { %v2619_v44 = vmul.f32 %v4230_v60, %v8989_v42  ;;  %v3258_v53 = vmul.f32 %v3793_v48, %v2872_v9  ;;  %v2621_v40 = vmul.f32 %v4231_v36, %v8992_v52  ;;  %v3368_v28 = vadd.f32 %v3367_v4, %v3259_v20 }
 0x2f1   : > { %v3129_v25 = vadd.f32 %v8990_v10, %v2618_v16  ;;  %v2494_v55 = vsub.f32 1.0, %v8994_v33  ;;  %v3796_v43 = vsel %vm2107_vm0, 1.0, %v8751_v54  ;;  %vm2108_vm2 = vcmp.eq.s32.totalorder %v1982_v18, %v7086_v35 }
 0x2f2   : > { %v2876_v34 = vadd.f32 %v8993_v50, %v2619_v44  ;;  %v3331_v12 = vadd.f32 %v3330_v1, %v3258_v53  ;;  %v3133_v63 = vadd.f32 %v8995_v37, %v2621_v40  ;;  %v2878_v31 = vadd.f32 %v8996_v14, %v2620_v24 }
 0x2f3   : > { %v3260_v47 = vmul.f32 %v3795_v19, %v3129_v25  ;;  %v3798_v23 = vsel %vm2109_vm1, 1.0, %v8751_v54  ;;  %v3797_v59 = vsel %vm2108_vm2, 1.0, %v8751_v54  ;;  %vm2110_vm3 = vcmp.eq.s32.totalorder %v1982_v18, %v7093_v21 }
 0x2f4   : > { %v3261_v30 = vmul.f32 %v3796_v43, %v2876_v34  ;;  %v3263_v45 = vmul.f32 %v3798_v23, %v3133_v63  ;;  %v3262_v15 = vmul.f32 %v3797_v59, %v2878_v31  ;;  %v2622_v3 = vmul.f32 %v4233_v22, %v2494_v55 }
 0x2f5   : > { %v3405_v17 = vadd.f32 %v3404_v61, %v3260_v47  ;;  %v3799_v1 = vsel %vm2110_vm3, 1.0, %v8751_v54  ;;  %v4259_v53 = vmov 1966171168  }
 0x2f6   : > { %v3295_v11 = vadd.f32 %v3294_v57, %v3261_v30  ;;  %v3369_v62 = vadd.f32 %v3368_v28, %v3263_v45  ;;  %v3332_v35 = vadd.f32 %v3331_v12, %v3262_v15  ;;  %v3135_v58 = vadd.f32 %v8997_v7, %v2622_v3 }
 0x2f7   : > { %v3448_v10 = vunpack.c.l.s4 %v4259_v53  ;;  %v8998_v15 = vlaneseq }
 0x2f8   : > { %v3296_v4 = vrot.slane %v3295_v11, 4  ;;  %v3370_v2 = vrot.slane %v3369_v62, 4  ;;  %v3333_v26 = vrot.slane %v3332_v35, 4  ;;  %v3264_v41 = vmul.f32 %v3799_v1, %v3135_v58 }
 0x2f9   : > { %v3449_v50 = vunpack.c.0.s8 %v3448_v10  ;;  %vm3472_vm12 = vcmp.lt.s32.totalorder %v8998_v15, 512 }
 0x2fa   : > { %v3297_v8 = vadd.f32 %v3296_v4, %v3295_v11  ;;  %v3371_v39 = vadd.f32 %v3370_v2, %v3369_v62  ;;  %v3334_v46 = vadd.f32 %v3333_v26, %v3332_v35  ;;  %v3406_v21 = vadd.f32 %v3405_v17, %v3264_v41 }
 0x2fb   : > { %v3452_v30 = vsub.s32 %v3449_v50, %v6966_v51 }
 0x2fc   : > { %v3298_v32 = vrot.slane %v3297_v8, 2  ;;  %v3372_v61 = vrot.slane %v3371_v39, 2  ;;  %v3335_v38 = vrot.slane %v3334_v46, 2  ;;  %v3407_v6 = vrot.slane %v3406_v21, 4 }
 0x2fe   : > { %v3299_v49 = vadd.f32 %v3298_v32, %v3297_v8  ;;  %v3373_v48 = vadd.f32 %v3372_v61, %v3371_v39  ;;  %v3336_v9 = vadd.f32 %v3335_v38, %v3334_v46  ;;  %v3408_v13 = vadd.f32 %v3407_v6, %v3406_v21 }
 0x300   : > { %v3300_v57 = vrot.slane %v3299_v49, 1  ;;  %v3374_v27 = vrot.slane %v3373_v48, 1  ;;  %v3337_v16 = vrot.slane %v3336_v9, 1  ;;  %v3409_v20 = vrot.slane %v3408_v13, 2 }
 0x302   : > { %v3301_v5 = vadd.f32 %v3300_v57, %v3299_v49  ;;  %v3375_v19 = vadd.f32 %v3374_v27, %v3373_v48  ;;  %v3338_v54 = vadd.f32 %v3337_v16, %v3336_v9  ;;  %v3410_v18 = vadd.f32 %v3409_v20, %v3408_v13 }
 0x304   : > { %4093 = vrsqrt.f32 %v3301_v5  ;;  %v3411_v60 = vrot.slane %v3410_v18, 1  ;;  %vm3415_vm4 = vcmp.eq.f32.partialorder %v3301_v5, inf  ;;  %v3418_v52 = vand.u32 2147483648, %v3301_v5 }
 0x305   : > { %4095 = vrsqrt.f32 %v3375_v19  ;;  %vm3417_vm5 = vcmp.eq.f32.partialorder %v3301_v5, 0.0  ;;  %vm3422_vm6 = vcmp.eq.f32.partialorder %v3338_v54, inf  ;;  %v3425_v28 = vand.u32 2147483648, %v3338_v54 }
 0x306   : > { %4097 = vrsqrt.f32 %v3338_v54  ;;  %v3412_v0 = vadd.f32 %v3411_v60, %v3410_v18  ;;  %vm3429_vm7 = vcmp.eq.f32.partialorder %v3375_v19, inf  ;;  %vm3424_vm8 = vcmp.eq.f32.partialorder %v3338_v54, 0.0 }
 0x307   : > { %v3432_v47 = vand.u32 2147483648, %v3375_v19  ;;  %vm3431_vm9 = vcmp.eq.f32.partialorder %v3375_v19, 0.0 }
 0x308   : > { %4099 = vrsqrt.f32 %v3412_v0  ;;  %vm3436_vm10 = vcmp.eq.f32.partialorder %v3412_v0, inf  ;;  %v3439_v14 = vand.u32 2147483648, %v3412_v0  ;;  %vm3438_vm11 = vcmp.eq.f32.partialorder %v3412_v0, 0.0 }
 0x30e   : > { %v4094_v42 = vpop.eup %4093 }
 0x30f   : > { %v3414_v44 = vmul.f32 %v4094_v42, %v3301_v5  ;;  %v4096_v25 = vpop.eup %4095 }
 0x310   : > { %v4098_v56 = vpop.eup %4097  ;;  %v3428_v40 = vmul.f32 %v4096_v25, %v3375_v19 }
 0x311   : > { %v3416_v36 = vsel %vm3415_vm4, %v3301_v5, %v3414_v44  ;;  %v3421_v29 = vmul.f32 %v4098_v56, %v3338_v54 }
 0x312   : > { %v3419_v24 = vsel %vm3417_vm5, %v3418_v52, %v3416_v36  ;;  %v3430_v33 = vsel %vm3429_vm7, %v3375_v19, %v3428_v40  ;;  %v4100_v12 = vpop.eup %4099 }
 0x313   : > { %v3423_v34 = vsel %vm3422_vm6, %v3338_v54, %v3421_v29  ;;  %v3435_v37 = vmul.f32 %v4100_v12, %v3412_v0  ;;  %v3433_v63 = vsel %vm3431_vm9, %v3432_v47, %v3430_v33 }
 0x314   : > { %v3426_v55 = vsel %vm3424_vm8, %v3425_v28, %v3423_v34 }
 0x315   : > { %v3445_v43 = vcombine.low %v3419_v24, %v3426_v55  ;;  %v3437_v31 = vsel %vm3436_vm10, %v3412_v0, %v3435_v37 }
 0x316   : > { %v3440_v17 = vsel %vm3438_vm11, %v3439_v14, %v3437_v31 }
 0x317   : > { %v3453_v23 = vrot.slane %v3445_v43, %v3452_v30  ;;  %v3446_v59 = vcombine.low %v3433_v63, %v3440_v17 }
 0x319   : > { %v3460_v11 = vrot.slane %v3446_v59, %v3452_v30 }
 0x31b   : > { %v3461_v45 = vcombine.low %v3453_v23, %v3460_v11 }
 0x31d   : > { %v3468_v51 = vrot.slane %v3461_v45, %v3452_v30 }
 0x31f   : > { %3474 = vst.msk [vmem:[%s443_s23] sm:$0xf] %vm3472_vm12, %v3468_v51 }
 0x320 PF: > { %p10_p9 = scmp.ge.s32.totalorder %s4297_s16, 6   ;;  %s8999_s12 = smov %s4252_s13 }
 0x321   : > { %s9000_s13 = smov %s4306_s19  ;;  %s9001_s14 = smov %s4297_s16 }
 0x322   :  { %12 = sbr.rel (!%p10_p9) target bundleno = 2 (0x2), region = 90 }

</bundles_post_ra>
